<compile_context>
chip_gen: v5e
topology: v5e:2x2
jax: 0.10.0
libtpu: 0.0.40
codegen_flags: <defaults>
</compile_context>

<pallas_src>
import functools

import jax
import jax.numpy as jnp
from jax import lax
from jax.experimental import pallas as pl
from jax.experimental.pallas import tpu as pltpu


CONFIG = dict(
    mpd_periods=[2, 3],
    mpd_sublayer_base_channels=4,
    mpd_num_sublayers=2,              # channels: [1, 4, 8, 16]
    mpd_sublayer_kernel_size=5,
    mpd_sublayer_stride=3,
    mpd_sublayer_last_kernel_size=3,
    relu_slope=0.1,
    msd_num_layers=2,
    msd_sublayer_channels=[4, 8, 1],
    msd_sublayer_kernels=[15, 5, 3],
    msd_sublayer_strides=[1, 2, 1],
    msd_sublayer_groups=[1, 4, 1],
)


# ----------------------------------------------------------------------------
# Static per-layer plan
# ----------------------------------------------------------------------------
def _layer(c_in, c_out, K, stride, pad, l_in, act, emit):
    l_full = l_in + 2 * pad - K + 1          # stride-1 output length
    l_out = (l_in + 2 * pad - K) // stride + 1
    return dict(c_in=c_in, c_out=c_out, K=K, stride=stride, pad=pad,
                l_in=l_in, l_full=l_full, l_out=l_out, act=act, emit=emit)


def _build_mpd_plan(cfg, H):
    channels = [1] + [cfg["mpd_sublayer_base_channels"] * 2 ** i
                      for i in range(cfg["mpd_num_sublayers"] + 1)]
    ks = cfg["mpd_sublayer_kernel_size"]
    lk = cfg["mpd_sublayer_last_kernel_size"]
    plan, L = [], H
    for i in range(len(channels) - 1):
        is_last = (i + 2 == len(channels))
        s = 1 if is_last else cfg["mpd_sublayer_stride"]
        m = _layer(channels[i], channels[i + 1], ks, s, (ks - 1) // 2, L,
                   act=True, emit=True)
        plan.append(m)
        L = m["l_out"]
    m = _layer(channels[-1], 1, lk, 1, (lk - 1) // 2, L, act=False, emit=True)
    plan.append(m)
    return plan


def _build_msd_plan(cfg, L, scale_idx):
    plan, Lc = [], L
    for _ in range(scale_idx):
        # AvgPool1d(4, 2, 2), count_include_pad=True == conv with 0.25 taps
        m = _layer(1, 1, 4, 2, 2, Lc, act=False, emit=False)
        plan.append(m)
        Lc = m["l_out"]
    n_convs = len(cfg["msd_sublayer_channels"])
    last_c = 1
    for idx, (c, k, s, _g) in enumerate(zip(cfg["msd_sublayer_channels"],
                                            cfg["msd_sublayer_kernels"],
                                            cfg["msd_sublayer_strides"],
                                            cfg["msd_sublayer_groups"])):
        m = _layer(last_c, c, k, s, (k - 1) // 2, Lc,
                   act=(idx + 1 < n_convs), emit=True)
        plan.append(m)
        Lc = m["l_out"]
        last_c = c
    return plan


# ----------------------------------------------------------------------------
# Fused conv-stack Pallas kernel (one sub-discriminator per pallas_call)
# ----------------------------------------------------------------------------
def _conv_step(x, w_aug, slab_ref, m, slope):
    """One conv layer on a single row: im2col slab + one MXU contraction."""
    c_in, c_out = m["c_in"], m["c_out"]
    K, s, pad = m["K"], m["stride"], m["pad"]
    L, L_full, L_out = m["l_in"], m["l_full"], m["l_out"]
    assert x.shape == (c_in, L), (x.shape, m)
    rows = K * c_in

    # Build the tap-stacked slab in VMEM scratch; zero padding for edge taps.
    slab_ref[0:rows, 0:L_full] = jnp.zeros((rows, L_full), jnp.float32)
    for t in range(K):
        a = max(0, t - pad)
        b = min(L, t - pad + L_full)
        if b <= a:
            continue
        dst = a - (t - pad)
        slab_ref[t * c_in:(t + 1) * c_in, dst:dst + (b - a)] = x[:, a:b]

    w_mat = w_aug[:, 0:rows].astype(jnp.bfloat16)      # (c_out, K*c_in)
    bias = w_aug[:, rows:rows + 1]                     # (c_out, 1) f32
    slab = slab_ref[0:rows, 0:L_full].astype(jnp.bfloat16)

    # One wide MXU contraction (bf16 in, f32 accumulate).
    y = jnp.dot(w_mat, slab, preferred_element_type=jnp.float32)   # (c_out, L_full)

    if s > 1:
        # Exact downsample y[:, ::s] as a 0/1 selection matmul (avoids strided
        # value slicing; MXU is idle anyway at these sizes).
        row_i = lax.broadcasted_iota(jnp.int32, (L_full, L_out), 0)
        col_i = lax.broadcasted_iota(jnp.int32, (L_full, L_out), 1)
        sel = (row_i == s * col_i).astype(jnp.float32)
        y = jnp.dot(y, sel, preferred_element_type=jnp.float32)    # (c_out, L_out)

    y = y + bias                                       # f32 bias
    if m["act"]:
        y = jnp.where(y >= 0.0, y, y * slope)          # LeakyReLU in f32
    return y


def _make_stack_kernel(plan, relu_slope):
    n_layers = len(plan)
    n_emit = sum(1 for m in plan if m["emit"])

    def kernel(*refs):
        x_ref = refs[0]
        w_refs = refs[1:1 + n_layers]
        o_refs = refs[1 + n_layers:1 + n_layers + n_emit]
        slab_ref = refs[1 + n_layers + n_emit]

        x = x_ref[0]                       # (1, L0) f32, first layer C_in = 1
        oi = 0
        for li, m in enumerate(plan):
            x = _conv_step(x, w_refs[li][...], slab_ref, m, relu_slope)
            if m["emit"]:
                o_refs[oi][0] = x
                oi += 1

    return kernel


def _run_stack(x_rows, weights, plan, relu_slope):
    """x_rows: (R, 1, L0) f32; weights[i]: (c_out_i, K_i*c_in_i + 1) f32."""
    R, _, L0 = x_rows.shape
    assert len(weights) == len(plan)
    for w, m in zip(weights, plan):
        assert tuple(w.shape) == (m["c_out"], m["K"] * m["c_in"] + 1), (w.shape, m)
    emit = [m for m in plan if m["emit"]]
    max_rows = max(m["K"] * m["c_in"] for m in plan)
    max_cols = max(m["l_full"] for m in plan)

    in_specs = [pl.BlockSpec((1, 1, L0), lambda r: (r, 0, 0))]
    for w in weights:
        in_specs.append(pl.BlockSpec(tuple(w.shape), lambda r: (0, 0)))
    out_shape = [jax.ShapeDtypeStruct((R, m["c_out"], m["l_out"]), jnp.float32)
                 for m in emit]
    out_specs = [pl.BlockSpec((1, m["c_out"], m["l_out"]), lambda r: (r, 0, 0))
                 for m in emit]

    feats = pl.pallas_call(
        _make_stack_kernel(plan, relu_slope),
        out_shape=out_shape,
        grid=(R,),
        in_specs=in_specs,
        out_specs=out_specs,
        scratch_shapes=[pltpu.VMEM((max_rows, max_cols), jnp.float32)],
        compiler_params=pltpu.CompilerParams(
            dimension_semantics=("parallel",),          # v7x: shard rows on 2 TCs
            vmem_limit_bytes=32 * 1024 * 1024),
    )(x_rows, *weights)
    return list(feats)


# ----------------------------------------------------------------------------
# Parameters (raw for the f32 reference, packed for the kernels)
# ----------------------------------------------------------------------------
def _init_conv(key, c_out, c_in_g, k):
    kw, kb = jax.random.split(key)
    w = 0.2 * jax.random.normal(kw, (c_out, c_in_g, k), jnp.float32)
    b = 0.1 * jax.random.normal(kb, (c_out,), jnp.float32)
    return w, b


def build_params(key, cfg):
    raw = {"mpd": [], "msd": []}
    channels = [1] + [cfg["mpd_sublayer_base_channels"] * 2 ** i
                      for i in range(cfg["mpd_num_sublayers"] + 1)]
    ks = cfg["mpd_sublayer_kernel_size"]
    lk = cfg["mpd_sublayer_last_kernel_size"]
    for period in cfg["mpd_periods"]:
        layers = []
        for i in range(len(channels) - 1):
            is_last = (i + 2 == len(channels))
            key, sub = jax.random.split(key)
            w, b = _init_conv(sub, channels[i + 1], channels[i], ks)
            layers.append(dict(w=w, b=b,
                               stride=1 if is_last else cfg["mpd_sublayer_stride"],
                               pad=(ks - 1) // 2, groups=1, act=True))
        key, sub = jax.random.split(key)
        w, b = _init_conv(sub, 1, channels[-1], lk)
        layers.append(dict(w=w, b=b, stride=1, pad=(lk - 1) // 2, groups=1,
                           act=False))
        raw["mpd"].append(dict(period=period, layers=layers))

    n_convs = len(cfg["msd_sublayer_channels"])
    for _ in range(cfg["msd_num_layers"]):
        layers = []
        last_c = 1
        for idx, (c, k, s, g) in enumerate(zip(cfg["msd_sublayer_channels"],
                                               cfg["msd_sublayer_kernels"],
                                               cfg["msd_sublayer_strides"],
                                               cfg["msd_sublayer_groups"])):
            key, sub = jax.random.split(key)
            w, b = _init_conv(sub, c, last_c // g, k)
            layers.append(dict(w=w, b=b, stride=s, pad=(k - 1) // 2, groups=g,
                               act=(idx + 1 < n_convs)))
            last_c = c
        raw["msd"].append(layers)
    return raw


def _pack_weight(w, b, groups):
    """(C_out, C_in/g, K) + groups -> (C_out, K*C_in + 1) with bias column."""
    c_out, c_in_g, K = w.shape
    c_in = c_in_g * groups
    if groups > 1:
        cout_g = c_out // groups
        wf = jnp.zeros((c_out, c_in, K), jnp.float32)
        for g in range(groups):     # block-diagonal dense expansion
            wf = wf.at[g * cout_g:(g + 1) * cout_g,
                       g * c_in_g:(g + 1) * c_in_g, :].set(
                w[g * cout_g:(g + 1) * cout_g])
        w = wf
    # slab row order is t*C_in + ci  =>  (C_out, K, C_in) -> (C_out, K*C_in)
    wr = jnp.transpose(w, (0, 2, 1)).reshape(c_out, K * c_in)
    return jnp.concatenate([wr.astype(jnp.float32),
                            b[:, None].astype(jnp.float32)], axis=1)


def pack_params(raw):
    packed = {"mpd": [], "msd": []}
    for disc in raw["mpd"]:
        packed["mpd"].append([_pack_weight(l["w"], l["b"], l["groups"])
                              for l in disc["layers"]])
    for layers in raw["msd"]:
        packed["msd"].append([_pack_weight(l["w"], l["b"], l["groups"])
                              for l in layers])
    return packed


# ----------------------------------------------------------------------------
# Full forward (4 fused pallas_calls)
# ----------------------------------------------------------------------------
def hifi_forward(x, packed, cfg):
    B, T = x.shape
    slope = cfg["relu_slope"]
    preds, feats_all = [], []

    # --- MultiPeriodDiscriminator ---
    for pi, period in enumerate(cfg["mpd_periods"]):
        Tp = T + ((period - T % period) % period)
        xp = jnp.pad(x, ((0, 0), (0, Tp - T))) if Tp != T else x
        H = Tp // period
        # row r = b*period + j holds column-j sequence (length H)
        x_rows = jnp.transpose(xp.reshape(B, H, period), (0, 2, 1)).reshape(
            B * period, 1, H)
        plan = _build_mpd_plan(cfg, H)
        feats = _run_stack(x_rows, packed["mpd"][pi], plan, slope)
        # back to torch NCHW layout (B, C, H_i, period)
        feats = [jnp.transpose(f.reshape(B, period, f.shape[1], f.shape[2]),
                               (0, 2, 3, 1)) for f in feats]
        preds.append(feats[-1].reshape(B, -1))
        feats_all.extend(feats)

    # --- MultiScaleDiscriminator (AvgPool prologue fused into each kernel) ---
    x3 = x.reshape(B, 1, T)
    pool_w = jnp.array([[0.25, 0.25, 0.25, 0.25, 0.0]], jnp.float32)
    for si in range(cfg["msd_num_layers"]):
        plan = _build_msd_plan(cfg, T, si)
        weights = [pool_w] * si + list(packed["msd"][si])
        feats = _run_stack(x3, weights, plan, slope)
        preds.append(feats[-1].reshape(B, -1))
        feats_all.extend(feats)

    return preds, feats_all


# ----------------------------------------------------------------------------
# Pure-JAX f32 reference (for correctness check; mirrors the PyTorch module)
# ----------------------------------------------------------------------------
def _leaky(x, slope):
    return jnp.where(x >= 0, x, slope * x)


def _ref_conv1d(x, w, b, stride, pad, groups):
    y = lax.conv_general_dilated(
        x.astype(jnp.float32), w.astype(jnp.float32),
        window_strides=(stride,), padding=[(pad, pad)],
        dimension_numbers=("NCH", "OIH", "NCH"),
        feature_group_count=groups, precision=lax.Precision.HIGHEST)
    return y + b[None, :, None]


def reference_forward(x, raw, cfg):
    B, T = x.shape
    slope = cfg["relu_slope"]
    preds, feats = [], []
    for disc in raw["mpd"]:
        period = disc["period"]
        xx, t = x, T
        if t % period:
            xx = jnp.pad(xx, ((0, 0), (0, period - t % period)))
            t = xx.shape[1]
        x4 = xx.reshape(B, 1, t // period, period)
        for lyr in disc["layers"]:
            B_, C, H, P = x4.shape
            xt = jnp.transpose(x4, (0, 3, 1, 2)).reshape(B_ * P, C, H)
            y = _ref_conv1d(xt, lyr["w"], lyr["b"], lyr["stride"], lyr["pad"],
                            lyr["groups"])
            if lyr["act"]:
                y = _leaky(y, slope)
            x4 = jnp.transpose(y.reshape(B_, P, y.shape[1], y.shape[2]),
                               (0, 2, 3, 1))
            feats.append(x4)
        preds.append(x4.reshape(B, -1))
    x3 = x[:, None, :]
    pw = jnp.full((1, 1, 4), 0.25, jnp.float32)
    pb = jnp.zeros((1,), jnp.float32)
    for si, layers in enumerate(raw["msd"]):
        y = x3
        for _ in range(si):
            y = _ref_conv1d(y, pw, pb, 2, 2, 1)   # AvgPool1d(4,2,2)
        for lyr in layers:
            y = _ref_conv1d(y, lyr["w"], lyr["b"], lyr["stride"], lyr["pad"],
                            lyr["groups"])
            if lyr["act"]:
                y = _leaky(y, slope)
            feats.append(y)
        preds.append(y.reshape(B, -1))
    return preds, feats


# ----------------------------------------------------------------------------
if __name__ == "__main__":
    key = jax.random.PRNGKey(0)
    key_x, key_p = jax.random.split(key)
    batch, length = 2, 94           # 94 % 3 != 0 -> exercises the period padding
    x = jax.random.normal(key_x, (batch, length), jnp.float32)

    raw_params = build_params(key_p, CONFIG)
    packed_params = pack_params(raw_params)

    fwd = jax.jit(functools.partial(hifi_forward, cfg=CONFIG))
    preds, feats = fwd(x, packed_params)
    jax.block_until_ready((preds, feats))

    # structural checks
    n_mpd_layers = CONFIG["mpd_num_sublayers"] + 2
    assert len(preds) == len(CONFIG["mpd_periods"]) + CONFIG["msd_num_layers"]
    assert len(feats) == (len(CONFIG["mpd_periods"]) * n_mpd_layers
                          + CONFIG["msd_num_layers"]
                          * len(CONFIG["msd_sublayer_channels"]))

    # numerical check vs pure-JAX f32 reference (kernel uses bf16 MXU operands)
    ref_preds, ref_feats = reference_forward(x, raw_params, CONFIG)
    max_err = 0.0
    for a, b in zip(list(preds) + list(feats), list(ref_preds) + list(ref_feats)):
        assert a.shape == b.shape, (a.shape, b.shape)
        max_err = max(max_err, float(jnp.max(jnp.abs(a - b))))
        assert bool(jnp.allclose(a, b, rtol=0.1, atol=0.1)), \
            f"mismatch vs reference (max abs err {max_err})"

    print("KERNEL_OK")
</pallas_src>

<mosaic_0001>
module attributes {stable_mosaic.version = 11 : i64} {
  func.func @kernel(%arg0: i32, %arg1: memref<1x1x94xf32, #tpu.memory_space<vmem>>, %arg2: memref<4x16xf32, #tpu.memory_space<vmem>>, %arg3: memref<8x21xf32, #tpu.memory_space<vmem>>, %arg4: memref<1x25xf32, #tpu.memory_space<vmem>>, %arg5: memref<1x4x94xf32, #tpu.memory_space<vmem>>, %arg6: memref<1x8x47xf32, #tpu.memory_space<vmem>>, %arg7: memref<1x1x47xf32, #tpu.memory_space<vmem>>, %arg8: memref<24x94xf32, #tpu.memory_space<vmem>>) attributes {dimension_semantics = [#tpu.dimension_semantics<parallel>], iteration_bounds = array<i64: 2>, scalar_prefetch = 0 : i64, scratch_operands = 1 : i64, tpu.core_type = #tpu.core_type<tc>, window_params = [{transform_indices = @transform_0, window_bounds = array<i64: 1, 1, 94>}, {pipeline_mode = #tpu.pipeline_mode<synchronous>, transform_indices = @transform_1, window_bounds = array<i64: 4, 16>}, {pipeline_mode = #tpu.pipeline_mode<synchronous>, transform_indices = @transform_2, window_bounds = array<i64: 8, 21>}, {pipeline_mode = #tpu.pipeline_mode<synchronous>, transform_indices = @transform_3, window_bounds = array<i64: 1, 25>}, {transform_indices = @transform_4, window_bounds = array<i64: 1, 4, 94>}, {transform_indices = @transform_5, window_bounds = array<i64: 1, 8, 47>}, {transform_indices = @transform_6, window_bounds = array<i64: 1, 1, 47>}]} {
    %c0 = arith.constant 0 : index
    %c0_0 = arith.constant 0 : index
    %c0_1 = arith.constant 0 : index
    %0 = vector.load %arg1[%c0, %c0_0, %c0_1] : memref<1x1x94xf32, #tpu.memory_space<vmem>>, vector<1x1x94xf32>
    %1 = vector.shape_cast %0 : vector<1x1x94xf32> to vector<1x94xf32>
    %c0_2 = arith.constant 0 : index
    %c0_3 = arith.constant 0 : index
    %2 = vector.load %arg2[%c0_2, %c0_3] : memref<4x16xf32, #tpu.memory_space<vmem>>, vector<4x16xf32>
    %cst = arith.constant 0.000000e+00 : f32
    %3 = vector.broadcast %cst : f32 to vector<15x94xf32>
    %c0_4 = arith.constant 0 : index
    %c0_5 = arith.constant 0 : index
    %4 = vector.load %arg8[%c0_4, %c0_5] : memref<24x94xf32, #tpu.memory_space<vmem>>, vector<15x94xf32>
    tpu.vector_store %arg8[%c0_4, %c0_5], %3 {strides = array<i32>} : memref<24x94xf32, #tpu.memory_space<vmem>>, vector<15x94xf32>,
    %5 = vector.extract_strided_slice %1 {offsets = [0, 0], sizes = [1, 87], strides = [1, 1]} : vector<1x94xf32> to vector<1x87xf32>
    %c0_6 = arith.constant 0 : index
    %c7 = arith.constant 7 : index
    %6 = vector.load %arg8[%c0_6, %c7] : memref<24x94xf32, #tpu.memory_space<vmem>>, vector<1x87xf32>
    tpu.vector_store %arg8[%c0_6, %c7], %5 {strides = array<i32>} : memref<24x94xf32, #tpu.memory_space<vmem>>, vector<1x87xf32>,
    %7 = vector.extract_strided_slice %1 {offsets = [0, 0], sizes = [1, 88], strides = [1, 1]} : vector<1x94xf32> to vector<1x88xf32>
    %c1 = arith.constant 1 : index
    %c6 = arith.constant 6 : index
    %8 = vector.load %arg8[%c1, %c6] : memref<24x94xf32, #tpu.memory_space<vmem>>, vector<1x88xf32>
    tpu.vector_store %arg8[%c1, %c6], %7 {strides = array<i32>} : memref<24x94xf32, #tpu.memory_space<vmem>>, vector<1x88xf32>,
    %9 = vector.extract_strided_slice %1 {offsets = [0, 0], sizes = [1, 89], strides = [1, 1]} : vector<1x94xf32> to vector<1x89xf32>
    %c2 = arith.constant 2 : index
    %c5 = arith.constant 5 : index
    %10 = vector.load %arg8[%c2, %c5] : memref<24x94xf32, #tpu.memory_space<vmem>>, vector<1x89xf32>
    tpu.vector_store %arg8[%c2, %c5], %9 {strides = array<i32>} : memref<24x94xf32, #tpu.memory_space<vmem>>, vector<1x89xf32>,
    %11 = vector.extract_strided_slice %1 {offsets = [0, 0], sizes = [1, 90], strides = [1, 1]} : vector<1x94xf32> to vector<1x90xf32>
    %c3 = arith.constant 3 : index
    %c4 = arith.constant 4 : index
    %12 = vector.load %arg8[%c3, %c4] : memref<24x94xf32, #tpu.memory_space<vmem>>, vector<1x90xf32>
    tpu.vector_store %arg8[%c3, %c4], %11 {strides = array<i32>} : memref<24x94xf32, #tpu.memory_space<vmem>>, vector<1x90xf32>,
    %13 = vector.extract_strided_slice %1 {offsets = [0, 0], sizes = [1, 91], strides = [1, 1]} : vector<1x94xf32> to vector<1x91xf32>
    %c4_7 = arith.constant 4 : index
    %c3_8 = arith.constant 3 : index
    %14 = vector.load %arg8[%c4_7, %c3_8] : memref<24x94xf32, #tpu.memory_space<vmem>>, vector<1x91xf32>
    tpu.vector_store %arg8[%c4_7, %c3_8], %13 {strides = array<i32>} : memref<24x94xf32, #tpu.memory_space<vmem>>, vector<1x91xf32>,
    %15 = vector.extract_strided_slice %1 {offsets = [0, 0], sizes = [1, 92], strides = [1, 1]} : vector<1x94xf32> to vector<1x92xf32>
    %c5_9 = arith.constant 5 : index
    %c2_10 = arith.constant 2 : index
    %16 = vector.load %arg8[%c5_9, %c2_10] : memref<24x94xf32, #tpu.memory_space<vmem>>, vector<1x92xf32>
    tpu.vector_store %arg8[%c5_9, %c2_10], %15 {strides = array<i32>} : memref<24x94xf32, #tpu.memory_space<vmem>>, vector<1x92xf32>,
    %17 = vector.extract_strided_slice %1 {offsets = [0, 0], sizes = [1, 93], strides = [1, 1]} : vector<1x94xf32> to vector<1x93xf32>
    %c6_11 = arith.constant 6 : index
    %c1_12 = arith.constant 1 : index
    %18 = vector.load %arg8[%c6_11, %c1_12] : memref<24x94xf32, #tpu.memory_space<vmem>>, vector<1x93xf32>
    tpu.vector_store %arg8[%c6_11, %c1_12], %17 {strides = array<i32>} : memref<24x94xf32, #tpu.memory_space<vmem>>, vector<1x93xf32>,
    %c7_13 = arith.constant 7 : index
    %c0_14 = arith.constant 0 : index
    %19 = vector.load %arg8[%c7_13, %c0_14] : memref<24x94xf32, #tpu.memory_space<vmem>>, vector<1x94xf32>
    tpu.vector_store %arg8[%c7_13, %c0_14], %1 {strides = array<i32>} : memref<24x94xf32, #tpu.memory_space<vmem>>, vector<1x94xf32>,
    %20 = vector.extract_strided_slice %1 {offsets = [0, 1], sizes = [1, 93], strides = [1, 1]} : vector<1x94xf32> to vector<1x93xf32>
    %c8 = arith.constant 8 : index
    %c0_15 = arith.constant 0 : index
    %21 = vector.load %arg8[%c8, %c0_15] : memref<24x94xf32, #tpu.memory_space<vmem>>, vector<1x93xf32>
    tpu.vector_store %arg8[%c8, %c0_15], %20 {strides = array<i32>} : memref<24x94xf32, #tpu.memory_space<vmem>>, vector<1x93xf32>,
    %22 = vector.extract_strided_slice %1 {offsets = [0, 2], sizes = [1, 92], strides = [1, 1]} : vector<1x94xf32> to vector<1x92xf32>
    %c9 = arith.constant 9 : index
    %c0_16 = arith.constant 0 : index
    %23 = vector.load %arg8[%c9, %c0_16] : memref<24x94xf32, #tpu.memory_space<vmem>>, vector<1x92xf32>
    tpu.vector_store %arg8[%c9, %c0_16], %22 {strides = array<i32>} : memref<24x94xf32, #tpu.memory_space<vmem>>, vector<1x92xf32>,
    %24 = vector.extract_strided_slice %1 {offsets = [0, 3], sizes = [1, 91], strides = [1, 1]} : vector<1x94xf32> to vector<1x91xf32>
    %c10 = arith.constant 10 : index
    %c0_17 = arith.constant 0 : index
    %25 = vector.load %arg8[%c10, %c0_17] : memref<24x94xf32, #tpu.memory_space<vmem>>, vector<1x91xf32>
    tpu.vector_store %arg8[%c10, %c0_17], %24 {strides = array<i32>} : memref<24x94xf32, #tpu.memory_space<vmem>>, vector<1x91xf32>,
    %26 = vector.extract_strided_slice %1 {offsets = [0, 4], sizes = [1, 90], strides = [1, 1]} : vector<1x94xf32> to vector<1x90xf32>
    %c11 = arith.constant 11 : index
    %c0_18 = arith.constant 0 : index
    %27 = vector.load %arg8[%c11, %c0_18] : memref<24x94xf32, #tpu.memory_space<vmem>>, vector<1x90xf32>
    tpu.vector_store %arg8[%c11, %c0_18], %26 {strides = array<i32>} : memref<24x94xf32, #tpu.memory_space<vmem>>, vector<1x90xf32>,
    %28 = vector.extract_strided_slice %1 {offsets = [0, 5], sizes = [1, 89], strides = [1, 1]} : vector<1x94xf32> to vector<1x89xf32>
    %c12 = arith.constant 12 : index
    %c0_19 = arith.constant 0 : index
    %29 = vector.load %arg8[%c12, %c0_19] : memref<24x94xf32, #tpu.memory_space<vmem>>, vector<1x89xf32>
    tpu.vector_store %arg8[%c12, %c0_19], %28 {strides = array<i32>} : memref<24x94xf32, #tpu.memory_space<vmem>>, vector<1x89xf32>,
    %30 = vector.extract_strided_slice %1 {offsets = [0, 6], sizes = [1, 88], strides = [1, 1]} : vector<1x94xf32> to vector<1x88xf32>
    %c13 = arith.constant 13 : index
    %c0_20 = arith.constant 0 : index
    %31 = vector.load %arg8[%c13, %c0_20] : memref<24x94xf32, #tpu.memory_space<vmem>>, vector<1x88xf32>
    tpu.vector_store %arg8[%c13, %c0_20], %30 {strides = array<i32>} : memref<24x94xf32, #tpu.memory_space<vmem>>, vector<1x88xf32>,
    %32 = vector.extract_strided_slice %1 {offsets = [0, 7], sizes = [1, 87], strides = [1, 1]} : vector<1x94xf32> to vector<1x87xf32>
    %c14 = arith.constant 14 : index
    %c0_21 = arith.constant 0 : index
    %33 = vector.load %arg8[%c14, %c0_21] : memref<24x94xf32, #tpu.memory_space<vmem>>, vector<1x87xf32>
    tpu.vector_store %arg8[%c14, %c0_21], %32 {strides = array<i32>} : memref<24x94xf32, #tpu.memory_space<vmem>>, vector<1x87xf32>,
    %34 = vector.extract_strided_slice %2 {offsets = [0, 0], sizes = [4, 15], strides = [1, 1]} : vector<4x16xf32> to vector<4x15xf32>
    %35 = arith.truncf %34 : vector<4x15xf32> to vector<4x15xbf16>
    %36 = vector.extract_strided_slice %2 {offsets = [0, 15], sizes = [4, 1], strides = [1, 1]} : vector<4x16xf32> to vector<4x1xf32>
    %c0_22 = arith.constant 0 : index
    %c0_23 = arith.constant 0 : index
    %37 = vector.load %arg8[%c0_22, %c0_23] : memref<24x94xf32, #tpu.memory_space<vmem>>, vector<15x94xf32>
    %38 = arith.truncf %37 : vector<15x94xf32> to vector<15x94xbf16>
    %cst_24 = arith.constant dense<0.000000e+00> : vector<4x94xf32>
    %39 = tpu.matmul %35, %38, %cst_24 {dimension_numbers = #tpu.dot_dimension_numbers<[1], [0], [0], [1], [0, 0, 1, 1], [], []>} : vector<4x15xbf16>, vector<15x94xbf16>, vector<4x94xf32> -> vector<4x94xf32>
    %40 = vector.broadcast %36 : vector<4x1xf32> to vector<4x94xf32>
    %41 = arith.addf %39, %40 : vector<4x94xf32>
    %cst_25 = arith.constant 0.000000e+00 : f32
    %42 = vector.broadcast %cst_25 : f32 to vector<4x94xf32>
    %43 = arith.cmpf oge, %41, %42 : vector<4x94xf32>
    %cst_26 = arith.constant 1.000000e-01 : f32
    %44 = vector.broadcast %cst_26 : f32 to vector<4x94xf32>
    %45 = arith.mulf %41, %44 : vector<4x94xf32>
    %46 = arith.select %43, %41, %45 : vector<4x94xi1>, vector<4x94xf32>
    %c0_27 = arith.constant 0 : index
    %c0_28 = arith.constant 0 : index
    %c0_29 = arith.constant 0 : index
    %47 = vector.load %arg5[%c0_27, %c0_28, %c0_29] : memref<1x4x94xf32, #tpu.memory_space<vmem>>, vector<1x4x94xf32>
    %48 = vector.shape_cast %47 : vector<1x4x94xf32> to vector<4x94xf32>
    %49 = vector.shape_cast %46 : vector<4x94xf32> to vector<1x4x94xf32>
    tpu.vector_store %arg5[%c0_27, %c0_28, %c0_29], %49 {strides = array<i32>} : memref<1x4x94xf32, #tpu.memory_space<vmem>>, vector<1x4x94xf32>,
    %c0_30 = arith.constant 0 : index
    %c0_31 = arith.constant 0 : index
    %50 = vector.load %arg3[%c0_30, %c0_31] : memref<8x21xf32, #tpu.memory_space<vmem>>, vector<8x21xf32>
    %cst_32 = arith.constant 0.000000e+00 : f32
    %51 = vector.broadcast %cst_32 : f32 to vector<20x94xf32>
    %c0_33 = arith.constant 0 : index
    %c0_34 = arith.constant 0 : index
    %52 = vector.load %arg8[%c0_33, %c0_34] : memref<24x94xf32, #tpu.memory_space<vmem>>, vector<20x94xf32>
    tpu.vector_store %arg8[%c0_33, %c0_34], %51 {strides = array<i32>} : memref<24x94xf32, #tpu.memory_space<vmem>>, vector<20x94xf32>,
    %53 = vector.extract_strided_slice %46 {offsets = [0, 0], sizes = [4, 92], strides = [1, 1]} : vector<4x94xf32> to vector<4x92xf32>
    %c0_35 = arith.constant 0 : index
    %c2_36 = arith.constant 2 : index
    %54 = vector.load %arg8[%c0_35, %c2_36] : memref<24x94xf32, #tpu.memory_space<vmem>>, vector<4x92xf32>
    tpu.vector_store %arg8[%c0_35, %c2_36], %53 {strides = array<i32>} : memref<24x94xf32, #tpu.memory_space<vmem>>, vector<4x92xf32>,
    %55 = vector.extract_strided_slice %46 {offsets = [0, 0], sizes = [4, 93], strides = [1, 1]} : vector<4x94xf32> to vector<4x93xf32>
    %c4_37 = arith.constant 4 : index
    %c1_38 = arith.constant 1 : index
    %56 = vector.load %arg8[%c4_37, %c1_38] : memref<24x94xf32, #tpu.memory_space<vmem>>, vector<4x93xf32>
    tpu.vector_store %arg8[%c4_37, %c1_38], %55 {strides = array<i32>} : memref<24x94xf32, #tpu.memory_space<vmem>>, vector<4x93xf32>,
    %c8_39 = arith.constant 8 : index
    %c0_40 = arith.constant 0 : index
    %57 = vector.load %arg8[%c8_39, %c0_40] : memref<24x94xf32, #tpu.memory_space<vmem>>, vector<4x94xf32>
    tpu.vector_store %arg8[%c8_39, %c0_40], %46 {strides = array<i32>} : memref<24x94xf32, #tpu.memory_space<vmem>>, vector<4x94xf32>,
    %58 = vector.extract_strided_slice %46 {offsets = [0, 1], sizes = [4, 93], strides = [1, 1]} : vector<4x94xf32> to vector<4x93xf32>
    %c12_41 = arith.constant 12 : index
    %c0_42 = arith.constant 0 : index
    %59 = vector.load %arg8[%c12_41, %c0_42] : memref<24x94xf32, #tpu.memory_space<vmem>>, vector<4x93xf32>
    tpu.vector_store %arg8[%c12_41, %c0_42], %58 {strides = array<i32>} : memref<24x94xf32, #tpu.memory_space<vmem>>, vector<4x93xf32>,
    %60 = vector.extract_strided_slice %46 {offsets = [0, 2], sizes = [4, 92], strides = [1, 1]} : vector<4x94xf32> to vector<4x92xf32>
    %c16 = arith.constant 16 : index
    %c0_43 = arith.constant 0 : index
    %61 = vector.load %arg8[%c16, %c0_43] : memref<24x94xf32, #tpu.memory_space<vmem>>, vector<4x92xf32>
    tpu.vector_store %arg8[%c16, %c0_43], %60 {strides = array<i32>} : memref<24x94xf32, #tpu.memory_space<vmem>>, vector<4x92xf32>,
    %62 = vector.extract_strided_slice %50 {offsets = [0, 0], sizes = [8, 20], strides = [1, 1]} : vector<8x21xf32> to vector<8x20xf32>
    %63 = arith.truncf %62 : vector<8x20xf32> to vector<8x20xbf16>
    %64 = vector.extract_strided_slice %50 {offsets = [0, 20], sizes = [8, 1], strides = [1, 1]} : vector<8x21xf32> to vector<8x1xf32>
    %c0_44 = arith.constant 0 : index
    %c0_45 = arith.constant 0 : index
    %65 = vector.load %arg8[%c0_44, %c0_45] : memref<24x94xf32, #tpu.memory_space<vmem>>, vector<20x94xf32>
    %66 = arith.truncf %65 : vector<20x94xf32> to vector<20x94xbf16>
    %cst_46 = arith.constant dense<0.000000e+00> : vector<8x94xf32>
    %67 = tpu.matmul %63, %66, %cst_46 {dimension_numbers = #tpu.dot_dimension_numbers<[1], [0], [0], [1], [0, 0, 1, 1], [], []>} : vector<8x20xbf16>, vector<20x94xbf16>, vector<8x94xf32> -> vector<8x94xf32>
    %68 = tpu.iota {dimensions = array<i32: 0>} : vector<94x47xi32>
    %69 = tpu.iota {dimensions = array<i32: 1>} : vector<94x47xi32>
    %c2_i32 = arith.constant 2 : i32
    %70 = vector.broadcast %c2_i32 : i32 to vector<94x47xi32>
    %71 = arith.muli %70, %69 : vector<94x47xi32>
    %72 = arith.cmpi eq, %68, %71 : vector<94x47xi32>
    %73 = arith.extui %72 : vector<94x47xi1> to vector<94x47xi32>
    %74 = arith.sitofp %73 : vector<94x47xi32> to vector<94x47xf32>
    %cst_47 = arith.constant dense<0.000000e+00> : vector<8x47xf32>
    %75 = tpu.matmul %67, %74, %cst_47 {dimension_numbers = #tpu.dot_dimension_numbers<[1], [0], [0], [1], [0, 0, 1, 1], [], []>} : vector<8x94xf32>, vector<94x47xf32>, vector<8x47xf32> -> vector<8x47xf32>
    %76 = vector.broadcast %64 : vector<8x1xf32> to vector<8x47xf32>
    %77 = arith.addf %75, %76 : vector<8x47xf32>
    %cst_48 = arith.constant 0.000000e+00 : f32
    %78 = vector.broadcast %cst_48 : f32 to vector<8x47xf32>
    %79 = arith.cmpf oge, %77, %78 : vector<8x47xf32>
    %cst_49 = arith.constant 1.000000e-01 : f32
    %80 = vector.broadcast %cst_49 : f32 to vector<8x47xf32>
    %81 = arith.mulf %77, %80 : vector<8x47xf32>
    %82 = arith.select %79, %77, %81 : vector<8x47xi1>, vector<8x47xf32>
    %c0_50 = arith.constant 0 : index
    %c0_51 = arith.constant 0 : index
    %c0_52 = arith.constant 0 : index
    %83 = vector.load %arg6[%c0_50, %c0_51, %c0_52] : memref<1x8x47xf32, #tpu.memory_space<vmem>>, vector<1x8x47xf32>
    %84 = vector.shape_cast %83 : vector<1x8x47xf32> to vector<8x47xf32>
    %85 = vector.shape_cast %82 : vector<8x47xf32> to vector<1x8x47xf32>
    tpu.vector_store %arg6[%c0_50, %c0_51, %c0_52], %85 {strides = array<i32>} : memref<1x8x47xf32, #tpu.memory_space<vmem>>, vector<1x8x47xf32>,
    %c0_53 = arith.constant 0 : index
    %c0_54 = arith.constant 0 : index
    %86 = vector.load %arg4[%c0_53, %c0_54] : memref<1x25xf32, #tpu.memory_space<vmem>>, vector<1x25xf32>
    %cst_55 = arith.constant 0.000000e+00 : f32
    %87 = vector.broadcast %cst_55 : f32 to vector<24x47xf32>
    %c0_56 = arith.constant 0 : index
    %c0_57 = arith.constant 0 : index
    %88 = vector.load %arg8[%c0_56, %c0_57] : memref<24x94xf32, #tpu.memory_space<vmem>>, vector<24x47xf32>
    tpu.vector_store %arg8[%c0_56, %c0_57], %87 {strides = array<i32>} : memref<24x94xf32, #tpu.memory_space<vmem>>, vector<24x47xf32>,
    %89 = vector.extract_strided_slice %82 {offsets = [0, 0], sizes = [8, 46], strides = [1, 1]} : vector<8x47xf32> to vector<8x46xf32>
    %c0_58 = arith.constant 0 : index
    %c1_59 = arith.constant 1 : index
    %90 = vector.load %arg8[%c0_58, %c1_59] : memref<24x94xf32, #tpu.memory_space<vmem>>, vector<8x46xf32>
    tpu.vector_store %arg8[%c0_58, %c1_59], %89 {strides = array<i32>} : memref<24x94xf32, #tpu.memory_space<vmem>>, vector<8x46xf32>,
    %c8_60 = arith.constant 8 : index
    %c0_61 = arith.constant 0 : index
    %91 = vector.load %arg8[%c8_60, %c0_61] : memref<24x94xf32, #tpu.memory_space<vmem>>, vector<8x47xf32>
    tpu.vector_store %arg8[%c8_60, %c0_61], %82 {strides = array<i32>} : memref<24x94xf32, #tpu.memory_space<vmem>>, vector<8x47xf32>,
    %92 = vector.extract_strided_slice %82 {offsets = [0, 1], sizes = [8, 46], strides = [1, 1]} : vector<8x47xf32> to vector<8x46xf32>
    %c16_62 = arith.constant 16 : index
    %c0_63 = arith.constant 0 : index
    %93 = vector.load %arg8[%c16_62, %c0_63] : memref<24x94xf32, #tpu.memory_space<vmem>>, vector<8x46xf32>
    tpu.vector_store %arg8[%c16_62, %c0_63], %92 {strides = array<i32>} : memref<24x94xf32, #tpu.memory_space<vmem>>, vector<8x46xf32>,
    %94 = vector.extract_strided_slice %86 {offsets = [0, 0], sizes = [1, 24], strides = [1, 1]} : vector<1x25xf32> to vector<1x24xf32>
    %95 = arith.truncf %94 : vector<1x24xf32> to vector<1x24xbf16>
    %96 = vector.extract_strided_slice %86 {offsets = [0, 24], sizes = [1, 1], strides = [1, 1]} : vector<1x25xf32> to vector<1x1xf32>
    %c0_64 = arith.constant 0 : index
    %c0_65 = arith.constant 0 : index
    %97 = vector.load %arg8[%c0_64, %c0_65] : memref<24x94xf32, #tpu.memory_space<vmem>>, vector<24x47xf32>
    %98 = arith.truncf %97 : vector<24x47xf32> to vector<24x47xbf16>
    %cst_66 = arith.constant dense<0.000000e+00> : vector<1x47xf32>
    %99 = tpu.matmul %95, %98, %cst_66 {dimension_numbers = #tpu.dot_dimension_numbers<[1], [0], [0], [1], [0, 0, 1, 1], [], []>} : vector<1x24xbf16>, vector<24x47xbf16>, vector<1x47xf32> -> vector<1x47xf32>
    %100 = vector.broadcast %96 : vector<1x1xf32> to vector<1x47xf32>
    %101 = arith.addf %99, %100 : vector<1x47xf32>
    %c0_67 = arith.constant 0 : index
    %c0_68 = arith.constant 0 : index
    %c0_69 = arith.constant 0 : index
    %102 = vector.load %arg7[%c0_67, %c0_68, %c0_69] : memref<1x1x47xf32, #tpu.memory_space<vmem>>, vector<1x1x47xf32>
    %103 = vector.shape_cast %102 : vector<1x1x47xf32> to vector<1x47xf32>
    %104 = vector.shape_cast %101 : vector<1x47xf32> to vector<1x1x47xf32>
    tpu.vector_store %arg7[%c0_67, %c0_68, %c0_69], %104 {strides = array<i32>} : memref<1x1x47xf32, #tpu.memory_space<vmem>>, vector<1x1x47xf32>,
    return
  }
  func.func @transform_0(%arg0: i32) -> (i32, i32, i32) {
    %c0_i32 = arith.constant 0 : i32
    %c0_i32_0 = arith.constant 0 : i32
    %c0_i32_1 = arith.constant 0 : i32
    return %arg0, %c0_i32, %c0_i32_0 : i32, i32, i32
  }
  func.func @transform_1(%arg0: i32) -> (i32, i32) {
    %c0_i32 = arith.constant 0 : i32
    %c0_i32_0 = arith.constant 0 : i32
    %c0_i32_1 = arith.constant 0 : i32
    return %c0_i32, %c0_i32_0 : i32, i32
  }
  func.func @transform_2(%arg0: i32) -> (i32, i32) {
    %c0_i32 = arith.constant 0 : i32
    %c0_i32_0 = arith.constant 0 : i32
    %c0_i32_1 = arith.constant 0 : i32
    return %c0_i32, %c0_i32_0 : i32, i32
  }
  func.func @transform_3(%arg0: i32) -> (i32, i32) {
    %c0_i32 = arith.constant 0 : i32
    %c0_i32_0 = arith.constant 0 : i32
    %c0_i32_1 = arith.constant 0 : i32
    return %c0_i32, %c0_i32_0 : i32, i32
  }
  func.func @transform_4(%arg0: i32) -> (i32, i32, i32) {
    %c0_i32 = arith.constant 0 : i32
    %c0_i32_0 = arith.constant 0 : i32
    %c0_i32_1 = arith.constant 0 : i32
    return %arg0, %c0_i32, %c0_i32_0 : i32, i32, i32
  }
  func.func @transform_5(%arg0: i32) -> (i32, i32, i32) {
    %c0_i32 = arith.constant 0 : i32
    %c0_i32_0 = arith.constant 0 : i32
    %c0_i32_1 = arith.constant 0 : i32
    return %arg0, %c0_i32, %c0_i32_0 : i32, i32, i32
  }
  func.func @transform_6(%arg0: i32) -> (i32, i32, i32) {
    %c0_i32 = arith.constant 0 : i32
    %c0_i32_0 = arith.constant 0 : i32
    %c0_i32_1 = arith.constant 0 : i32
    return %arg0, %c0_i32, %c0_i32_0 : i32, i32, i32
  }
}

module attributes {stable_mosaic.version = 11 : i64} {
  func.func @kernel(%arg0: i32, %arg1: memref<1x1x94xf32, #tpu.memory_space<vmem>>, %arg2: memref<1x5xf32, #tpu.memory_space<vmem>>, %arg3: memref<4x16xf32, #tpu.memory_space<vmem>>, %arg4: memref<8x21xf32, #tpu.memory_space<vmem>>, %arg5: memref<1x25xf32, #tpu.memory_space<vmem>>, %arg6: memref<1x4x48xf32, #tpu.memory_space<vmem>>, %arg7: memref<1x8x24xf32, #tpu.memory_space<vmem>>, %arg8: memref<1x1x24xf32, #tpu.memory_space<vmem>>, %arg9: memref<24x95xf32, #tpu.memory_space<vmem>>) attributes {dimension_semantics = [#tpu.dimension_semantics<parallel>], iteration_bounds = array<i64: 2>, scalar_prefetch = 0 : i64, scratch_operands = 1 : i64, tpu.core_type = #tpu.core_type<tc>, window_params = [{transform_indices = @transform_0, window_bounds = array<i64: 1, 1, 94>}, {pipeline_mode = #tpu.pipeline_mode<synchronous>, transform_indices = @transform_1, window_bounds = array<i64: 1, 5>}, {pipeline_mode = #tpu.pipeline_mode<synchronous>, transform_indices = @transform_2, window_bounds = array<i64: 4, 16>}, {pipeline_mode = #tpu.pipeline_mode<synchronous>, transform_indices = @transform_3, window_bounds = array<i64: 8, 21>}, {pipeline_mode = #tpu.pipeline_mode<synchronous>, transform_indices = @transform_4, window_bounds = array<i64: 1, 25>}, {transform_indices = @transform_5, window_bounds = array<i64: 1, 4, 48>}, {transform_indices = @transform_6, window_bounds = array<i64: 1, 8, 24>}, {transform_indices = @transform_7, window_bounds = array<i64: 1, 1, 24>}]} {
    %c0 = arith.constant 0 : index
    %c0_0 = arith.constant 0 : index
    %c0_1 = arith.constant 0 : index
    %0 = vector.load %arg1[%c0, %c0_0, %c0_1] : memref<1x1x94xf32, #tpu.memory_space<vmem>>, vector<1x1x94xf32>
    %1 = vector.shape_cast %0 : vector<1x1x94xf32> to vector<1x94xf32>
    %c0_2 = arith.constant 0 : index
    %c0_3 = arith.constant 0 : index
    %2 = vector.load %arg2[%c0_2, %c0_3] : memref<1x5xf32, #tpu.memory_space<vmem>>, vector<1x5xf32>
    %cst = arith.constant 0.000000e+00 : f32
    %3 = vector.broadcast %cst : f32 to vector<4x95xf32>
    %c0_4 = arith.constant 0 : index
    %c0_5 = arith.constant 0 : index
    %4 = vector.load %arg9[%c0_4, %c0_5] : memref<24x95xf32, #tpu.memory_space<vmem>>, vector<4x95xf32>
    tpu.vector_store %arg9[%c0_4, %c0_5], %3 {strides = array<i32>} : memref<24x95xf32, #tpu.memory_space<vmem>>, vector<4x95xf32>,
    %5 = vector.extract_strided_slice %1 {offsets = [0, 0], sizes = [1, 93], strides = [1, 1]} : vector<1x94xf32> to vector<1x93xf32>
    %c0_6 = arith.constant 0 : index
    %c2 = arith.constant 2 : index
    %6 = vector.load %arg9[%c0_6, %c2] : memref<24x95xf32, #tpu.memory_space<vmem>>, vector<1x93xf32>
    tpu.vector_store %arg9[%c0_6, %c2], %5 {strides = array<i32>} : memref<24x95xf32, #tpu.memory_space<vmem>>, vector<1x93xf32>,
    %c1 = arith.constant 1 : index
    %c1_7 = arith.constant 1 : index
    %7 = vector.load %arg9[%c1, %c1_7] : memref<24x95xf32, #tpu.memory_space<vmem>>, vector<1x94xf32>
    tpu.vector_store %arg9[%c1, %c1_7], %1 {strides = array<i32>} : memref<24x95xf32, #tpu.memory_space<vmem>>, vector<1x94xf32>,
    %c2_8 = arith.constant 2 : index
    %c0_9 = arith.constant 0 : index
    %8 = vector.load %arg9[%c2_8, %c0_9] : memref<24x95xf32, #tpu.memory_space<vmem>>, vector<1x94xf32>
    tpu.vector_store %arg9[%c2_8, %c0_9], %1 {strides = array<i32>} : memref<24x95xf32, #tpu.memory_space<vmem>>, vector<1x94xf32>,
    %9 = vector.extract_strided_slice %1 {offsets = [0, 1], sizes = [1, 93], strides = [1, 1]} : vector<1x94xf32> to vector<1x93xf32>
    %c3 = arith.constant 3 : index
    %c0_10 = arith.constant 0 : index
    %10 = vector.load %arg9[%c3, %c0_10] : memref<24x95xf32, #tpu.memory_space<vmem>>, vector<1x93xf32>
    tpu.vector_store %arg9[%c3, %c0_10], %9 {strides = array<i32>} : memref<24x95xf32, #tpu.memory_space<vmem>>, vector<1x93xf32>,
    %11 = vector.extract_strided_slice %2 {offsets = [0, 0], sizes = [1, 4], strides = [1, 1]} : vector<1x5xf32> to vector<1x4xf32>
    %12 = arith.truncf %11 : vector<1x4xf32> to vector<1x4xbf16>
    %13 = vector.extract_strided_slice %2 {offsets = [0, 4], sizes = [1, 1], strides = [1, 1]} : vector<1x5xf32> to vector<1x1xf32>
    %c0_11 = arith.constant 0 : index
    %c0_12 = arith.constant 0 : index
    %14 = vector.load %arg9[%c0_11, %c0_12] : memref<24x95xf32, #tpu.memory_space<vmem>>, vector<4x95xf32>
    %15 = arith.truncf %14 : vector<4x95xf32> to vector<4x95xbf16>
    %cst_13 = arith.constant dense<0.000000e+00> : vector<1x95xf32>
    %16 = tpu.matmul %12, %15, %cst_13 {dimension_numbers = #tpu.dot_dimension_numbers<[1], [0], [0], [1], [0, 0, 1, 1], [], []>} : vector<1x4xbf16>, vector<4x95xbf16>, vector<1x95xf32> -> vector<1x95xf32>
    %17 = tpu.iota {dimensions = array<i32: 0>} : vector<95x48xi32>
    %18 = tpu.iota {dimensions = array<i32: 1>} : vector<95x48xi32>
    %c2_i32 = arith.constant 2 : i32
    %19 = vector.broadcast %c2_i32 : i32 to vector<95x48xi32>
    %20 = arith.muli %19, %18 : vector<95x48xi32>
    %21 = arith.cmpi eq, %17, %20 : vector<95x48xi32>
    %22 = arith.extui %21 : vector<95x48xi1> to vector<95x48xi32>
    %23 = arith.sitofp %22 : vector<95x48xi32> to vector<95x48xf32>
    %cst_14 = arith.constant dense<0.000000e+00> : vector<1x48xf32>
    %24 = tpu.matmul %16, %23, %cst_14 {dimension_numbers = #tpu.dot_dimension_numbers<[1], [0], [0], [1], [0, 0, 1, 1], [], []>} : vector<1x95xf32>, vector<95x48xf32>, vector<1x48xf32> -> vector<1x48xf32>
    %25 = vector.broadcast %13 : vector<1x1xf32> to vector<1x48xf32>
    %26 = arith.addf %24, %25 : vector<1x48xf32>
    %c0_15 = arith.constant 0 : index
    %c0_16 = arith.constant 0 : index
    %27 = vector.load %arg3[%c0_15, %c0_16] : memref<4x16xf32, #tpu.memory_space<vmem>>, vector<4x16xf32>
    %cst_17 = arith.constant 0.000000e+00 : f32
    %28 = vector.broadcast %cst_17 : f32 to vector<15x48xf32>
    %c0_18 = arith.constant 0 : index
    %c0_19 = arith.constant 0 : index
    %29 = vector.load %arg9[%c0_18, %c0_19] : memref<24x95xf32, #tpu.memory_space<vmem>>, vector<15x48xf32>
    tpu.vector_store %arg9[%c0_18, %c0_19], %28 {strides = array<i32>} : memref<24x95xf32, #tpu.memory_space<vmem>>, vector<15x48xf32>,
    %30 = vector.extract_strided_slice %26 {offsets = [0, 0], sizes = [1, 41], strides = [1, 1]} : vector<1x48xf32> to vector<1x41xf32>
    %c0_20 = arith.constant 0 : index
    %c7 = arith.constant 7 : index
    %31 = vector.load %arg9[%c0_20, %c7] : memref<24x95xf32, #tpu.memory_space<vmem>>, vector<1x41xf32>
    tpu.vector_store %arg9[%c0_20, %c7], %30 {strides = array<i32>} : memref<24x95xf32, #tpu.memory_space<vmem>>, vector<1x41xf32>,
    %32 = vector.extract_strided_slice %26 {offsets = [0, 0], sizes = [1, 42], strides = [1, 1]} : vector<1x48xf32> to vector<1x42xf32>
    %c1_21 = arith.constant 1 : index
    %c6 = arith.constant 6 : index
    %33 = vector.load %arg9[%c1_21, %c6] : memref<24x95xf32, #tpu.memory_space<vmem>>, vector<1x42xf32>
    tpu.vector_store %arg9[%c1_21, %c6], %32 {strides = array<i32>} : memref<24x95xf32, #tpu.memory_space<vmem>>, vector<1x42xf32>,
    %34 = vector.extract_strided_slice %26 {offsets = [0, 0], sizes = [1, 43], strides = [1, 1]} : vector<1x48xf32> to vector<1x43xf32>
    %c2_22 = arith.constant 2 : index
    %c5 = arith.constant 5 : index
    %35 = vector.load %arg9[%c2_22, %c5] : memref<24x95xf32, #tpu.memory_space<vmem>>, vector<1x43xf32>
    tpu.vector_store %arg9[%c2_22, %c5], %34 {strides = array<i32>} : memref<24x95xf32, #tpu.memory_space<vmem>>, vector<1x43xf32>,
    %36 = vector.extract_strided_slice %26 {offsets = [0, 0], sizes = [1, 44], strides = [1, 1]} : vector<1x48xf32> to vector<1x44xf32>
    %c3_23 = arith.constant 3 : index
    %c4 = arith.constant 4 : index
    %37 = vector.load %arg9[%c3_23, %c4] : memref<24x95xf32, #tpu.memory_space<vmem>>, vector<1x44xf32>
    tpu.vector_store %arg9[%c3_23, %c4], %36 {strides = array<i32>} : memref<24x95xf32, #tpu.memory_space<vmem>>, vector<1x44xf32>,
    %38 = vector.extract_strided_slice %26 {offsets = [0, 0], sizes = [1, 45], strides = [1, 1]} : vector<1x48xf32> to vector<1x45xf32>
    %c4_24 = arith.constant 4 : index
    %c3_25 = arith.constant 3 : index
    %39 = vector.load %arg9[%c4_24, %c3_25] : memref<24x95xf32, #tpu.memory_space<vmem>>, vector<1x45xf32>
    tpu.vector_store %arg9[%c4_24, %c3_25], %38 {strides = array<i32>} : memref<24x95xf32, #tpu.memory_space<vmem>>, vector<1x45xf32>,
    %40 = vector.extract_strided_slice %26 {offsets = [0, 0], sizes = [1, 46], strides = [1, 1]} : vector<1x48xf32> to vector<1x46xf32>
    %c5_26 = arith.constant 5 : index
    %c2_27 = arith.constant 2 : index
    %41 = vector.load %arg9[%c5_26, %c2_27] : memref<24x95xf32, #tpu.memory_space<vmem>>, vector<1x46xf32>
    tpu.vector_store %arg9[%c5_26, %c2_27], %40 {strides = array<i32>} : memref<24x95xf32, #tpu.memory_space<vmem>>, vector<1x46xf32>,
    %42 = vector.extract_strided_slice %26 {offsets = [0, 0], sizes = [1, 47], strides = [1, 1]} : vector<1x48xf32> to vector<1x47xf32>
    %c6_28 = arith.constant 6 : index
    %c1_29 = arith.constant 1 : index
    %43 = vector.load %arg9[%c6_28, %c1_29] : memref<24x95xf32, #tpu.memory_space<vmem>>, vector<1x47xf32>
    tpu.vector_store %arg9[%c6_28, %c1_29], %42 {strides = array<i32>} : memref<24x95xf32, #tpu.memory_space<vmem>>, vector<1x47xf32>,
    %c7_30 = arith.constant 7 : index
    %c0_31 = arith.constant 0 : index
    %44 = vector.load %arg9[%c7_30, %c0_31] : memref<24x95xf32, #tpu.memory_space<vmem>>, vector<1x48xf32>
    tpu.vector_store %arg9[%c7_30, %c0_31], %26 {strides = array<i32>} : memref<24x95xf32, #tpu.memory_space<vmem>>, vector<1x48xf32>,
    %45 = vector.extract_strided_slice %26 {offsets = [0, 1], sizes = [1, 47], strides = [1, 1]} : vector<1x48xf32> to vector<1x47xf32>
    %c8 = arith.constant 8 : index
    %c0_32 = arith.constant 0 : index
    %46 = vector.load %arg9[%c8, %c0_32] : memref<24x95xf32, #tpu.memory_space<vmem>>, vector<1x47xf32>
    tpu.vector_store %arg9[%c8, %c0_32], %45 {strides = array<i32>} : memref<24x95xf32, #tpu.memory_space<vmem>>, vector<1x47xf32>,
    %47 = vector.extract_strided_slice %26 {offsets = [0, 2], sizes = [1, 46], strides = [1, 1]} : vector<1x48xf32> to vector<1x46xf32>
    %c9 = arith.constant 9 : index
    %c0_33 = arith.constant 0 : index
    %48 = vector.load %arg9[%c9, %c0_33] : memref<24x95xf32, #tpu.memory_space<vmem>>, vector<1x46xf32>
    tpu.vector_store %arg9[%c9, %c0_33], %47 {strides = array<i32>} : memref<24x95xf32, #tpu.memory_space<vmem>>, vector<1x46xf32>,
    %49 = vector.extract_strided_slice %26 {offsets = [0, 3], sizes = [1, 45], strides = [1, 1]} : vector<1x48xf32> to vector<1x45xf32>
    %c10 = arith.constant 10 : index
    %c0_34 = arith.constant 0 : index
    %50 = vector.load %arg9[%c10, %c0_34] : memref<24x95xf32, #tpu.memory_space<vmem>>, vector<1x45xf32>
    tpu.vector_store %arg9[%c10, %c0_34], %49 {strides = array<i32>} : memref<24x95xf32, #tpu.memory_space<vmem>>, vector<1x45xf32>,
    %51 = vector.extract_strided_slice %26 {offsets = [0, 4], sizes = [1, 44], strides = [1, 1]} : vector<1x48xf32> to vector<1x44xf32>
    %c11 = arith.constant 11 : index
    %c0_35 = arith.constant 0 : index
    %52 = vector.load %arg9[%c11, %c0_35] : memref<24x95xf32, #tpu.memory_space<vmem>>, vector<1x44xf32>
    tpu.vector_store %arg9[%c11, %c0_35], %51 {strides = array<i32>} : memref<24x95xf32, #tpu.memory_space<vmem>>, vector<1x44xf32>,
    %53 = vector.extract_strided_slice %26 {offsets = [0, 5], sizes = [1, 43], strides = [1, 1]} : vector<1x48xf32> to vector<1x43xf32>
    %c12 = arith.constant 12 : index
    %c0_36 = arith.constant 0 : index
    %54 = vector.load %arg9[%c12, %c0_36] : memref<24x95xf32, #tpu.memory_space<vmem>>, vector<1x43xf32>
    tpu.vector_store %arg9[%c12, %c0_36], %53 {strides = array<i32>} : memref<24x95xf32, #tpu.memory_space<vmem>>, vector<1x43xf32>,
    %55 = vector.extract_strided_slice %26 {offsets = [0, 6], sizes = [1, 42], strides = [1, 1]} : vector<1x48xf32> to vector<1x42xf32>
    %c13 = arith.constant 13 : index
    %c0_37 = arith.constant 0 : index
    %56 = vector.load %arg9[%c13, %c0_37] : memref<24x95xf32, #tpu.memory_space<vmem>>, vector<1x42xf32>
    tpu.vector_store %arg9[%c13, %c0_37], %55 {strides = array<i32>} : memref<24x95xf32, #tpu.memory_space<vmem>>, vector<1x42xf32>,
    %57 = vector.extract_strided_slice %26 {offsets = [0, 7], sizes = [1, 41], strides = [1, 1]} : vector<1x48xf32> to vector<1x41xf32>
    %c14 = arith.constant 14 : index
    %c0_38 = arith.constant 0 : index
    %58 = vector.load %arg9[%c14, %c0_38] : memref<24x95xf32, #tpu.memory_space<vmem>>, vector<1x41xf32>
    tpu.vector_store %arg9[%c14, %c0_38], %57 {strides = array<i32>} : memref<24x95xf32, #tpu.memory_space<vmem>>, vector<1x41xf32>,
    %59 = vector.extract_strided_slice %27 {offsets = [0, 0], sizes = [4, 15], strides = [1, 1]} : vector<4x16xf32> to vector<4x15xf32>
    %60 = arith.truncf %59 : vector<4x15xf32> to vector<4x15xbf16>
    %61 = vector.extract_strided_slice %27 {offsets = [0, 15], sizes = [4, 1], strides = [1, 1]} : vector<4x16xf32> to vector<4x1xf32>
    %c0_39 = arith.constant 0 : index
    %c0_40 = arith.constant 0 : index
    %62 = vector.load %arg9[%c0_39, %c0_40] : memref<24x95xf32, #tpu.memory_space<vmem>>, vector<15x48xf32>
    %63 = arith.truncf %62 : vector<15x48xf32> to vector<15x48xbf16>
    %cst_41 = arith.constant dense<0.000000e+00> : vector<4x48xf32>
    %64 = tpu.matmul %60, %63, %cst_41 {dimension_numbers = #tpu.dot_dimension_numbers<[1], [0], [0], [1], [0, 0, 1, 1], [], []>} : vector<4x15xbf16>, vector<15x48xbf16>, vector<4x48xf32> -> vector<4x48xf32>
    %65 = vector.broadcast %61 : vector<4x1xf32> to vector<4x48xf32>
    %66 = arith.addf %64, %65 : vector<4x48xf32>
    %cst_42 = arith.constant 0.000000e+00 : f32
    %67 = vector.broadcast %cst_42 : f32 to vector<4x48xf32>
    %68 = arith.cmpf oge, %66, %67 : vector<4x48xf32>
    %cst_43 = arith.constant 1.000000e-01 : f32
    %69 = vector.broadcast %cst_43 : f32 to vector<4x48xf32>
    %70 = arith.mulf %66, %69 : vector<4x48xf32>
    %71 = arith.select %68, %66, %70 : vector<4x48xi1>, vector<4x48xf32>
    %c0_44 = arith.constant 0 : index
    %c0_45 = arith.constant 0 : index
    %c0_46 = arith.constant 0 : index
    %72 = vector.load %arg6[%c0_44, %c0_45, %c0_46] : memref<1x4x48xf32, #tpu.memory_space<vmem>>, vector<1x4x48xf32>
    %73 = vector.shape_cast %72 : vector<1x4x48xf32> to vector<4x48xf32>
    %74 = vector.shape_cast %71 : vector<4x48xf32> to vector<1x4x48xf32>
    tpu.vector_store %arg6[%c0_44, %c0_45, %c0_46], %74 {strides = array<i32>} : memref<1x4x48xf32, #tpu.memory_space<vmem>>, vector<1x4x48xf32>,
    %c0_47 = arith.constant 0 : index
    %c0_48 = arith.constant 0 : index
    %75 = vector.load %arg4[%c0_47, %c0_48] : memref<8x21xf32, #tpu.memory_space<vmem>>, vector<8x21xf32>
    %cst_49 = arith.constant 0.000000e+00 : f32
    %76 = vector.broadcast %cst_49 : f32 to vector<20x48xf32>
    %c0_50 = arith.constant 0 : index
    %c0_51 = arith.constant 0 : index
    %77 = vector.load %arg9[%c0_50, %c0_51] : memref<24x95xf32, #tpu.memory_space<vmem>>, vector<20x48xf32>
    tpu.vector_store %arg9[%c0_50, %c0_51], %76 {strides = array<i32>} : memref<24x95xf32, #tpu.memory_space<vmem>>, vector<20x48xf32>,
    %78 = vector.extract_strided_slice %71 {offsets = [0, 0], sizes = [4, 46], strides = [1, 1]} : vector<4x48xf32> to vector<4x46xf32>
    %c0_52 = arith.constant 0 : index
    %c2_53 = arith.constant 2 : index
    %79 = vector.load %arg9[%c0_52, %c2_53] : memref<24x95xf32, #tpu.memory_space<vmem>>, vector<4x46xf32>
    tpu.vector_store %arg9[%c0_52, %c2_53], %78 {strides = array<i32>} : memref<24x95xf32, #tpu.memory_space<vmem>>, vector<4x46xf32>,
    %80 = vector.extract_strided_slice %71 {offsets = [0, 0], sizes = [4, 47], strides = [1, 1]} : vector<4x48xf32> to vector<4x47xf32>
    %c4_54 = arith.constant 4 : index
    %c1_55 = arith.constant 1 : index
    %81 = vector.load %arg9[%c4_54, %c1_55] : memref<24x95xf32, #tpu.memory_space<vmem>>, vector<4x47xf32>
    tpu.vector_store %arg9[%c4_54, %c1_55], %80 {strides = array<i32>} : memref<24x95xf32, #tpu.memory_space<vmem>>, vector<4x47xf32>,
    %c8_56 = arith.constant 8 : index
    %c0_57 = arith.constant 0 : index
    %82 = vector.load %arg9[%c8_56, %c0_57] : memref<24x95xf32, #tpu.memory_space<vmem>>, vector<4x48xf32>
    tpu.vector_store %arg9[%c8_56, %c0_57], %71 {strides = array<i32>} : memref<24x95xf32, #tpu.memory_space<vmem>>, vector<4x48xf32>,
    %83 = vector.extract_strided_slice %71 {offsets = [0, 1], sizes = [4, 47], strides = [1, 1]} : vector<4x48xf32> to vector<4x47xf32>
    %c12_58 = arith.constant 12 : index
    %c0_59 = arith.constant 0 : index
    %84 = vector.load %arg9[%c12_58, %c0_59] : memref<24x95xf32, #tpu.memory_space<vmem>>, vector<4x47xf32>
    tpu.vector_store %arg9[%c12_58, %c0_59], %83 {strides = array<i32>} : memref<24x95xf32, #tpu.memory_space<vmem>>, vector<4x47xf32>,
    %85 = vector.extract_strided_slice %71 {offsets = [0, 2], sizes = [4, 46], strides = [1, 1]} : vector<4x48xf32> to vector<4x46xf32>
    %c16 = arith.constant 16 : index
    %c0_60 = arith.constant 0 : index
    %86 = vector.load %arg9[%c16, %c0_60] : memref<24x95xf32, #tpu.memory_space<vmem>>, vector<4x46xf32>
    tpu.vector_store %arg9[%c16, %c0_60], %85 {strides = array<i32>} : memref<24x95xf32, #tpu.memory_space<vmem>>, vector<4x46xf32>,
    %87 = vector.extract_strided_slice %75 {offsets = [0, 0], sizes = [8, 20], strides = [1, 1]} : vector<8x21xf32> to vector<8x20xf32>
    %88 = arith.truncf %87 : vector<8x20xf32> to vector<8x20xbf16>
    %89 = vector.extract_strided_slice %75 {offsets = [0, 20], sizes = [8, 1], strides = [1, 1]} : vector<8x21xf32> to vector<8x1xf32>
    %c0_61 = arith.constant 0 : index
    %c0_62 = arith.constant 0 : index
    %90 = vector.load %arg9[%c0_61, %c0_62] : memref<24x95xf32, #tpu.memory_space<vmem>>, vector<20x48xf32>
    %91 = arith.truncf %90 : vector<20x48xf32> to vector<20x48xbf16>
    %cst_63 = arith.constant dense<0.000000e+00> : vector<8x48xf32>
    %92 = tpu.matmul %88, %91, %cst_63 {dimension_numbers = #tpu.dot_dimension_numbers<[1], [0], [0], [1], [0, 0, 1, 1], [], []>} : vector<8x20xbf16>, vector<20x48xbf16>, vector<8x48xf32> -> vector<8x48xf32>
    %93 = tpu.iota {dimensions = array<i32: 0>} : vector<48x24xi32>
    %94 = tpu.iota {dimensions = array<i32: 1>} : vector<48x24xi32>
    %c2_i32_64 = arith.constant 2 : i32
    %95 = vector.broadcast %c2_i32_64 : i32 to vector<48x24xi32>
    %96 = arith.muli %95, %94 : vector<48x24xi32>
    %97 = arith.cmpi eq, %93, %96 : vector<48x24xi32>
    %98 = arith.extui %97 : vector<48x24xi1> to vector<48x24xi32>
    %99 = arith.sitofp %98 : vector<48x24xi32> to vector<48x24xf32>
    %cst_65 = arith.constant dense<0.000000e+00> : vector<8x24xf32>
    %100 = tpu.matmul %92, %99, %cst_65 {dimension_numbers = #tpu.dot_dimension_numbers<[1], [0], [0], [1], [0, 0, 1, 1], [], []>} : vector<8x48xf32>, vector<48x24xf32>, vector<8x24xf32> -> vector<8x24xf32>
    %101 = vector.broadcast %89 : vector<8x1xf32> to vector<8x24xf32>
    %102 = arith.addf %100, %101 : vector<8x24xf32>
    %cst_66 = arith.constant 0.000000e+00 : f32
    %103 = vector.broadcast %cst_66 : f32 to vector<8x24xf32>
    %104 = arith.cmpf oge, %102, %103 : vector<8x24xf32>
    %cst_67 = arith.constant 1.000000e-01 : f32
    %105 = vector.broadcast %cst_67 : f32 to vector<8x24xf32>
    %106 = arith.mulf %102, %105 : vector<8x24xf32>
    %107 = arith.select %104, %102, %106 : vector<8x24xi1>, vector<8x24xf32>
    %c0_68 = arith.constant 0 : index
    %c0_69 = arith.constant 0 : index
    %c0_70 = arith.constant 0 : index
    %108 = vector.load %arg7[%c0_68, %c0_69, %c0_70] : memref<1x8x24xf32, #tpu.memory_space<vmem>>, vector<1x8x24xf32>
    %109 = vector.shape_cast %108 : vector<1x8x24xf32> to vector<8x24xf32>
    %110 = vector.shape_cast %107 : vector<8x24xf32> to vector<1x8x24xf32>
    tpu.vector_store %arg7[%c0_68, %c0_69, %c0_70], %110 {strides = array<i32>} : memref<1x8x24xf32, #tpu.memory_space<vmem>>, vector<1x8x24xf32>,
    %c0_71 = arith.constant 0 : index
    %c0_72 = arith.constant 0 : index
    %111 = vector.load %arg5[%c0_71, %c0_72] : memref<1x25xf32, #tpu.memory_space<vmem>>, vector<1x25xf32>
    %cst_73 = arith.constant 0.000000e+00 : f32
    %112 = vector.broadcast %cst_73 : f32 to vector<24x24xf32>
    %c0_74 = arith.constant 0 : index
    %c0_75 = arith.constant 0 : index
    %113 = vector.load %arg9[%c0_74, %c0_75] : memref<24x95xf32, #tpu.memory_space<vmem>>, vector<24x24xf32>
    tpu.vector_store %arg9[%c0_74, %c0_75], %112 {strides = array<i32>} : memref<24x95xf32, #tpu.memory_space<vmem>>, vector<24x24xf32>,
    %114 = vector.extract_strided_slice %107 {offsets = [0, 0], sizes = [8, 23], strides = [1, 1]} : vector<8x24xf32> to vector<8x23xf32>
    %c0_76 = arith.constant 0 : index
    %c1_77 = arith.constant 1 : index
    %115 = vector.load %arg9[%c0_76, %c1_77] : memref<24x95xf32, #tpu.memory_space<vmem>>, vector<8x23xf32>
    tpu.vector_store %arg9[%c0_76, %c1_77], %114 {strides = array<i32>} : memref<24x95xf32, #tpu.memory_space<vmem>>, vector<8x23xf32>,
    %c8_78 = arith.constant 8 : index
    %c0_79 = arith.constant 0 : index
    %116 = vector.load %arg9[%c8_78, %c0_79] : memref<24x95xf32, #tpu.memory_space<vmem>>, vector<8x24xf32>
    tpu.vector_store %arg9[%c8_78, %c0_79], %107 {strides = array<i32>} : memref<24x95xf32, #tpu.memory_space<vmem>>, vector<8x24xf32>,
    %117 = vector.extract_strided_slice %107 {offsets = [0, 1], sizes = [8, 23], strides = [1, 1]} : vector<8x24xf32> to vector<8x23xf32>
    %c16_80 = arith.constant 16 : index
    %c0_81 = arith.constant 0 : index
    %118 = vector.load %arg9[%c16_80, %c0_81] : memref<24x95xf32, #tpu.memory_space<vmem>>, vector<8x23xf32>
    tpu.vector_store %arg9[%c16_80, %c0_81], %117 {strides = array<i32>} : memref<24x95xf32, #tpu.memory_space<vmem>>, vector<8x23xf32>,
    %119 = vector.extract_strided_slice %111 {offsets = [0, 0], sizes = [1, 24], strides = [1, 1]} : vector<1x25xf32> to vector<1x24xf32>
    %120 = arith.truncf %119 : vector<1x24xf32> to vector<1x24xbf16>
    %121 = vector.extract_strided_slice %111 {offsets = [0, 24], sizes = [1, 1], strides = [1, 1]} : vector<1x25xf32> to vector<1x1xf32>
    %c0_82 = arith.constant 0 : index
    %c0_83 = arith.constant 0 : index
    %122 = vector.load %arg9[%c0_82, %c0_83] : memref<24x95xf32, #tpu.memory_space<vmem>>, vector<24x24xf32>
    %123 = arith.truncf %122 : vector<24x24xf32> to vector<24x24xbf16>
    %cst_84 = arith.constant dense<0.000000e+00> : vector<1x24xf32>
    %124 = tpu.matmul %120, %123, %cst_84 {dimension_numbers = #tpu.dot_dimension_numbers<[1], [0], [0], [1], [0, 0, 1, 1], [], []>} : vector<1x24xbf16>, vector<24x24xbf16>, vector<1x24xf32> -> vector<1x24xf32>
    %125 = vector.broadcast %121 : vector<1x1xf32> to vector<1x24xf32>
    %126 = arith.addf %124, %125 : vector<1x24xf32>
    %c0_85 = arith.constant 0 : index
    %c0_86 = arith.constant 0 : index
    %c0_87 = arith.constant 0 : index
    %127 = vector.load %arg8[%c0_85, %c0_86, %c0_87] : memref<1x1x24xf32, #tpu.memory_space<vmem>>, vector<1x1x24xf32>
    %128 = vector.shape_cast %127 : vector<1x1x24xf32> to vector<1x24xf32>
    %129 = vector.shape_cast %126 : vector<1x24xf32> to vector<1x1x24xf32>
    tpu.vector_store %arg8[%c0_85, %c0_86, %c0_87], %129 {strides = array<i32>} : memref<1x1x24xf32, #tpu.memory_space<vmem>>, vector<1x1x24xf32>,
    return
  }
  func.func @transform_0(%arg0: i32) -> (i32, i32, i32) {
    %c0_i32 = arith.constant 0 : i32
    %c0_i32_0 = arith.constant 0 : i32
    %c0_i32_1 = arith.constant 0 : i32
    return %arg0, %c0_i32, %c0_i32_0 : i32, i32, i32
  }
  func.func @transform_1(%arg0: i32) -> (i32, i32) {
    %c0_i32 = arith.constant 0 : i32
    %c0_i32_0 = arith.constant 0 : i32
    %c0_i32_1 = arith.constant 0 : i32
    return %c0_i32, %c0_i32_0 : i32, i32
  }
  func.func @transform_2(%arg0: i32) -> (i32, i32) {
    %c0_i32 = arith.constant 0 : i32
    %c0_i32_0 = arith.constant 0 : i32
    %c0_i32_1 = arith.constant 0 : i32
    return %c0_i32, %c0_i32_0 : i32, i32
  }
  func.func @transform_3(%arg0: i32) -> (i32, i32) {
    %c0_i32 = arith.constant 0 : i32
    %c0_i32_0 = arith.constant 0 : i32
    %c0_i32_1 = arith.constant 0 : i32
    return %c0_i32, %c0_i32_0 : i32, i32
  }
  func.func @transform_4(%arg0: i32) -> (i32, i32) {
    %c0_i32 = arith.constant 0 : i32
    %c0_i32_0 = arith.constant 0 : i32
    %c0_i32_1 = arith.constant 0 : i32
    return %c0_i32, %c0_i32_0 : i32, i32
  }
  func.func @transform_5(%arg0: i32) -> (i32, i32, i32) {
    %c0_i32 = arith.constant 0 : i32
    %c0_i32_0 = arith.constant 0 : i32
    %c0_i32_1 = arith.constant 0 : i32
    return %arg0, %c0_i32, %c0_i32_0 : i32, i32, i32
  }
  func.func @transform_6(%arg0: i32) -> (i32, i32, i32) {
    %c0_i32 = arith.constant 0 : i32
    %c0_i32_0 = arith.constant 0 : i32
    %c0_i32_1 = arith.constant 0 : i32
    return %arg0, %c0_i32, %c0_i32_0 : i32, i32, i32
  }
  func.func @transform_7(%arg0: i32) -> (i32, i32, i32) {
    %c0_i32 = arith.constant 0 : i32
    %c0_i32_0 = arith.constant 0 : i32
    %c0_i32_1 = arith.constant 0 : i32
    return %arg0, %c0_i32, %c0_i32_0 : i32, i32, i32
  }
}

module attributes {stable_mosaic.version = 11 : i64} {
  func.func @kernel(%arg0: i32, %arg1: memref<1x1x47xf32, #tpu.memory_space<vmem>>, %arg2: memref<4x6xf32, #tpu.memory_space<vmem>>, %arg3: memref<8x21xf32, #tpu.memory_space<vmem>>, %arg4: memref<16x41xf32, #tpu.memory_space<vmem>>, %arg5: memref<1x49xf32, #tpu.memory_space<vmem>>, %arg6: memref<1x4x16xf32, #tpu.memory_space<vmem>>, %arg7: memref<1x8x6xf32, #tpu.memory_space<vmem>>, %arg8: memref<1x16x6xf32, #tpu.memory_space<vmem>>, %arg9: memref<1x1x6xf32, #tpu.memory_space<vmem>>, %arg10: memref<48x47xf32, #tpu.memory_space<vmem>>) attributes {dimension_semantics = [#tpu.dimension_semantics<parallel>], iteration_bounds = array<i64: 4>, scalar_prefetch = 0 : i64, scratch_operands = 1 : i64, tpu.core_type = #tpu.core_type<tc>, window_params = [{transform_indices = @transform_0, window_bounds = array<i64: 1, 1, 47>}, {pipeline_mode = #tpu.pipeline_mode<synchronous>, transform_indices = @transform_1, window_bounds = array<i64: 4, 6>}, {pipeline_mode = #tpu.pipeline_mode<synchronous>, transform_indices = @transform_2, window_bounds = array<i64: 8, 21>}, {pipeline_mode = #tpu.pipeline_mode<synchronous>, transform_indices = @transform_3, window_bounds = array<i64: 16, 41>}, {pipeline_mode = #tpu.pipeline_mode<synchronous>, transform_indices = @transform_4, window_bounds = array<i64: 1, 49>}, {transform_indices = @transform_5, window_bounds = array<i64: 1, 4, 16>}, {transform_indices = @transform_6, window_bounds = array<i64: 1, 8, 6>}, {transform_indices = @transform_7, window_bounds = array<i64: 1, 16, 6>}, {transform_indices = @transform_8, window_bounds = array<i64: 1, 1, 6>}]} {
    %c0 = arith.constant 0 : index
    %c0_0 = arith.constant 0 : index
    %c0_1 = arith.constant 0 : index
    %0 = vector.load %arg1[%c0, %c0_0, %c0_1] : memref<1x1x47xf32, #tpu.memory_space<vmem>>, vector<1x1x47xf32>
    %1 = vector.shape_cast %0 : vector<1x1x47xf32> to vector<1x47xf32>
    %c0_2 = arith.constant 0 : index
    %c0_3 = arith.constant 0 : index
    %2 = vector.load %arg2[%c0_2, %c0_3] : memref<4x6xf32, #tpu.memory_space<vmem>>, vector<4x6xf32>
    %cst = arith.constant 0.000000e+00 : f32
    %3 = vector.broadcast %cst : f32 to vector<5x47xf32>
    %c0_4 = arith.constant 0 : index
    %c0_5 = arith.constant 0 : index
    %4 = vector.load %arg10[%c0_4, %c0_5] : memref<48x47xf32, #tpu.memory_space<vmem>>, vector<5x47xf32>
    tpu.vector_store %arg10[%c0_4, %c0_5], %3 {strides = array<i32>} : memref<48x47xf32, #tpu.memory_space<vmem>>, vector<5x47xf32>,
    %5 = vector.extract_strided_slice %1 {offsets = [0, 0], sizes = [1, 45], strides = [1, 1]} : vector<1x47xf32> to vector<1x45xf32>
    %c0_6 = arith.constant 0 : index
    %c2 = arith.constant 2 : index
    %6 = vector.load %arg10[%c0_6, %c2] : memref<48x47xf32, #tpu.memory_space<vmem>>, vector<1x45xf32>
    tpu.vector_store %arg10[%c0_6, %c2], %5 {strides = array<i32>} : memref<48x47xf32, #tpu.memory_space<vmem>>, vector<1x45xf32>,
    %7 = vector.extract_strided_slice %1 {offsets = [0, 0], sizes = [1, 46], strides = [1, 1]} : vector<1x47xf32> to vector<1x46xf32>
    %c1 = arith.constant 1 : index
    %c1_7 = arith.constant 1 : index
    %8 = vector.load %arg10[%c1, %c1_7] : memref<48x47xf32, #tpu.memory_space<vmem>>, vector<1x46xf32>
    tpu.vector_store %arg10[%c1, %c1_7], %7 {strides = array<i32>} : memref<48x47xf32, #tpu.memory_space<vmem>>, vector<1x46xf32>,
    %c2_8 = arith.constant 2 : index
    %c0_9 = arith.constant 0 : index
    %9 = vector.load %arg10[%c2_8, %c0_9] : memref<48x47xf32, #tpu.memory_space<vmem>>, vector<1x47xf32>
    tpu.vector_store %arg10[%c2_8, %c0_9], %1 {strides = array<i32>} : memref<48x47xf32, #tpu.memory_space<vmem>>, vector<1x47xf32>,
    %10 = vector.extract_strided_slice %1 {offsets = [0, 1], sizes = [1, 46], strides = [1, 1]} : vector<1x47xf32> to vector<1x46xf32>
    %c3 = arith.constant 3 : index
    %c0_10 = arith.constant 0 : index
    %11 = vector.load %arg10[%c3, %c0_10] : memref<48x47xf32, #tpu.memory_space<vmem>>, vector<1x46xf32>
    tpu.vector_store %arg10[%c3, %c0_10], %10 {strides = array<i32>} : memref<48x47xf32, #tpu.memory_space<vmem>>, vector<1x46xf32>,
    %12 = vector.extract_strided_slice %1 {offsets = [0, 2], sizes = [1, 45], strides = [1, 1]} : vector<1x47xf32> to vector<1x45xf32>
    %c4 = arith.constant 4 : index
    %c0_11 = arith.constant 0 : index
    %13 = vector.load %arg10[%c4, %c0_11] : memref<48x47xf32, #tpu.memory_space<vmem>>, vector<1x45xf32>
    tpu.vector_store %arg10[%c4, %c0_11], %12 {strides = array<i32>} : memref<48x47xf32, #tpu.memory_space<vmem>>, vector<1x45xf32>,
    %14 = vector.extract_strided_slice %2 {offsets = [0, 0], sizes = [4, 5], strides = [1, 1]} : vector<4x6xf32> to vector<4x5xf32>
    %15 = arith.truncf %14 : vector<4x5xf32> to vector<4x5xbf16>
    %16 = vector.extract_strided_slice %2 {offsets = [0, 5], sizes = [4, 1], strides = [1, 1]} : vector<4x6xf32> to vector<4x1xf32>
    %c0_12 = arith.constant 0 : index
    %c0_13 = arith.constant 0 : index
    %17 = vector.load %arg10[%c0_12, %c0_13] : memref<48x47xf32, #tpu.memory_space<vmem>>, vector<5x47xf32>
    %18 = arith.truncf %17 : vector<5x47xf32> to vector<5x47xbf16>
    %cst_14 = arith.constant dense<0.000000e+00> : vector<4x47xf32>
    %19 = tpu.matmul %15, %18, %cst_14 {dimension_numbers = #tpu.dot_dimension_numbers<[1], [0], [0], [1], [0, 0, 1, 1], [], []>} : vector<4x5xbf16>, vector<5x47xbf16>, vector<4x47xf32> -> vector<4x47xf32>
    %20 = tpu.iota {dimensions = array<i32: 0>} : vector<47x16xi32>
    %21 = tpu.iota {dimensions = array<i32: 1>} : vector<47x16xi32>
    %c3_i32 = arith.constant 3 : i32
    %22 = vector.broadcast %c3_i32 : i32 to vector<47x16xi32>
    %23 = arith.muli %22, %21 : vector<47x16xi32>
    %24 = arith.cmpi eq, %20, %23 : vector<47x16xi32>
    %25 = arith.extui %24 : vector<47x16xi1> to vector<47x16xi32>
    %26 = arith.sitofp %25 : vector<47x16xi32> to vector<47x16xf32>
    %cst_15 = arith.constant dense<0.000000e+00> : vector<4x16xf32>
    %27 = tpu.matmul %19, %26, %cst_15 {dimension_numbers = #tpu.dot_dimension_numbers<[1], [0], [0], [1], [0, 0, 1, 1], [], []>} : vector<4x47xf32>, vector<47x16xf32>, vector<4x16xf32> -> vector<4x16xf32>
    %28 = vector.broadcast %16 : vector<4x1xf32> to vector<4x16xf32>
    %29 = arith.addf %27, %28 : vector<4x16xf32>
    %cst_16 = arith.constant 0.000000e+00 : f32
    %30 = vector.broadcast %cst_16 : f32 to vector<4x16xf32>
    %31 = arith.cmpf oge, %29, %30 : vector<4x16xf32>
    %cst_17 = arith.constant 1.000000e-01 : f32
    %32 = vector.broadcast %cst_17 : f32 to vector<4x16xf32>
    %33 = arith.mulf %29, %32 : vector<4x16xf32>
    %34 = arith.select %31, %29, %33 : vector<4x16xi1>, vector<4x16xf32>
    %c0_18 = arith.constant 0 : index
    %c0_19 = arith.constant 0 : index
    %c0_20 = arith.constant 0 : index
    %35 = vector.load %arg6[%c0_18, %c0_19, %c0_20] : memref<1x4x16xf32, #tpu.memory_space<vmem>>, vector<1x4x16xf32>
    %36 = vector.shape_cast %35 : vector<1x4x16xf32> to vector<4x16xf32>
    %37 = vector.shape_cast %34 : vector<4x16xf32> to vector<1x4x16xf32>
    tpu.vector_store %arg6[%c0_18, %c0_19, %c0_20], %37 {strides = array<i32>} : memref<1x4x16xf32, #tpu.memory_space<vmem>>, vector<1x4x16xf32>,
    %c0_21 = arith.constant 0 : index
    %c0_22 = arith.constant 0 : index
    %38 = vector.load %arg3[%c0_21, %c0_22] : memref<8x21xf32, #tpu.memory_space<vmem>>, vector<8x21xf32>
    %cst_23 = arith.constant 0.000000e+00 : f32
    %39 = vector.broadcast %cst_23 : f32 to vector<20x16xf32>
    %c0_24 = arith.constant 0 : index
    %c0_25 = arith.constant 0 : index
    %40 = vector.load %arg10[%c0_24, %c0_25] : memref<48x47xf32, #tpu.memory_space<vmem>>, vector<20x16xf32>
    tpu.vector_store %arg10[%c0_24, %c0_25], %39 {strides = array<i32>} : memref<48x47xf32, #tpu.memory_space<vmem>>, vector<20x16xf32>,
    %41 = vector.extract_strided_slice %34 {offsets = [0, 0], sizes = [4, 14], strides = [1, 1]} : vector<4x16xf32> to vector<4x14xf32>
    %c0_26 = arith.constant 0 : index
    %c2_27 = arith.constant 2 : index
    %42 = vector.load %arg10[%c0_26, %c2_27] : memref<48x47xf32, #tpu.memory_space<vmem>>, vector<4x14xf32>
    tpu.vector_store %arg10[%c0_26, %c2_27], %41 {strides = array<i32>} : memref<48x47xf32, #tpu.memory_space<vmem>>, vector<4x14xf32>,
    %43 = vector.extract_strided_slice %34 {offsets = [0, 0], sizes = [4, 15], strides = [1, 1]} : vector<4x16xf32> to vector<4x15xf32>
    %c4_28 = arith.constant 4 : index
    %c1_29 = arith.constant 1 : index
    %44 = vector.load %arg10[%c4_28, %c1_29] : memref<48x47xf32, #tpu.memory_space<vmem>>, vector<4x15xf32>
    tpu.vector_store %arg10[%c4_28, %c1_29], %43 {strides = array<i32>} : memref<48x47xf32, #tpu.memory_space<vmem>>, vector<4x15xf32>,
    %c8 = arith.constant 8 : index
    %c0_30 = arith.constant 0 : index
    %45 = vector.load %arg10[%c8, %c0_30] : memref<48x47xf32, #tpu.memory_space<vmem>>, vector<4x16xf32>
    tpu.vector_store %arg10[%c8, %c0_30], %34 {strides = array<i32>} : memref<48x47xf32, #tpu.memory_space<vmem>>, vector<4x16xf32>,
    %46 = vector.extract_strided_slice %34 {offsets = [0, 1], sizes = [4, 15], strides = [1, 1]} : vector<4x16xf32> to vector<4x15xf32>
    %c12 = arith.constant 12 : index
    %c0_31 = arith.constant 0 : index
    %47 = vector.load %arg10[%c12, %c0_31] : memref<48x47xf32, #tpu.memory_space<vmem>>, vector<4x15xf32>
    tpu.vector_store %arg10[%c12, %c0_31], %46 {strides = array<i32>} : memref<48x47xf32, #tpu.memory_space<vmem>>, vector<4x15xf32>,
    %48 = vector.extract_strided_slice %34 {offsets = [0, 2], sizes = [4, 14], strides = [1, 1]} : vector<4x16xf32> to vector<4x14xf32>
    %c16 = arith.constant 16 : index
    %c0_32 = arith.constant 0 : index
    %49 = vector.load %arg10[%c16, %c0_32] : memref<48x47xf32, #tpu.memory_space<vmem>>, vector<4x14xf32>
    tpu.vector_store %arg10[%c16, %c0_32], %48 {strides = array<i32>} : memref<48x47xf32, #tpu.memory_space<vmem>>, vector<4x14xf32>,
    %50 = vector.extract_strided_slice %38 {offsets = [0, 0], sizes = [8, 20], strides = [1, 1]} : vector<8x21xf32> to vector<8x20xf32>
    %51 = arith.truncf %50 : vector<8x20xf32> to vector<8x20xbf16>
    %52 = vector.extract_strided_slice %38 {offsets = [0, 20], sizes = [8, 1], strides = [1, 1]} : vector<8x21xf32> to vector<8x1xf32>
    %c0_33 = arith.constant 0 : index
    %c0_34 = arith.constant 0 : index
    %53 = vector.load %arg10[%c0_33, %c0_34] : memref<48x47xf32, #tpu.memory_space<vmem>>, vector<20x16xf32>
    %54 = arith.truncf %53 : vector<20x16xf32> to vector<20x16xbf16>
    %cst_35 = arith.constant dense<0.000000e+00> : vector<8x16xf32>
    %55 = tpu.matmul %51, %54, %cst_35 {dimension_numbers = #tpu.dot_dimension_numbers<[1], [0], [0], [1], [0, 0, 1, 1], [], []>} : vector<8x20xbf16>, vector<20x16xbf16>, vector<8x16xf32> -> vector<8x16xf32>
    %56 = tpu.iota {dimensions = array<i32: 0>} : vector<16x6xi32>
    %57 = tpu.iota {dimensions = array<i32: 1>} : vector<16x6xi32>
    %c3_i32_36 = arith.constant 3 : i32
    %58 = vector.broadcast %c3_i32_36 : i32 to vector<16x6xi32>
    %59 = arith.muli %58, %57 : vector<16x6xi32>
    %60 = arith.cmpi eq, %56, %59 : vector<16x6xi32>
    %61 = arith.extui %60 : vector<16x6xi1> to vector<16x6xi32>
    %62 = arith.sitofp %61 : vector<16x6xi32> to vector<16x6xf32>
    %cst_37 = arith.constant dense<0.000000e+00> : vector<8x6xf32>
    %63 = tpu.matmul %55, %62, %cst_37 {dimension_numbers = #tpu.dot_dimension_numbers<[1], [0], [0], [1], [0, 0, 1, 1], [], []>} : vector<8x16xf32>, vector<16x6xf32>, vector<8x6xf32> -> vector<8x6xf32>
    %64 = vector.broadcast %52 : vector<8x1xf32> to vector<8x6xf32>
    %65 = arith.addf %63, %64 : vector<8x6xf32>
    %cst_38 = arith.constant 0.000000e+00 : f32
    %66 = vector.broadcast %cst_38 : f32 to vector<8x6xf32>
    %67 = arith.cmpf oge, %65, %66 : vector<8x6xf32>
    %cst_39 = arith.constant 1.000000e-01 : f32
    %68 = vector.broadcast %cst_39 : f32 to vector<8x6xf32>
    %69 = arith.mulf %65, %68 : vector<8x6xf32>
    %70 = arith.select %67, %65, %69 : vector<8x6xi1>, vector<8x6xf32>
    %c0_40 = arith.constant 0 : index
    %c0_41 = arith.constant 0 : index
    %c0_42 = arith.constant 0 : index
    %71 = vector.load %arg7[%c0_40, %c0_41, %c0_42] : memref<1x8x6xf32, #tpu.memory_space<vmem>>, vector<1x8x6xf32>
    %72 = vector.shape_cast %71 : vector<1x8x6xf32> to vector<8x6xf32>
    %73 = vector.shape_cast %70 : vector<8x6xf32> to vector<1x8x6xf32>
    tpu.vector_store %arg7[%c0_40, %c0_41, %c0_42], %73 {strides = array<i32>} : memref<1x8x6xf32, #tpu.memory_space<vmem>>, vector<1x8x6xf32>,
    %c0_43 = arith.constant 0 : index
    %c0_44 = arith.constant 0 : index
    %74 = vector.load %arg4[%c0_43, %c0_44] : memref<16x41xf32, #tpu.memory_space<vmem>>, vector<16x41xf32>
    %cst_45 = arith.constant 0.000000e+00 : f32
    %75 = vector.broadcast %cst_45 : f32 to vector<40x6xf32>
    %c0_46 = arith.constant 0 : index
    %c0_47 = arith.constant 0 : index
    %76 = vector.load %arg10[%c0_46, %c0_47] : memref<48x47xf32, #tpu.memory_space<vmem>>, vector<40x6xf32>
    tpu.vector_store %arg10[%c0_46, %c0_47], %75 {strides = array<i32>} : memref<48x47xf32, #tpu.memory_space<vmem>>, vector<40x6xf32>,
    %77 = vector.extract_strided_slice %70 {offsets = [0, 0], sizes = [8, 4], strides = [1, 1]} : vector<8x6xf32> to vector<8x4xf32>
    %c0_48 = arith.constant 0 : index
    %c2_49 = arith.constant 2 : index
    %78 = vector.load %arg10[%c0_48, %c2_49] : memref<48x47xf32, #tpu.memory_space<vmem>>, vector<8x4xf32>
    tpu.vector_store %arg10[%c0_48, %c2_49], %77 {strides = array<i32>} : memref<48x47xf32, #tpu.memory_space<vmem>>, vector<8x4xf32>,
    %79 = vector.extract_strided_slice %70 {offsets = [0, 0], sizes = [8, 5], strides = [1, 1]} : vector<8x6xf32> to vector<8x5xf32>
    %c8_50 = arith.constant 8 : index
    %c1_51 = arith.constant 1 : index
    %80 = vector.load %arg10[%c8_50, %c1_51] : memref<48x47xf32, #tpu.memory_space<vmem>>, vector<8x5xf32>
    tpu.vector_store %arg10[%c8_50, %c1_51], %79 {strides = array<i32>} : memref<48x47xf32, #tpu.memory_space<vmem>>, vector<8x5xf32>,
    %c16_52 = arith.constant 16 : index
    %c0_53 = arith.constant 0 : index
    %81 = vector.load %arg10[%c16_52, %c0_53] : memref<48x47xf32, #tpu.memory_space<vmem>>, vector<8x6xf32>
    tpu.vector_store %arg10[%c16_52, %c0_53], %70 {strides = array<i32>} : memref<48x47xf32, #tpu.memory_space<vmem>>, vector<8x6xf32>,
    %82 = vector.extract_strided_slice %70 {offsets = [0, 1], sizes = [8, 5], strides = [1, 1]} : vector<8x6xf32> to vector<8x5xf32>
    %c24 = arith.constant 24 : index
    %c0_54 = arith.constant 0 : index
    %83 = vector.load %arg10[%c24, %c0_54] : memref<48x47xf32, #tpu.memory_space<vmem>>, vector<8x5xf32>
    tpu.vector_store %arg10[%c24, %c0_54], %82 {strides = array<i32>} : memref<48x47xf32, #tpu.memory_space<vmem>>, vector<8x5xf32>,
    %84 = vector.extract_strided_slice %70 {offsets = [0, 2], sizes = [8, 4], strides = [1, 1]} : vector<8x6xf32> to vector<8x4xf32>
    %c32 = arith.constant 32 : index
    %c0_55 = arith.constant 0 : index
    %85 = vector.load %arg10[%c32, %c0_55] : memref<48x47xf32, #tpu.memory_space<vmem>>, vector<8x4xf32>
    tpu.vector_store %arg10[%c32, %c0_55], %84 {strides = array<i32>} : memref<48x47xf32, #tpu.memory_space<vmem>>, vector<8x4xf32>,
    %86 = vector.extract_strided_slice %74 {offsets = [0, 0], sizes = [16, 40], strides = [1, 1]} : vector<16x41xf32> to vector<16x40xf32>
    %87 = arith.truncf %86 : vector<16x40xf32> to vector<16x40xbf16>
    %88 = vector.extract_strided_slice %74 {offsets = [0, 40], sizes = [16, 1], strides = [1, 1]} : vector<16x41xf32> to vector<16x1xf32>
    %c0_56 = arith.constant 0 : index
    %c0_57 = arith.constant 0 : index
    %89 = vector.load %arg10[%c0_56, %c0_57] : memref<48x47xf32, #tpu.memory_space<vmem>>, vector<40x6xf32>
    %90 = arith.truncf %89 : vector<40x6xf32> to vector<40x6xbf16>
    %cst_58 = arith.constant dense<0.000000e+00> : vector<16x6xf32>
    %91 = tpu.matmul %87, %90, %cst_58 {dimension_numbers = #tpu.dot_dimension_numbers<[1], [0], [0], [1], [0, 0, 1, 1], [], []>} : vector<16x40xbf16>, vector<40x6xbf16>, vector<16x6xf32> -> vector<16x6xf32>
    %92 = vector.broadcast %88 : vector<16x1xf32> to vector<16x6xf32>
    %93 = arith.addf %91, %92 : vector<16x6xf32>
    %cst_59 = arith.constant 0.000000e+00 : f32
    %94 = vector.broadcast %cst_59 : f32 to vector<16x6xf32>
    %95 = arith.cmpf oge, %93, %94 : vector<16x6xf32>
    %cst_60 = arith.constant 1.000000e-01 : f32
    %96 = vector.broadcast %cst_60 : f32 to vector<16x6xf32>
    %97 = arith.mulf %93, %96 : vector<16x6xf32>
    %98 = arith.select %95, %93, %97 : vector<16x6xi1>, vector<16x6xf32>
    %c0_61 = arith.constant 0 : index
    %c0_62 = arith.constant 0 : index
    %c0_63 = arith.constant 0 : index
    %99 = vector.load %arg8[%c0_61, %c0_62, %c0_63] : memref<1x16x6xf32, #tpu.memory_space<vmem>>, vector<1x16x6xf32>
    %100 = vector.shape_cast %99 : vector<1x16x6xf32> to vector<16x6xf32>
    %101 = vector.shape_cast %98 : vector<16x6xf32> to vector<1x16x6xf32>
    tpu.vector_store %arg8[%c0_61, %c0_62, %c0_63], %101 {strides = array<i32>} : memref<1x16x6xf32, #tpu.memory_space<vmem>>, vector<1x16x6xf32>,
    %c0_64 = arith.constant 0 : index
    %c0_65 = arith.constant 0 : index
    %102 = vector.load %arg5[%c0_64, %c0_65] : memref<1x49xf32, #tpu.memory_space<vmem>>, vector<1x49xf32>
    %cst_66 = arith.constant 0.000000e+00 : f32
    %103 = vector.broadcast %cst_66 : f32 to vector<48x6xf32>
    %c0_67 = arith.constant 0 : index
    %c0_68 = arith.constant 0 : index
    %104 = vector.load %arg10[%c0_67, %c0_68] : memref<48x47xf32, #tpu.memory_space<vmem>>, vector<48x6xf32>
    tpu.vector_store %arg10[%c0_67, %c0_68], %103 {strides = array<i32>} : memref<48x47xf32, #tpu.memory_space<vmem>>, vector<48x6xf32>,
    %105 = vector.extract_strided_slice %98 {offsets = [0, 0], sizes = [16, 5], strides = [1, 1]} : vector<16x6xf32> to vector<16x5xf32>
    %c0_69 = arith.constant 0 : index
    %c1_70 = arith.constant 1 : index
    %106 = vector.load %arg10[%c0_69, %c1_70] : memref<48x47xf32, #tpu.memory_space<vmem>>, vector<16x5xf32>
    tpu.vector_store %arg10[%c0_69, %c1_70], %105 {strides = array<i32>} : memref<48x47xf32, #tpu.memory_space<vmem>>, vector<16x5xf32>,
    %c16_71 = arith.constant 16 : index
    %c0_72 = arith.constant 0 : index
    %107 = vector.load %arg10[%c16_71, %c0_72] : memref<48x47xf32, #tpu.memory_space<vmem>>, vector<16x6xf32>
    tpu.vector_store %arg10[%c16_71, %c0_72], %98 {strides = array<i32>} : memref<48x47xf32, #tpu.memory_space<vmem>>, vector<16x6xf32>,
    %108 = vector.extract_strided_slice %98 {offsets = [0, 1], sizes = [16, 5], strides = [1, 1]} : vector<16x6xf32> to vector<16x5xf32>
    %c32_73 = arith.constant 32 : index
    %c0_74 = arith.constant 0 : index
    %109 = vector.load %arg10[%c32_73, %c0_74] : memref<48x47xf32, #tpu.memory_space<vmem>>, vector<16x5xf32>
    tpu.vector_store %arg10[%c32_73, %c0_74], %108 {strides = array<i32>} : memref<48x47xf32, #tpu.memory_space<vmem>>, vector<16x5xf32>,
    %110 = vector.extract_strided_slice %102 {offsets = [0, 0], sizes = [1, 48], strides = [1, 1]} : vector<1x49xf32> to vector<1x48xf32>
    %111 = arith.truncf %110 : vector<1x48xf32> to vector<1x48xbf16>
    %112 = vector.extract_strided_slice %102 {offsets = [0, 48], sizes = [1, 1], strides = [1, 1]} : vector<1x49xf32> to vector<1x1xf32>
    %c0_75 = arith.constant 0 : index
    %c0_76 = arith.constant 0 : index
    %113 = vector.load %arg10[%c0_75, %c0_76] : memref<48x47xf32, #tpu.memory_space<vmem>>, vector<48x6xf32>
    %114 = arith.truncf %113 : vector<48x6xf32> to vector<48x6xbf16>
    %cst_77 = arith.constant dense<0.000000e+00> : vector<1x6xf32>
    %115 = tpu.matmul %111, %114, %cst_77 {dimension_numbers = #tpu.dot_dimension_numbers<[1], [0], [0], [1], [0, 0, 1, 1], [], []>} : vector<1x48xbf16>, vector<48x6xbf16>, vector<1x6xf32> -> vector<1x6xf32>
    %116 = vector.broadcast %112 : vector<1x1xf32> to vector<1x6xf32>
    %117 = arith.addf %115, %116 : vector<1x6xf32>
    %c0_78 = arith.constant 0 : index
    %c0_79 = arith.constant 0 : index
    %c0_80 = arith.constant 0 : index
    %118 = vector.load %arg9[%c0_78, %c0_79, %c0_80] : memref<1x1x6xf32, #tpu.memory_space<vmem>>, vector<1x1x6xf32>
    %119 = vector.shape_cast %118 : vector<1x1x6xf32> to vector<1x6xf32>
    %120 = vector.shape_cast %117 : vector<1x6xf32> to vector<1x1x6xf32>
    tpu.vector_store %arg9[%c0_78, %c0_79, %c0_80], %120 {strides = array<i32>} : memref<1x1x6xf32, #tpu.memory_space<vmem>>, vector<1x1x6xf32>,
    return
  }
  func.func @transform_0(%arg0: i32) -> (i32, i32, i32) {
    %c0_i32 = arith.constant 0 : i32
    %c0_i32_0 = arith.constant 0 : i32
    %c0_i32_1 = arith.constant 0 : i32
    return %arg0, %c0_i32, %c0_i32_0 : i32, i32, i32
  }
  func.func @transform_1(%arg0: i32) -> (i32, i32) {
    %c0_i32 = arith.constant 0 : i32
    %c0_i32_0 = arith.constant 0 : i32
    %c0_i32_1 = arith.constant 0 : i32
    return %c0_i32, %c0_i32_0 : i32, i32
  }
  func.func @transform_2(%arg0: i32) -> (i32, i32) {
    %c0_i32 = arith.constant 0 : i32
    %c0_i32_0 = arith.constant 0 : i32
    %c0_i32_1 = arith.constant 0 : i32
    return %c0_i32, %c0_i32_0 : i32, i32
  }
  func.func @transform_3(%arg0: i32) -> (i32, i32) {
    %c0_i32 = arith.constant 0 : i32
    %c0_i32_0 = arith.constant 0 : i32
    %c0_i32_1 = arith.constant 0 : i32
    return %c0_i32, %c0_i32_0 : i32, i32
  }
  func.func @transform_4(%arg0: i32) -> (i32, i32) {
    %c0_i32 = arith.constant 0 : i32
    %c0_i32_0 = arith.constant 0 : i32
    %c0_i32_1 = arith.constant 0 : i32
    return %c0_i32, %c0_i32_0 : i32, i32
  }
  func.func @transform_5(%arg0: i32) -> (i32, i32, i32) {
    %c0_i32 = arith.constant 0 : i32
    %c0_i32_0 = arith.constant 0 : i32
    %c0_i32_1 = arith.constant 0 : i32
    return %arg0, %c0_i32, %c0_i32_0 : i32, i32, i32
  }
  func.func @transform_6(%arg0: i32) -> (i32, i32, i32) {
    %c0_i32 = arith.constant 0 : i32
    %c0_i32_0 = arith.constant 0 : i32
    %c0_i32_1 = arith.constant 0 : i32
    return %arg0, %c0_i32, %c0_i32_0 : i32, i32, i32
  }
  func.func @transform_7(%arg0: i32) -> (i32, i32, i32) {
    %c0_i32 = arith.constant 0 : i32
    %c0_i32_0 = arith.constant 0 : i32
    %c0_i32_1 = arith.constant 0 : i32
    return %arg0, %c0_i32, %c0_i32_0 : i32, i32, i32
  }
  func.func @transform_8(%arg0: i32) -> (i32, i32, i32) {
    %c0_i32 = arith.constant 0 : i32
    %c0_i32_0 = arith.constant 0 : i32
    %c0_i32_1 = arith.constant 0 : i32
    return %arg0, %c0_i32, %c0_i32_0 : i32, i32, i32
  }
}

module attributes {stable_mosaic.version = 11 : i64} {
  func.func @kernel(%arg0: i32, %arg1: memref<1x1x32xf32, #tpu.memory_space<vmem>>, %arg2: memref<4x6xf32, #tpu.memory_space<vmem>>, %arg3: memref<8x21xf32, #tpu.memory_space<vmem>>, %arg4: memref<16x41xf32, #tpu.memory_space<vmem>>, %arg5: memref<1x49xf32, #tpu.memory_space<vmem>>, %arg6: memref<1x4x11xf32, #tpu.memory_space<vmem>>, %arg7: memref<1x8x4xf32, #tpu.memory_space<vmem>>, %arg8: memref<1x16x4xf32, #tpu.memory_space<vmem>>, %arg9: memref<1x1x4xf32, #tpu.memory_space<vmem>>, %arg10: memref<48x32xf32, #tpu.memory_space<vmem>>) attributes {dimension_semantics = [#tpu.dimension_semantics<parallel>], iteration_bounds = array<i64: 6>, scalar_prefetch = 0 : i64, scratch_operands = 1 : i64, tpu.core_type = #tpu.core_type<tc>, window_params = [{transform_indices = @transform_0, window_bounds = array<i64: 1, 1, 32>}, {pipeline_mode = #tpu.pipeline_mode<synchronous>, transform_indices = @transform_1, window_bounds = array<i64: 4, 6>}, {pipeline_mode = #tpu.pipeline_mode<synchronous>, transform_indices = @transform_2, window_bounds = array<i64: 8, 21>}, {pipeline_mode = #tpu.pipeline_mode<synchronous>, transform_indices = @transform_3, window_bounds = array<i64: 16, 41>}, {pipeline_mode = #tpu.pipeline_mode<synchronous>, transform_indices = @transform_4, window_bounds = array<i64: 1, 49>}, {transform_indices = @transform_5, window_bounds = array<i64: 1, 4, 11>}, {transform_indices = @transform_6, window_bounds = array<i64: 1, 8, 4>}, {transform_indices = @transform_7, window_bounds = array<i64: 1, 16, 4>}, {transform_indices = @transform_8, window_bounds = array<i64: 1, 1, 4>}]} {
    %c0 = arith.constant 0 : index
    %c0_0 = arith.constant 0 : index
    %c0_1 = arith.constant 0 : index
    %0 = vector.load %arg1[%c0, %c0_0, %c0_1] : memref<1x1x32xf32, #tpu.memory_space<vmem>>, vector<1x1x32xf32>
    %1 = vector.shape_cast %0 : vector<1x1x32xf32> to vector<1x32xf32>
    %c0_2 = arith.constant 0 : index
    %c0_3 = arith.constant 0 : index
    %2 = vector.load %arg2[%c0_2, %c0_3] : memref<4x6xf32, #tpu.memory_space<vmem>>, vector<4x6xf32>
    %cst = arith.constant 0.000000e+00 : f32
    %3 = vector.broadcast %cst : f32 to vector<5x32xf32>
    %c0_4 = arith.constant 0 : index
    %c0_5 = arith.constant 0 : index
    %4 = vector.load %arg10[%c0_4, %c0_5] : memref<48x32xf32, #tpu.memory_space<vmem>>, vector<5x32xf32>
    tpu.vector_store %arg10[%c0_4, %c0_5], %3 {strides = array<i32>} : memref<48x32xf32, #tpu.memory_space<vmem>>, vector<5x32xf32>,
    %5 = vector.extract_strided_slice %1 {offsets = [0, 0], sizes = [1, 30], strides = [1, 1]} : vector<1x32xf32> to vector<1x30xf32>
    %c0_6 = arith.constant 0 : index
    %c2 = arith.constant 2 : index
    %6 = vector.load %arg10[%c0_6, %c2] : memref<48x32xf32, #tpu.memory_space<vmem>>, vector<1x30xf32>
    tpu.vector_store %arg10[%c0_6, %c2], %5 {strides = array<i32>} : memref<48x32xf32, #tpu.memory_space<vmem>>, vector<1x30xf32>,
    %7 = vector.extract_strided_slice %1 {offsets = [0, 0], sizes = [1, 31], strides = [1, 1]} : vector<1x32xf32> to vector<1x31xf32>
    %c1 = arith.constant 1 : index
    %c1_7 = arith.constant 1 : index
    %8 = vector.load %arg10[%c1, %c1_7] : memref<48x32xf32, #tpu.memory_space<vmem>>, vector<1x31xf32>
    tpu.vector_store %arg10[%c1, %c1_7], %7 {strides = array<i32>} : memref<48x32xf32, #tpu.memory_space<vmem>>, vector<1x31xf32>,
    %c2_8 = arith.constant 2 : index
    %c0_9 = arith.constant 0 : index
    %9 = vector.load %arg10[%c2_8, %c0_9] : memref<48x32xf32, #tpu.memory_space<vmem>>, vector<1x32xf32>
    tpu.vector_store %arg10[%c2_8, %c0_9], %1 {strides = array<i32>} : memref<48x32xf32, #tpu.memory_space<vmem>>, vector<1x32xf32>,
    %10 = vector.extract_strided_slice %1 {offsets = [0, 1], sizes = [1, 31], strides = [1, 1]} : vector<1x32xf32> to vector<1x31xf32>
    %c3 = arith.constant 3 : index
    %c0_10 = arith.constant 0 : index
    %11 = vector.load %arg10[%c3, %c0_10] : memref<48x32xf32, #tpu.memory_space<vmem>>, vector<1x31xf32>
    tpu.vector_store %arg10[%c3, %c0_10], %10 {strides = array<i32>} : memref<48x32xf32, #tpu.memory_space<vmem>>, vector<1x31xf32>,
    %12 = vector.extract_strided_slice %1 {offsets = [0, 2], sizes = [1, 30], strides = [1, 1]} : vector<1x32xf32> to vector<1x30xf32>
    %c4 = arith.constant 4 : index
    %c0_11 = arith.constant 0 : index
    %13 = vector.load %arg10[%c4, %c0_11] : memref<48x32xf32, #tpu.memory_space<vmem>>, vector<1x30xf32>
    tpu.vector_store %arg10[%c4, %c0_11], %12 {strides = array<i32>} : memref<48x32xf32, #tpu.memory_space<vmem>>, vector<1x30xf32>,
    %14 = vector.extract_strided_slice %2 {offsets = [0, 0], sizes = [4, 5], strides = [1, 1]} : vector<4x6xf32> to vector<4x5xf32>
    %15 = arith.truncf %14 : vector<4x5xf32> to vector<4x5xbf16>
    %16 = vector.extract_strided_slice %2 {offsets = [0, 5], sizes = [4, 1], strides = [1, 1]} : vector<4x6xf32> to vector<4x1xf32>
    %c0_12 = arith.constant 0 : index
    %c0_13 = arith.constant 0 : index
    %17 = vector.load %arg10[%c0_12, %c0_13] : memref<48x32xf32, #tpu.memory_space<vmem>>, vector<5x32xf32>
    %18 = arith.truncf %17 : vector<5x32xf32> to vector<5x32xbf16>
    %cst_14 = arith.constant dense<0.000000e+00> : vector<4x32xf32>
    %19 = tpu.matmul %15, %18, %cst_14 {dimension_numbers = #tpu.dot_dimension_numbers<[1], [0], [0], [1], [0, 0, 1, 1], [], []>} : vector<4x5xbf16>, vector<5x32xbf16>, vector<4x32xf32> -> vector<4x32xf32>
    %20 = tpu.iota {dimensions = array<i32: 0>} : vector<32x11xi32>
    %21 = tpu.iota {dimensions = array<i32: 1>} : vector<32x11xi32>
    %c3_i32 = arith.constant 3 : i32
    %22 = vector.broadcast %c3_i32 : i32 to vector<32x11xi32>
    %23 = arith.muli %22, %21 : vector<32x11xi32>
    %24 = arith.cmpi eq, %20, %23 : vector<32x11xi32>
    %25 = arith.extui %24 : vector<32x11xi1> to vector<32x11xi32>
    %26 = arith.sitofp %25 : vector<32x11xi32> to vector<32x11xf32>
    %cst_15 = arith.constant dense<0.000000e+00> : vector<4x11xf32>
    %27 = tpu.matmul %19, %26, %cst_15 {dimension_numbers = #tpu.dot_dimension_numbers<[1], [0], [0], [1], [0, 0, 1, 1], [], []>} : vector<4x32xf32>, vector<32x11xf32>, vector<4x11xf32> -> vector<4x11xf32>
    %28 = vector.broadcast %16 : vector<4x1xf32> to vector<4x11xf32>
    %29 = arith.addf %27, %28 : vector<4x11xf32>
    %cst_16 = arith.constant 0.000000e+00 : f32
    %30 = vector.broadcast %cst_16 : f32 to vector<4x11xf32>
    %31 = arith.cmpf oge, %29, %30 : vector<4x11xf32>
    %cst_17 = arith.constant 1.000000e-01 : f32
    %32 = vector.broadcast %cst_17 : f32 to vector<4x11xf32>
    %33 = arith.mulf %29, %32 : vector<4x11xf32>
    %34 = arith.select %31, %29, %33 : vector<4x11xi1>, vector<4x11xf32>
    %c0_18 = arith.constant 0 : index
    %c0_19 = arith.constant 0 : index
    %c0_20 = arith.constant 0 : index
    %35 = vector.load %arg6[%c0_18, %c0_19, %c0_20] : memref<1x4x11xf32, #tpu.memory_space<vmem>>, vector<1x4x11xf32>
    %36 = vector.shape_cast %35 : vector<1x4x11xf32> to vector<4x11xf32>
    %37 = vector.shape_cast %34 : vector<4x11xf32> to vector<1x4x11xf32>
    tpu.vector_store %arg6[%c0_18, %c0_19, %c0_20], %37 {strides = array<i32>} : memref<1x4x11xf32, #tpu.memory_space<vmem>>, vector<1x4x11xf32>,
    %c0_21 = arith.constant 0 : index
    %c0_22 = arith.constant 0 : index
    %38 = vector.load %arg3[%c0_21, %c0_22] : memref<8x21xf32, #tpu.memory_space<vmem>>, vector<8x21xf32>
    %cst_23 = arith.constant 0.000000e+00 : f32
    %39 = vector.broadcast %cst_23 : f32 to vector<20x11xf32>
    %c0_24 = arith.constant 0 : index
    %c0_25 = arith.constant 0 : index
    %40 = vector.load %arg10[%c0_24, %c0_25] : memref<48x32xf32, #tpu.memory_space<vmem>>, vector<20x11xf32>
    tpu.vector_store %arg10[%c0_24, %c0_25], %39 {strides = array<i32>} : memref<48x32xf32, #tpu.memory_space<vmem>>, vector<20x11xf32>,
    %41 = vector.extract_strided_slice %34 {offsets = [0, 0], sizes = [4, 9], strides = [1, 1]} : vector<4x11xf32> to vector<4x9xf32>
    %c0_26 = arith.constant 0 : index
    %c2_27 = arith.constant 2 : index
    %42 = vector.load %arg10[%c0_26, %c2_27] : memref<48x32xf32, #tpu.memory_space<vmem>>, vector<4x9xf32>
    tpu.vector_store %arg10[%c0_26, %c2_27], %41 {strides = array<i32>} : memref<48x32xf32, #tpu.memory_space<vmem>>, vector<4x9xf32>,
    %43 = vector.extract_strided_slice %34 {offsets = [0, 0], sizes = [4, 10], strides = [1, 1]} : vector<4x11xf32> to vector<4x10xf32>
    %c4_28 = arith.constant 4 : index
    %c1_29 = arith.constant 1 : index
    %44 = vector.load %arg10[%c4_28, %c1_29] : memref<48x32xf32, #tpu.memory_space<vmem>>, vector<4x10xf32>
    tpu.vector_store %arg10[%c4_28, %c1_29], %43 {strides = array<i32>} : memref<48x32xf32, #tpu.memory_space<vmem>>, vector<4x10xf32>,
    %c8 = arith.constant 8 : index
    %c0_30 = arith.constant 0 : index
    %45 = vector.load %arg10[%c8, %c0_30] : memref<48x32xf32, #tpu.memory_space<vmem>>, vector<4x11xf32>
    tpu.vector_store %arg10[%c8, %c0_30], %34 {strides = array<i32>} : memref<48x32xf32, #tpu.memory_space<vmem>>, vector<4x11xf32>,
    %46 = vector.extract_strided_slice %34 {offsets = [0, 1], sizes = [4, 10], strides = [1, 1]} : vector<4x11xf32> to vector<4x10xf32>
    %c12 = arith.constant 12 : index
    %c0_31 = arith.constant 0 : index
    %47 = vector.load %arg10[%c12, %c0_31] : memref<48x32xf32, #tpu.memory_space<vmem>>, vector<4x10xf32>
    tpu.vector_store %arg10[%c12, %c0_31], %46 {strides = array<i32>} : memref<48x32xf32, #tpu.memory_space<vmem>>, vector<4x10xf32>,
    %48 = vector.extract_strided_slice %34 {offsets = [0, 2], sizes = [4, 9], strides = [1, 1]} : vector<4x11xf32> to vector<4x9xf32>
    %c16 = arith.constant 16 : index
    %c0_32 = arith.constant 0 : index
    %49 = vector.load %arg10[%c16, %c0_32] : memref<48x32xf32, #tpu.memory_space<vmem>>, vector<4x9xf32>
    tpu.vector_store %arg10[%c16, %c0_32], %48 {strides = array<i32>} : memref<48x32xf32, #tpu.memory_space<vmem>>, vector<4x9xf32>,
    %50 = vector.extract_strided_slice %38 {offsets = [0, 0], sizes = [8, 20], strides = [1, 1]} : vector<8x21xf32> to vector<8x20xf32>
    %51 = arith.truncf %50 : vector<8x20xf32> to vector<8x20xbf16>
    %52 = vector.extract_strided_slice %38 {offsets = [0, 20], sizes = [8, 1], strides = [1, 1]} : vector<8x21xf32> to vector<8x1xf32>
    %c0_33 = arith.constant 0 : index
    %c0_34 = arith.constant 0 : index
    %53 = vector.load %arg10[%c0_33, %c0_34] : memref<48x32xf32, #tpu.memory_space<vmem>>, vector<20x11xf32>
    %54 = arith.truncf %53 : vector<20x11xf32> to vector<20x11xbf16>
    %cst_35 = arith.constant dense<0.000000e+00> : vector<8x11xf32>
    %55 = tpu.matmul %51, %54, %cst_35 {dimension_numbers = #tpu.dot_dimension_numbers<[1], [0], [0], [1], [0, 0, 1, 1], [], []>} : vector<8x20xbf16>, vector<20x11xbf16>, vector<8x11xf32> -> vector<8x11xf32>
    %56 = tpu.iota {dimensions = array<i32: 0>} : vector<11x4xi32>
    %57 = tpu.iota {dimensions = array<i32: 1>} : vector<11x4xi32>
    %c3_i32_36 = arith.constant 3 : i32
    %58 = vector.broadcast %c3_i32_36 : i32 to vector<11x4xi32>
    %59 = arith.muli %58, %57 : vector<11x4xi32>
    %60 = arith.cmpi eq, %56, %59 : vector<11x4xi32>
    %61 = arith.extui %60 : vector<11x4xi1> to vector<11x4xi32>
    %62 = arith.sitofp %61 : vector<11x4xi32> to vector<11x4xf32>
    %cst_37 = arith.constant dense<0.000000e+00> : vector<8x4xf32>
    %63 = tpu.matmul %55, %62, %cst_37 {dimension_numbers = #tpu.dot_dimension_numbers<[1], [0], [0], [1], [0, 0, 1, 1], [], []>} : vector<8x11xf32>, vector<11x4xf32>, vector<8x4xf32> -> vector<8x4xf32>
    %64 = vector.broadcast %52 : vector<8x1xf32> to vector<8x4xf32>
    %65 = arith.addf %63, %64 : vector<8x4xf32>
    %cst_38 = arith.constant 0.000000e+00 : f32
    %66 = vector.broadcast %cst_38 : f32 to vector<8x4xf32>
    %67 = arith.cmpf oge, %65, %66 : vector<8x4xf32>
    %cst_39 = arith.constant 1.000000e-01 : f32
    %68 = vector.broadcast %cst_39 : f32 to vector<8x4xf32>
    %69 = arith.mulf %65, %68 : vector<8x4xf32>
    %70 = arith.select %67, %65, %69 : vector<8x4xi1>, vector<8x4xf32>
    %c0_40 = arith.constant 0 : index
    %c0_41 = arith.constant 0 : index
    %c0_42 = arith.constant 0 : index
    %71 = vector.load %arg7[%c0_40, %c0_41, %c0_42] : memref<1x8x4xf32, #tpu.memory_space<vmem>>, vector<1x8x4xf32>
    %72 = vector.shape_cast %71 : vector<1x8x4xf32> to vector<8x4xf32>
    %73 = vector.shape_cast %70 : vector<8x4xf32> to vector<1x8x4xf32>
    tpu.vector_store %arg7[%c0_40, %c0_41, %c0_42], %73 {strides = array<i32>} : memref<1x8x4xf32, #tpu.memory_space<vmem>>, vector<1x8x4xf32>,
    %c0_43 = arith.constant 0 : index
    %c0_44 = arith.constant 0 : index
    %74 = vector.load %arg4[%c0_43, %c0_44] : memref<16x41xf32, #tpu.memory_space<vmem>>, vector<16x41xf32>
    %cst_45 = arith.constant 0.000000e+00 : f32
    %75 = vector.broadcast %cst_45 : f32 to vector<40x4xf32>
    %c0_46 = arith.constant 0 : index
    %c0_47 = arith.constant 0 : index
    %76 = vector.load %arg10[%c0_46, %c0_47] : memref<48x32xf32, #tpu.memory_space<vmem>>, vector<40x4xf32>
    tpu.vector_store %arg10[%c0_46, %c0_47], %75 {strides = array<i32>} : memref<48x32xf32, #tpu.memory_space<vmem>>, vector<40x4xf32>,
    %77 = vector.extract_strided_slice %70 {offsets = [0, 0], sizes = [8, 2], strides = [1, 1]} : vector<8x4xf32> to vector<8x2xf32>
    %c0_48 = arith.constant 0 : index
    %c2_49 = arith.constant 2 : index
    %78 = vector.load %arg10[%c0_48, %c2_49] : memref<48x32xf32, #tpu.memory_space<vmem>>, vector<8x2xf32>
    tpu.vector_store %arg10[%c0_48, %c2_49], %77 {strides = array<i32>} : memref<48x32xf32, #tpu.memory_space<vmem>>, vector<8x2xf32>,
    %79 = vector.extract_strided_slice %70 {offsets = [0, 0], sizes = [8, 3], strides = [1, 1]} : vector<8x4xf32> to vector<8x3xf32>
    %c8_50 = arith.constant 8 : index
    %c1_51 = arith.constant 1 : index
    %80 = vector.load %arg10[%c8_50, %c1_51] : memref<48x32xf32, #tpu.memory_space<vmem>>, vector<8x3xf32>
    tpu.vector_store %arg10[%c8_50, %c1_51], %79 {strides = array<i32>} : memref<48x32xf32, #tpu.memory_space<vmem>>, vector<8x3xf32>,
    %c16_52 = arith.constant 16 : index
    %c0_53 = arith.constant 0 : index
    %81 = vector.load %arg10[%c16_52, %c0_53] : memref<48x32xf32, #tpu.memory_space<vmem>>, vector<8x4xf32>
    tpu.vector_store %arg10[%c16_52, %c0_53], %70 {strides = array<i32>} : memref<48x32xf32, #tpu.memory_space<vmem>>, vector<8x4xf32>,
    %82 = vector.extract_strided_slice %70 {offsets = [0, 1], sizes = [8, 3], strides = [1, 1]} : vector<8x4xf32> to vector<8x3xf32>
    %c24 = arith.constant 24 : index
    %c0_54 = arith.constant 0 : index
    %83 = vector.load %arg10[%c24, %c0_54] : memref<48x32xf32, #tpu.memory_space<vmem>>, vector<8x3xf32>
    tpu.vector_store %arg10[%c24, %c0_54], %82 {strides = array<i32>} : memref<48x32xf32, #tpu.memory_space<vmem>>, vector<8x3xf32>,
    %84 = vector.extract_strided_slice %70 {offsets = [0, 2], sizes = [8, 2], strides = [1, 1]} : vector<8x4xf32> to vector<8x2xf32>
    %c32 = arith.constant 32 : index
    %c0_55 = arith.constant 0 : index
    %85 = vector.load %arg10[%c32, %c0_55] : memref<48x32xf32, #tpu.memory_space<vmem>>, vector<8x2xf32>
    tpu.vector_store %arg10[%c32, %c0_55], %84 {strides = array<i32>} : memref<48x32xf32, #tpu.memory_space<vmem>>, vector<8x2xf32>,
    %86 = vector.extract_strided_slice %74 {offsets = [0, 0], sizes = [16, 40], strides = [1, 1]} : vector<16x41xf32> to vector<16x40xf32>
    %87 = arith.truncf %86 : vector<16x40xf32> to vector<16x40xbf16>
    %88 = vector.extract_strided_slice %74 {offsets = [0, 40], sizes = [16, 1], strides = [1, 1]} : vector<16x41xf32> to vector<16x1xf32>
    %c0_56 = arith.constant 0 : index
    %c0_57 = arith.constant 0 : index
    %89 = vector.load %arg10[%c0_56, %c0_57] : memref<48x32xf32, #tpu.memory_space<vmem>>, vector<40x4xf32>
    %90 = arith.truncf %89 : vector<40x4xf32> to vector<40x4xbf16>
    %cst_58 = arith.constant dense<0.000000e+00> : vector<16x4xf32>
    %91 = tpu.matmul %87, %90, %cst_58 {dimension_numbers = #tpu.dot_dimension_numbers<[1], [0], [0], [1], [0, 0, 1, 1], [], []>} : vector<16x40xbf16>, vector<40x4xbf16>, vector<16x4xf32> -> vector<16x4xf32>
    %92 = vector.broadcast %88 : vector<16x1xf32> to vector<16x4xf32>
    %93 = arith.addf %91, %92 : vector<16x4xf32>
    %cst_59 = arith.constant 0.000000e+00 : f32
    %94 = vector.broadcast %cst_59 : f32 to vector<16x4xf32>
    %95 = arith.cmpf oge, %93, %94 : vector<16x4xf32>
    %cst_60 = arith.constant 1.000000e-01 : f32
    %96 = vector.broadcast %cst_60 : f32 to vector<16x4xf32>
    %97 = arith.mulf %93, %96 : vector<16x4xf32>
    %98 = arith.select %95, %93, %97 : vector<16x4xi1>, vector<16x4xf32>
    %c0_61 = arith.constant 0 : index
    %c0_62 = arith.constant 0 : index
    %c0_63 = arith.constant 0 : index
    %99 = vector.load %arg8[%c0_61, %c0_62, %c0_63] : memref<1x16x4xf32, #tpu.memory_space<vmem>>, vector<1x16x4xf32>
    %100 = vector.shape_cast %99 : vector<1x16x4xf32> to vector<16x4xf32>
    %101 = vector.shape_cast %98 : vector<16x4xf32> to vector<1x16x4xf32>
    tpu.vector_store %arg8[%c0_61, %c0_62, %c0_63], %101 {strides = array<i32>} : memref<1x16x4xf32, #tpu.memory_space<vmem>>, vector<1x16x4xf32>,
    %c0_64 = arith.constant 0 : index
    %c0_65 = arith.constant 0 : index
    %102 = vector.load %arg5[%c0_64, %c0_65] : memref<1x49xf32, #tpu.memory_space<vmem>>, vector<1x49xf32>
    %cst_66 = arith.constant 0.000000e+00 : f32
    %103 = vector.broadcast %cst_66 : f32 to vector<48x4xf32>
    %c0_67 = arith.constant 0 : index
    %c0_68 = arith.constant 0 : index
    %104 = vector.load %arg10[%c0_67, %c0_68] : memref<48x32xf32, #tpu.memory_space<vmem>>, vector<48x4xf32>
    tpu.vector_store %arg10[%c0_67, %c0_68], %103 {strides = array<i32>} : memref<48x32xf32, #tpu.memory_space<vmem>>, vector<48x4xf32>,
    %105 = vector.extract_strided_slice %98 {offsets = [0, 0], sizes = [16, 3], strides = [1, 1]} : vector<16x4xf32> to vector<16x3xf32>
    %c0_69 = arith.constant 0 : index
    %c1_70 = arith.constant 1 : index
    %106 = vector.load %arg10[%c0_69, %c1_70] : memref<48x32xf32, #tpu.memory_space<vmem>>, vector<16x3xf32>
    tpu.vector_store %arg10[%c0_69, %c1_70], %105 {strides = array<i32>} : memref<48x32xf32, #tpu.memory_space<vmem>>, vector<16x3xf32>,
    %c16_71 = arith.constant 16 : index
    %c0_72 = arith.constant 0 : index
    %107 = vector.load %arg10[%c16_71, %c0_72] : memref<48x32xf32, #tpu.memory_space<vmem>>, vector<16x4xf32>
    tpu.vector_store %arg10[%c16_71, %c0_72], %98 {strides = array<i32>} : memref<48x32xf32, #tpu.memory_space<vmem>>, vector<16x4xf32>,
    %108 = vector.extract_strided_slice %98 {offsets = [0, 1], sizes = [16, 3], strides = [1, 1]} : vector<16x4xf32> to vector<16x3xf32>
    %c32_73 = arith.constant 32 : index
    %c0_74 = arith.constant 0 : index
    %109 = vector.load %arg10[%c32_73, %c0_74] : memref<48x32xf32, #tpu.memory_space<vmem>>, vector<16x3xf32>
    tpu.vector_store %arg10[%c32_73, %c0_74], %108 {strides = array<i32>} : memref<48x32xf32, #tpu.memory_space<vmem>>, vector<16x3xf32>,
    %110 = vector.extract_strided_slice %102 {offsets = [0, 0], sizes = [1, 48], strides = [1, 1]} : vector<1x49xf32> to vector<1x48xf32>
    %111 = arith.truncf %110 : vector<1x48xf32> to vector<1x48xbf16>
    %112 = vector.extract_strided_slice %102 {offsets = [0, 48], sizes = [1, 1], strides = [1, 1]} : vector<1x49xf32> to vector<1x1xf32>
    %c0_75 = arith.constant 0 : index
    %c0_76 = arith.constant 0 : index
    %113 = vector.load %arg10[%c0_75, %c0_76] : memref<48x32xf32, #tpu.memory_space<vmem>>, vector<48x4xf32>
    %114 = arith.truncf %113 : vector<48x4xf32> to vector<48x4xbf16>
    %cst_77 = arith.constant dense<0.000000e+00> : vector<1x4xf32>
    %115 = tpu.matmul %111, %114, %cst_77 {dimension_numbers = #tpu.dot_dimension_numbers<[1], [0], [0], [1], [0, 0, 1, 1], [], []>} : vector<1x48xbf16>, vector<48x4xbf16>, vector<1x4xf32> -> vector<1x4xf32>
    %116 = vector.broadcast %112 : vector<1x1xf32> to vector<1x4xf32>
    %117 = arith.addf %115, %116 : vector<1x4xf32>
    %c0_78 = arith.constant 0 : index
    %c0_79 = arith.constant 0 : index
    %c0_80 = arith.constant 0 : index
    %118 = vector.load %arg9[%c0_78, %c0_79, %c0_80] : memref<1x1x4xf32, #tpu.memory_space<vmem>>, vector<1x1x4xf32>
    %119 = vector.shape_cast %118 : vector<1x1x4xf32> to vector<1x4xf32>
    %120 = vector.shape_cast %117 : vector<1x4xf32> to vector<1x1x4xf32>
    tpu.vector_store %arg9[%c0_78, %c0_79, %c0_80], %120 {strides = array<i32>} : memref<1x1x4xf32, #tpu.memory_space<vmem>>, vector<1x1x4xf32>,
    return
  }
  func.func @transform_0(%arg0: i32) -> (i32, i32, i32) {
    %c0_i32 = arith.constant 0 : i32
    %c0_i32_0 = arith.constant 0 : i32
    %c0_i32_1 = arith.constant 0 : i32
    return %arg0, %c0_i32, %c0_i32_0 : i32, i32, i32
  }
  func.func @transform_1(%arg0: i32) -> (i32, i32) {
    %c0_i32 = arith.constant 0 : i32
    %c0_i32_0 = arith.constant 0 : i32
    %c0_i32_1 = arith.constant 0 : i32
    return %c0_i32, %c0_i32_0 : i32, i32
  }
  func.func @transform_2(%arg0: i32) -> (i32, i32) {
    %c0_i32 = arith.constant 0 : i32
    %c0_i32_0 = arith.constant 0 : i32
    %c0_i32_1 = arith.constant 0 : i32
    return %c0_i32, %c0_i32_0 : i32, i32
  }
  func.func @transform_3(%arg0: i32) -> (i32, i32) {
    %c0_i32 = arith.constant 0 : i32
    %c0_i32_0 = arith.constant 0 : i32
    %c0_i32_1 = arith.constant 0 : i32
    return %c0_i32, %c0_i32_0 : i32, i32
  }
  func.func @transform_4(%arg0: i32) -> (i32, i32) {
    %c0_i32 = arith.constant 0 : i32
    %c0_i32_0 = arith.constant 0 : i32
    %c0_i32_1 = arith.constant 0 : i32
    return %c0_i32, %c0_i32_0 : i32, i32
  }
  func.func @transform_5(%arg0: i32) -> (i32, i32, i32) {
    %c0_i32 = arith.constant 0 : i32
    %c0_i32_0 = arith.constant 0 : i32
    %c0_i32_1 = arith.constant 0 : i32
    return %arg0, %c0_i32, %c0_i32_0 : i32, i32, i32
  }
  func.func @transform_6(%arg0: i32) -> (i32, i32, i32) {
    %c0_i32 = arith.constant 0 : i32
    %c0_i32_0 = arith.constant 0 : i32
    %c0_i32_1 = arith.constant 0 : i32
    return %arg0, %c0_i32, %c0_i32_0 : i32, i32, i32
  }
  func.func @transform_7(%arg0: i32) -> (i32, i32, i32) {
    %c0_i32 = arith.constant 0 : i32
    %c0_i32_0 = arith.constant 0 : i32
    %c0_i32_1 = arith.constant 0 : i32
    return %arg0, %c0_i32, %c0_i32_0 : i32, i32, i32
  }
  func.func @transform_8(%arg0: i32) -> (i32, i32, i32) {
    %c0_i32 = arith.constant 0 : i32
    %c0_i32_0 = arith.constant 0 : i32
    %c0_i32_1 = arith.constant 0 : i32
    return %arg0, %c0_i32, %c0_i32_0 : i32, i32, i32
  }
}

</mosaic_0001>

<bundles_post_ra>
// kernel: hifi_forward.6
= control target key start
LH: loop header
LB: loop body
LE: loop exit
PB: predicated region body
PF: predicated region fallthrough
CT: control target
= control target key end

     0   :  { %s1320_s0 = inlined_call_operand.vmem [shape: f32[2,1,94], index: 0, kind: input, shape index: {}]   ;;  %s1321_s1 = inlined_call_operand.vmem [shape: f32[4,16], index: 1, kind: input, shape index: {}]   ;;  %s1322_s2 = inlined_call_operand.hbm [shape: f32[8,21], index: 2, kind: input, shape index: {}]   ;;  %s1323_s3 = inlined_call_operand.hbm [shape: f32[1,25], index: 3, kind: input, shape index: {}]   ;;  %s1324_s4 = inlined_call_operand.hbm [shape: f32[2,4,94], index: 4, kind: output, shape index: {0}]   ;;  %s1325_s5 = inlined_call_operand.hbm [shape: f32[2,8,47], index: 5, kind: output, shape index: {1}]   ;;  %s1326_s6 = inlined_call_operand.vmem [shape: f32[2,1,47], index: 6, kind: output, shape index: {2}]  }
   0x1   :  { %1327 = sst [smem:[#allocation15_spill]] %s1320_s0 }
   0x2   :  { %1328 = sst [smem:[#allocation16_spill]] %s1321_s1 }
   0x3   :  { %1329 = sst [smem:[#allocation17_spill]] %s1322_s2 }
   0x4   :  { %12 = vsyncpa [#allocation4], 0 }
   0x5   :  { %13 = vsyncpa [#allocation7], 0 }
   0x6   :  { %14 = vsyncpa [#allocation5], 0 }
   0x7   :  { %16 = vsyncpa [#allocation5 + $0x1], 0 }
   0x8   :  { %17 = vsyncpa [#allocation10], 0 }
   0x9   :  { %19 = vsyncpa [#allocation10 + $0x1], 0  ;;  %s1131_s21 = smov 0   ;;  %s1133_s22 = smov 0  }
   0xa   :  { %s1135_s23 = smov 0   ;;  %s1137_s24 = smov 0  }
   0xb LB: > { %s1152_s25 = sadd.s32 4294967295, %s1072_s24   ;;  %s776_s26 = sadd.s32 4294967294, %s1072_s24   ;;  %s1072_s24 = sphi %s1137_s24, %s1339_s24   ;;  %s1068_s23 = sphi %s1135_s23, %s1338_s23   ;;  %s1064_s22 = sphi %s1133_s22, %s1337_s22   ;;  %s1060_s21 = sphi %s1131_s21, %s1336_s21  }
   0xc   : > { %s1156_s27 = sadd.s32 1, %s1072_s24   ;;  %s121_s28 = sadd.s32 1, %s1068_s23 }
   0xd   : > { %s118_s29 = ssub.s32 %s1072_s24, %s1156_s27  ;;  %p131_p0 = scmp.ne.s32.totalorder %s1068_s23, %s1064_s22 }
   0xe   : > { %p119_p1 = scmp.eq.s32.totalorder %s118_s29, 0  ;;  %p132_p2 = scmp.eq.s32.totalorder %s1152_s25, 1 }
   0xf   : > { %p137_p3 = scmp.ne.s32.totalorder %s1064_s22, %s1060_s21  ;;  %p138_p4 = scmp.eq.s32.totalorder %s776_s26, 1 }
  0x10   : > { %s1167_s30 = scalar_select %p119_p1, %s1068_s23, %s121_s28  }
  0x11   : > { %p1169_p5 = por %p132_p2, %p131_p0  ;;  %p1173_p6 = por %p138_p4, %p137_p3 }
  0x12   : > { %p777_p7 = scmp.ge.s32.totalorder %s1072_s24, 1  ;;  %p197_p8 = scmp.lt.s32.totalorder %s1072_s24, 3 }
  0x13   : > { %p846_p9 = scmp.eq.s32.totalorder %s1152_s25, 0  ;;  %s1333_s2 = sld [smem:[#allocation17_spill]] }
  0x14   : > { %p1180_p10 = pnand %p777_p7, %p197_p8  ;;  %s1074_s13 = smov [#allocation3]  }
  0x15   : > { %s214_s14 = sshll.u32 %s1074_s13, 4  ;;  %s224_s17 = sshll.u32 %s1323_s3, 4  ;;  %s215_s14 = int_to_ptr.vmem [resolvable:$true] %s214_s14  ;;  %s225_s17 = int_to_ptr.hbm [resolvable:$true] %s224_s17 }
  0x16   : > { %p832_p11 = pneg %p1180_p10  ;;  %s1075_s18 = smov [#allocation6]  }
  0x17   : > { %s226_s19 = sshll.u32 %s1075_s18, 4  ;;  %245 = sbr.rel (%p1180_p10) target bundleno = 1001 (0x3e9), region = 36  ;;  %s227_s19 = int_to_ptr.vmem [resolvable:$true] %s226_s19 }
  0x18   : > { %p833_p12 = pnand %p846_p9, %p832_p11 }
  0x19   : > { %s212_s12 = sshll.u32 %s1333_s2, 4  ;;  %s213_s12 = int_to_ptr.hbm [resolvable:$true] %s212_s12 }
  0x1a   : > { %835 = dma.hbm_to_vmem [thread:$0]  (!%p833_p12), %s213_s12, 128, %s215_s14, [#allocation4]  }
  0x1b   : > { %838 = dma.hbm_to_vmem [thread:$0]  (!%p833_p12), %s225_s17, 16, %s227_s19, [#allocation7]  }
  0x1c   : > { %1043 = dma.done.wait (%p846_p9), [#allocation4], 128  }
  0x1d   : > { %1045 = vsyncadd (%p846_p9), [#allocation4], 4294967168 }
  0x1e   : > { %1047 = dma.done.wait (%p846_p9), [#allocation7], 16  }
  0x1f   : > { %1049 = vsyncadd (%p846_p9), [#allocation7], 4294967280  ;;  %p287_p13 = scmp.lt.s32.totalorder %s1152_s25, 1  ;;  %s1334_s0 = sld [smem:[#allocation15_spill]]  ;;  %vm296_vm0 = vcmask 769024   ;;  %v1079_v1 = vmov 0.0   ;;  %v465_v34 = vlaneseq }
  0x20   : > { %s1076_s9 = smov 5   ;;  %s1077_s10 = smov 7   ;;  %297 = vst.msk [vmem:[#allocation2] sm:$0xff] %vm296_vm0, %v1079_v1  ;;  %vm325_vm1 = vcmask 761880   ;;  %vm298_vm2 = vcmask 768000   ;;  %vm330_vm3 = vcmask 761872  }
  0x21   : > { %s1206_s20 = scalar_select %p287_p13, %s1152_s25, 1  ;;  %299 = vst.msk [vmem:[#allocation2 + $0x8] sm:$0x7f] %vm298_vm2, %v1079_v1  ;;  %vm337_vm4 = vcmask 761856   ;;  %vm347_vm5 = vcmask 745472   ;;  %vm315_vm6 = vcmask 761896  }
  0x22   : > { %s1078_s11 = smov 3   ;;  %s1080_s12 = smov 4   ;;  %vm305_vm7 = vcmask 761912   ;;  %vm362_vm8 = vcmask 720896   ;;  %vm320_vm9 = vcmask 761888   ;;  %vm310_vm10 = vcmask 761904  }
  0x23   : > { %s1081_s13 = smov 6   ;;  %s1082_s14 = smov 2   ;;  %vm342_vm11 = vcmask 753664   ;;  %vm335_vm12 = vcmask 761864   ;;  %v1091_v14 = vmov 15   ;;  %vm357_vm13 = vcmask 729088  }
  0x24   : > { %s1083_s15 = smov 127   ;;  %s1084_s16 = smov 1   ;;  %905 = vset.pattern.permute.xlu2 %v1091_v14  ;;  %vm352_vm14 = vcmask 737280   ;;  %vm372_vm15 = vcmask 704512   ;;  %vm387_vm2 = vcmask 1046528   ;;  %v1092_v20 = vmov 65535  }
  0x25   : > { %s1212_s29 = scalar_lea.vmem %s1334_s0, %s1206_s20  ;;  %s1085_s17 = smov 126   ;;  %v389_v21 = vsel %vm387_vm2, 4294967295, %v1092_v20  ;;  %v1242_v35 = vshrl.u32 %v465_v34, 7  ;;  %v479_v36 = vand.u32 127, %v465_v34  ;;  %v1093_v46 = vmov 1.0   ;;  %v412_v57 = vld [vmem:[#allocation3] sm:$0xff] }
  0x26   : > { %v909_v0 = vld [vmem:[%s1212_s29] ss:$0 sm:$0xff]  ;;  %s1086_s18 = smov 124   ;;  %s1087_s19 = smov 125   ;;  %vm431_vm2 = vcmask 756736   ;;  %v438_v61 = vpack.c.bf16 %v412_v57, %v412_v57  ;;  %v1094_v62 = vmov 20  }
  0x27   : > { %312 = vrot.lane.b32.xlu1 %v909_v0, %s1076_s9  ;;  %302 = vrot.lane.b32.xlu0 %v909_v0, %s1077_s10  ;;  %s1088_s26 = smov 123   ;;  %s1089_s28 = smov 121   ;;  %v294_v3 = vld [vmem:[%s1212_s29] sm:$0x1]  ;;  %v477_v37 = vadd.s32 88, %v1242_v35  ;;  %v480_v38 = vmul.u32 2, %v479_v36 }
  0x28   : > { %322 = vrot.lane.b32.xlu2 %v909_v0, %s1078_s11  ;;  %s1090_s9 = smov 122   ;;  %338 = vst.msk [vmem:[#allocation2 + $0x7] sm:$0x1] %vm337_vm4, %v294_v3  ;;  %s1335_s1 = sld [smem:[#allocation16_spill]]  ;;  %vm383_vm4 = vcmask 121856   ;;  %v476_v39 = vadd.s32 80, %v1242_v35  ;;  %906 = vset.pattern.permute.xlu1 %v1094_v62 }
  0x29   : > { %s1232_s11 = sand.u32 1, %s1064_s22   ;;  %v475_v40 = vadd.s32 72, %v1242_v35  ;;  %v474_v42 = vadd.s32 64, %v1242_v35  ;;  %v473_v44 = vadd.s32 56, %v1242_v35  ;;  %v472_v47 = vadd.s32 48, %v1242_v35 }
  0x2a   : > { %v471_v48 = vadd.s32 40, %v1242_v35  ;;  %v470_v49 = vadd.s32 32, %v1242_v35  ;;  %v469_v50 = vadd.s32 24, %v1242_v35  ;;  %v468_v54 = vadd.s32 16, %v1242_v35  ;;  %s606_s29 = scalar_lea.sflag [#allocation5], %s1232_s11 }
  0x2b   : > { %v467_v56 = vadd.s32 8, %v1242_v35 }
  0x2e   : > { %v295_v13 = vld [vmem:[%s1335_s1] sm:$0xf]  ;;  %s990_s1 = scalar_lea.hbm %s1324_s4, 8 }
  0x2f   : > { %317 = vrot.lane.b32.xlu1 %v909_v0, %s1080_s12  ;;  %307 = vrot.lane.b32.xlu0 %v909_v0, %s1081_s13  ;;  %v374_v26 = vpack.c.bf16 %v295_v13, %v295_v13  ;;  %s784_s12 = sshll.u32 %s1232_s11, 2 }
  0x30   : > { %327 = vrot.lane.b32.xlu2 %v909_v0, %s1082_s14  ;;  %s1238_s13 = scalar_lea.vmem [#allocation8], %s784_s12 }
  0x37   : > { %339 = vrot.lane.b32.xlu1 %v909_v0, %s1083_s15  ;;  %332 = vrot.lane.b32.xlu0 %v909_v0, %s1084_s16 }
  0x38   : > { %344 = vrot.lane.b32.xlu2 %v909_v0, %s1085_s17 }
  0x3f   : > { %354 = vrot.lane.b32.xlu1 %v909_v0, %s1086_s18  ;;  %349 = vrot.lane.b32.xlu0 %v909_v0, %s1087_s19 }
  0x40   : > { %359 = vrot.lane.b32.xlu2 %v909_v0, %s1088_s26  ;;  %s817_s26 = sshll.u32 %s1152_s25, 3 }
  0x47   : > { %369 = vrot.lane.b32.xlu1 %v909_v0, %s1089_s28  ;;  %364 = vrot.lane.b32.xlu0 %v909_v0, %s1090_s9  ;;  %s626_s28 = sshll.u32 %s1238_s13, 4  ;;  %s627_s28 = int_to_ptr.vmem [resolvable:$true] %s626_s28 }
  0x48   : > { %380 = vperm.xlu2 %905, %v295_v13  }
  0x82   : > { %v323_v2 = vpop.permute.xlu2 %322 }
  0x83   : > { %326 = vst.msk [vmem:[#allocation2 + $0x4] sm:$0x1] %vm325_vm1, %v323_v2  ;;  %vm367_vm1 = vcmask 712704  }
  0x8a   : > { %v328_v4 = vpop.permute.xlu2 %327 }
  0x8b   : > { %331 = vst.msk [vmem:[#allocation2 + $0x5] sm:$0x1] %vm330_vm3, %v328_v4  ;;  %vm388_vm3 = vcmask 1047552  }
  0x8c   : > { %v390_v23 = vsel %vm388_vm3, %v389_v21, 0  ;;  %vm486_vm3 = vcmp.eq.s32.totalorder %v471_v48, %v480_v38 }
  0x92   : > { %v345_v5 = vpop.permute.xlu2 %344 }
  0x93   : > { %348 = vst.msk [vmem:[#allocation2 + $0x9] sm:$0x1] %vm347_vm5, %v345_v5  ;;  %vm410_vm5 = vcmask 764928  }
  0x94   : > { %415 = vst.msk [vmem:[#allocation2 + $0x10] sm:$0xf] %vm410_vm5, %v1079_v1 }
  0x99   : > { %v313_v6 = vpop.permute.xlu1 %312  ;;  %v303_v7 = vpop.permute.xlu0 %302 }
  0x9a   : > { %316 = vst.msk [vmem:[#allocation2 + $0x2] sm:$0x1] %vm315_vm6, %v313_v6  ;;  %v360_v8 = vpop.permute.xlu2 %359 }
  0x9b   : > { %306 = vst.msk [vmem:[#allocation2] sm:$0x1] %vm305_vm7, %v303_v7  ;;  %vm425_vm7 = vcmask 764936  }
  0x9c   : > { %363 = vst.msk [vmem:[#allocation2 + $0xc] sm:$0x1] %vm362_vm8, %v360_v8  ;;  %vm525_vm8 = vcmask 1045504   ;;  %v1095_v8 = vmov 24  }
  0x9d   : > { %908 = vset.pattern.permute.xlu0 %v1095_v8 }
  0xa1   : > { %v318_v9 = vpop.permute.xlu1 %317  ;;  %v308_v10 = vpop.permute.xlu0 %307 }
  0xa2   : > { %321 = vst.msk [vmem:[#allocation2 + $0x3] sm:$0x1] %vm320_vm9, %v318_v9  ;;  %v381_v27 = vpop.permute.xlu2 %380  ;;  %vm420_vm9 = vcmask 764944  }
  0xa3   : > { %311 = vst.msk [vmem:[#allocation2 + $0x1] sm:$0x1] %vm310_vm10, %v308_v10  ;;  %vm492_vm10 = vcmp.eq.s32.totalorder %v477_v37, %v480_v38 }
  0xa4   : > { %v799_v41 = vsel %vm492_vm10, 1.0, %v1079_v1  ;;  %vm481_vm10 = vcmp.eq.s32.totalorder %v1242_v35, %v480_v38 }
  0xa5   : > { %800 = vmatpush.msk.msra.mxu2 %vm525_vm8, %v799_v41  ;;  %vm482_vm8 = vcmp.eq.s32.totalorder %v467_v56, %v480_v38 }
  0xa9   : > { %v340_v11 = vpop.permute.xlu1 %339  ;;  %v333_v12 = vpop.permute.xlu0 %332 }
  0xaa   : > { %343 = vst.msk [vmem:[#allocation2 + $0x8] sm:$0x1] %vm342_vm11, %v340_v11  ;;  %vm491_vm11 = vcmp.eq.s32.totalorder %v476_v39, %v480_v38 }
  0xab   : > { %336 = vst.msk [vmem:[#allocation2 + $0x6] sm:$0x1] %vm335_vm12, %v333_v12  ;;  %vm436_vm12 = vcmask 748544   ;;  %801 = vmatpush.msk.msra.mxu2 %vm491_vm11, %v1093_v46  ;;  %vm552_vm11 = vcmask 384000  }
  0xb1   : > { %v355_v15 = vpop.permute.xlu1 %354  ;;  %v350_v16 = vpop.permute.xlu0 %349 }
  0xb2   : > { %358 = vst.msk [vmem:[#allocation2 + $0xb] sm:$0x1] %vm357_vm13, %v355_v15  ;;  %v375_v17 = vld [vmem:[#allocation2] sm:$0xff]  ;;  %vm490_vm13 = vcmp.eq.s32.totalorder %v475_v40, %v480_v38 }
  0xb3   : > { %353 = vst.msk [vmem:[#allocation2 + $0xa] sm:$0x1] %vm352_vm14, %v350_v16  ;;  %vm489_vm14 = vcmp.eq.s32.totalorder %v474_v42, %v480_v38  ;;  %802 = vmatpush.msk.msra.mxu2 %vm490_vm13, %v1093_v46  ;;  %vm586_vm13 = vcmask 1043456  }
  0xb4   : > { %413 = vst.msk [vmem:[#allocation2] sm:$0xff] %vm296_vm0, %v1079_v1 }
  0xb5   : > { %803 = vmatpush.msk.msra.mxu2 %vm489_vm14, %v1093_v46  ;;  %vm562_vm14 = vcmask 384008  }
  0xb9   : > { %v370_v18 = vpop.permute.xlu1 %369  ;;  %v365_v19 = vpop.permute.xlu0 %364 }
  0xba   : > { %373 = vst.msk [vmem:[#allocation2 + $0xe] sm:$0x1] %vm372_vm15, %v370_v18  ;;  %vm488_vm15 = vcmp.eq.s32.totalorder %v473_v44, %v480_v38 }
  0xbb   : > { %368 = vst.msk [vmem:[#allocation2 + $0xd] sm:$0x1] %vm367_vm1, %v365_v19  ;;  %vm487_vm1 = vcmp.eq.s32.totalorder %v472_v47, %v480_v38  ;;  %804 = vmatpush.msk.msra.mxu2 %vm488_vm15, %v1093_v46  ;;  %vm582_vm15 = vcmask 195584  }
  0xbd   : > { %805 = vmatpush.msk.msra.mxu2 %vm487_vm1, %v1093_v46 }
  0xbf   : > { %806 = vmatpush.msk.msra.mxu2 %vm486_vm3, %v1093_v46 }
  0xc2   : > { %v376_v22 = vld [vmem:[#allocation2 + $0x8] sm:$0x7f] }
  0xc3   : > { %v377_v24 = vpack.c.bf16 %v376_v22, %v375_v17  ;;  %414 = vst.msk [vmem:[#allocation2 + $0x8] sm:$0xff] %vm296_vm0, %v1079_v1 }
  0xc5   : > { %v392_v25 = vand.u32 %v390_v23, %v377_v24 }
  0xc7   : > { %401 = vmatpush.bf16.msra.mxu0 %v392_v25 }
  0xca   : > { %786 = vmatmul.msk.bf16.vlgmr.msra.gmra.mxu0 %vm383_vm4, %v374_v26  ;;  %vm448_vm4 = vcmask 1041408  }
 0x147   : > { %v403_v28 = vpop.f32.mrf.mxu0 }
 0x148   : > { %v404_v29 = vadd.f32 %v403_v28, %v381_v27 }
 0x14a   : > { %vm407_vm6 = vcmp.ge.f32.partialorder %v404_v29, 0.0  ;;  %v408_v30 = vmul.f32 0.1, %v404_v29 }
 0x14c   : > { %v409_v31 = vsel %vm407_vm6, %v404_v29, %v408_v30  ;;  %vm484_vm6 = vcmp.eq.s32.totalorder %v469_v50, %v480_v38 }
 0x14d   : > { %422 = vrot.lane.b32.xlu2 %v409_v31, %s1084_s16  ;;  %417 = vrot.lane.b32.xlu1 %v409_v31, %s1082_s14  ;;  %427 = vst.msk [vmem:[#allocation2 + $0x8] sm:$0xf] %vm410_vm5, %v409_v31  ;;  %s785_s14 = sshll.u32 %s1232_s11, 3 }
 0x14e   : > { %433 = vrot.lane.b32.xlu0 %v409_v31, %s1085_s17  ;;  %411 = vst.msk [vmem:[%s1238_s13] sm:$0xf] %vm410_vm5, %v409_v31  ;;  %vm485_vm5 = vcmp.eq.s32.totalorder %v470_v49, %v480_v38  ;;  %s1264_s17 = scalar_lea.vmem [#allocation9], %s785_s14 }
 0x14f   : > { %v405_v32 = vpop.f32.mrf.mxu0  ;;  %807 = vmatpush.msk.msra.mxu2 %vm485_vm5, %v1093_v46 }
 0x151   : > { %808 = vmatpush.msk.msra.mxu2 %vm484_vm6, %v1093_v46 }
 0x155   : > { %519 = vperm.xlu1 %906, %v412_v57  }
 0x156   : > { %428 = vrot.lane.b32.xlu0 %v409_v31, %s1083_s15 }
 0x15d   : > { %907 = vset.pattern.permute.xlu1 %v1095_v8 }
 0x1a7   : > { %v423_v33 = vpop.permute.xlu2 %422 }
 0x1a8   : > { %426 = vst.msk [vmem:[#allocation2 + $0x4] sm:$0xf] %vm425_vm7, %v423_v33  ;;  %vm483_vm7 = vcmp.eq.s32.totalorder %v468_v54, %v480_v38 }
 0x1a9   : > { %809 = vmatpush.msk.msra.mxu2 %vm483_vm7, %v1093_v46 }
 0x1ab   : > { %810 = vmatpush.msk.msra.mxu2 %vm482_vm8, %v1093_v46 }
 0x1ad   : > { %811 = vmatpush.msk.msra.mxu2 %vm481_vm10, %v1093_v46 }
 0x1bf   : > { %v418_v43 = vpop.permute.xlu1 %417 }
 0x1c0   : > { %421 = vst.msk [vmem:[#allocation2] sm:$0xf] %vm420_vm9, %v418_v43  ;;  %v434_v45 = vpop.permute.xlu0 %433  ;;  %vm444_vm9 = vcmask 162816  }
 0x1c1   : > { %437 = vst.msk [vmem:[#allocation2 + $0x10] sm:$0xf] %vm436_vm12, %v434_v45 }
 0x1c7   : > { %v439_v58 = vld [vmem:[#allocation2] sm:$0xff]  ;;  %v520_v2 = vpop.permute.xlu1 %519 }
 0x1c8   : > { %v429_v51 = vpop.permute.xlu0 %428  ;;  %v441_v52 = vld [vmem:[#allocation2 + $0x10] sm:$0xf]  ;;  %555 = vst.msk [vmem:[#allocation2] sm:$0xff] %vm552_vm11, %v1079_v1 }
 0x1c9   : > { %432 = vst.msk [vmem:[#allocation2 + $0xc] sm:$0xf] %vm431_vm2, %v429_v51  ;;  %v443_v53 = vpack.c.bf16 %v441_v52, %v441_v52 }
 0x1ca   : > { %557 = vst.msk [vmem:[#allocation2 + $0x10] sm:$0xff] %vm552_vm11, %v1079_v1 }
 0x1cb   : > { %v450_v55 = vsel %vm448_vm4, %v443_v53, 0 }
 0x1cc   : > { %458 = vmatpush.bf16.msra.mxu1 %v450_v55 }
 0x1d0   : > { %v440_v59 = vld [vmem:[#allocation2 + $0x8] sm:$0xff] }
 0x1d1   : > { %v442_v60 = vpack.c.bf16 %v440_v59, %v439_v58  ;;  %556 = vst.msk [vmem:[#allocation2 + $0x8] sm:$0xff] %vm552_vm11, %v1079_v1  ;;  %v554_v1 = vld [vmem:[#allocation6] sm:$0x1] }
 0x1d2   : > { %578 = vperm.xlu1 %907, %v554_v1   ;;  %v570_v16 = vpack.c.bf16 %v554_v1, %v554_v1 }
 0x1d3   : > { %459 = vmatpush.bf16.msra.mxu1 %v442_v60 }
 0x1d6   : > { %787 = vmatmul.msk.bf16.vlgmr.msra.gmra.mxu1 %vm444_vm9, %v438_v61 }
 0x253   : > { %v461_v63 = vpop.f32.mrf.mxu1 }
 0x254   : > { %812 = vmatmul.msk.f32.vlgmr.msra.gmra.mxu2 %vm296_vm0, %v461_v63  ;;  %vm568_vm0 = vcmask 375808  }
 0x25b   : > { %v463_v0 = vpop.f32.mrf.mxu1 }
 0x2d7   : > { %v546_v3 = vpop.f32.mrf.mxu2 }
 0x2d8   : > { %v547_v4 = vadd.f32 %v546_v3, %v520_v2 }
 0x2da   : > { %vm549_vm12 = vcmp.ge.f32.partialorder %v547_v4, 0.0  ;;  %v550_v5 = vmul.f32 0.1, %v547_v4 }
 0x2dc   : > { %v551_v6 = vsel %vm549_vm12, %v547_v4, %v550_v5 }
 0x2dd   : > { %559 = vrot.lane.b32.xlu0 %v551_v6, %s1084_s16  ;;  %564 = vst.msk [vmem:[#allocation2 + $0x8] sm:$0xff] %vm552_vm11, %v551_v6  ;;  %565 = vrot.lane.b32.xlu2 %v551_v6, %s1083_s15  ;;  %s816_s15 = sshll.u32 %s1152_s25, 2 }
 0x2de   : > { %553 = vst.msk [vmem:[%s1264_s17] sm:$0xff] %vm552_vm11, %v551_v6  ;;  %s624_s19 = scalar_lea.hbm %s1324_s4, %s816_s15 }
 0x2df   : > { %s628_s9 = sshll.u32 %s624_s19, 4  ;;  %s629_s9 = int_to_ptr.hbm [resolvable:$true] %s628_s9 }
 0x2e0   : > { %s984_s10 = sshra.s32 %s629_s9, 4  ;;  %s985_s10 = int_to_ptr.hbm [resolvable:$true] %s984_s10 }
 0x2e1   : > { %s986_s12 = scalar_lea.hbm %s985_s10, 4  ;;  %p991_p3 = scmp.lt.s32.totalorder %s985_s10, %s1324_s4 }
 0x2e2   : > { %p987_p0 = scmp.ne.s32.totalorder %s985_s10, %s986_s12  ;;  %p992_p4 = scmp.lt.s32.totalorder %s990_s1, %s986_s12 }
 0x2e4   : > { %v572_v14 = vld [vmem:[#allocation2 + $0x8] sm:$0xff]  ;;  %p988_p1 = pnand %p987_p0, %p1169_p5  ;;  %p993_p7 = por %p992_p4, %p991_p3 }
 0x2e6   : > { %p989_p2 = pneg %p988_p1 }
 0x2e8   : > { %p994_p8 = pnand %p993_p7, %p989_p2 }
 0x337   : > { %v566_v7 = vpop.permute.xlu2 %565 }
 0x338   : > { %569 = vst.msk [vmem:[#allocation2 + $0x10] sm:$0xff] %vm568_vm0, %v566_v7 }
 0x33f   : > { %v573_v9 = vld [vmem:[#allocation2 + $0x10] sm:$0xff] }
 0x340   : > { %v575_v10 = vpack.c.bf16 %v573_v9, %v573_v9 }
 0x342   : > { %v588_v11 = vsel %vm586_vm13, %v575_v10, 0 }
 0x343   : > { %596 = vmatpush.bf16.msra.mxu3 %v588_v11 }
 0x34f   : > { %v560_v12 = vpop.permute.xlu0 %559 }
 0x350   : > { %563 = vst.msk [vmem:[#allocation2] sm:$0xff] %vm562_vm14, %v560_v12 }
 0x357   : > { %v571_v13 = vld [vmem:[#allocation2] sm:$0xff] }
 0x358   : > { %v574_v15 = vpack.c.bf16 %v572_v14, %v571_v13 }
 0x35a   : > { %597 = vmatpush.bf16.msra.mxu3 %v574_v15 }
 0x35d   : > { %813 = vmatmul.msk.bf16.vlgmr.msra.gmra.mxu3 %vm582_vm15, %v570_v16 }
 0x35e   : > { %997 = shalt.err (!%p994_p8)
}
 0x35f   : > { %828 = dma.vmem_to_hbm [thread:$0]  (%p1169_p5), %s627_s28, 64, %s629_s9, %s606_s29  }
 0x360   : > { %s638_s15 = scalar_lea.hbm %s1325_s5, %s817_s26  ;;  %s640_s0 = sshll.u32 %s1264_s17, 4  ;;  %s641_s0 = int_to_ptr.vmem [resolvable:$true] %s640_s0 }
 0x361   : > { %s642_s18 = sshll.u32 %s638_s15, 4  ;;  %s611_s2 = scalar_lea.sflag [#allocation10], %s1232_s11  ;;  %s643_s18 = int_to_ptr.hbm [resolvable:$true] %s642_s18 }
 0x362   : > { %s1012_s19 = sshra.s32 %s643_s18, 4  ;;  %s1018_s28 = scalar_lea.hbm %s1325_s5, 16  ;;  %s1013_s19 = int_to_ptr.hbm [resolvable:$true] %s1012_s19 }
 0x363   : > { %s1014_s1 = scalar_lea.hbm %s1013_s19, 8  ;;  %p1019_p12 = scmp.lt.s32.totalorder %s1013_s19, %s1325_s5 }
 0x364   : > { %p1015_p9 = scmp.ne.s32.totalorder %s1013_s19, %s1014_s1  ;;  %p1020_p13 = scmp.lt.s32.totalorder %s1018_s28, %s1014_s1 }
 0x366   : > { %p1016_p10 = pnand %p1015_p9, %p1169_p5  ;;  %p1021_p0 = por %p1020_p13, %p1019_p12 }
 0x368   : > { %p1017_p11 = pneg %p1016_p10 }
 0x36a   : > { %p1022_p1 = pnand %p1021_p0, %p1017_p11 }
 0x36c   : > { %1025 = shalt.err (!%p1022_p1)
}
 0x36d   : > { %829 = dma.vmem_to_hbm [thread:$0]  (%p1169_p5), %s641_s0, 128, %s643_s18, %s611_s2   ;;  %v579_v17 = vpop.permute.xlu1 %578  ;;  %vm603_vm1 = vcmask 376832  }
 0x36e   : > { %v581_v18 = vperm.slane %v579_v17, 0  ;;  %s292_s26 = scalar_lea.vmem %s1326_s6, %s1206_s20 }
 0x3e0   : > { %v599_v19 = vpop.f32.mrf.mxu3 }
 0x3e1   : > { %v600_v20 = vadd.f32 %v599_v19, %v581_v18 }
 0x3e3   : > { %604 = vst.msk [vmem:[%s292_s26] sm:$0x1] %vm603_vm1, %v600_v20 }
 0x3e8   : > { %v601_v21 = vpop.f32.mrf.mxu3 }
 0x3e9 PF: > { %p850_p2 = scmp.ge.s32.totalorder %s1072_s24, 2  ;;  %s657_s14 = sand.u32 1, %s1060_s21  }
 0x3ea   : > { %s658_s7 = scalar_lea.sflag [#allocation5], %s657_s14 }
 0x3eb   : > { %p840_p3 = pnand %p850_p2, %p1173_p6 }
 0x3ed   : > { %p841_p5 = pneg %p840_p3 }
 0x3ef   : > { %1051 = dma.done.wait (%p841_p5), %s658_s7, 64  }
 0x3f0   : > { %1053 = vsyncadd (%p841_p5), %s658_s7, 4294967232  ;;  %s668_s16 = scalar_lea.sflag [#allocation10], %s657_s14 }
 0x3f1   : > { %1055 = dma.done.wait (%p841_p5), %s668_s16, 128  }
 0x3f2   : > { %1057 = vsyncadd (%p841_p5), %s668_s16, 4294967168  ;;  %p22_p4 = scmp.ge.s32.totalorder %s1156_s27, 4   ;;  %s1336_s21 = smov %s1064_s22 }
 0x3f3   : > { %s1337_s22 = smov %s1068_s23  ;;  %s1338_s23 = smov %s1167_s30 }
 0x3f4   : > { %s1339_s24 = smov %s1156_s27  ;;  %24 = sbr.rel (!%p22_p4) target bundleno = 11 (0xb), region = 109 }
 0x3f9   :  { %680 = vsyncpa [#allocation4], 1 }
 0x3fa   :  { %682 = vsyncpa [#allocation4 + $0x1], 1 }
 0x3fb   :  { %683 = vsyncpa [#allocation7], 1 }
 0x3fc   :  { %684 = vsyncpa [#allocation5], 1 }
 0x3fd   :  { %686 = vsyncpa [#allocation5 + $0x1], 1 }
 0x3fe   :  { %687 = vsyncpa [#allocation10], 1 }
 0x3ff   :  { %689 = vsyncpa [#allocation10 + $0x1], 1 }

// kernel: hifi_forward.7
= control target key start
LH: loop header
LB: loop body
LE: loop exit
PB: predicated region body
PF: predicated region fallthrough
CT: control target
= control target key end

     0   :  { %s1312_s0 = inlined_call_operand.vmem [shape: f32[2,1,94], index: 0, kind: input, shape index: {}]   ;;  %s1313_s1 = inlined_call_operand.vmem [shape: f32[1,5], index: 1, kind: input, shape index: {}]   ;;  %s1314_s2 = inlined_call_operand.vmem [shape: f32[4,16], index: 2, kind: input, shape index: {}]   ;;  %s1315_s3 = inlined_call_operand.vmem [shape: f32[8,21], index: 3, kind: input, shape index: {}]   ;;  %s1316_s4 = inlined_call_operand.vmem [shape: f32[1,25], index: 4, kind: input, shape index: {}]   ;;  %s1317_s5 = inlined_call_operand.hbm [shape: f32[2,4,48], index: 5, kind: output, shape index: {0}]   ;;  %s1318_s6 = inlined_call_operand.hbm [shape: f32[2,8,24], index: 6, kind: output, shape index: {1}]   ;;  %s1319_s7 = inlined_call_operand.vmem [shape: f32[2,1,24], index: 7, kind: output, shape index: {2}]  }
   0x1   :  { %1320 = sst [smem:[#allocation9_spill]] %s1312_s0 }
   0x2   :  { %1321 = sst [smem:[#allocation10_spill]] %s1313_s1 }
   0x3   :  { %1322 = sst [smem:[#allocation11_spill]] %s1314_s2 }
   0x4   :  { %1323 = sst [smem:[#allocation12_spill]] %s1315_s3 }
   0x5   :  { %13 = vsyncpa [#allocation4], 0 }
   0x6   :  { %15 = vsyncpa [#allocation4 + $0x1], 0 }
   0x7   :  { %16 = vsyncpa [#allocation6], 0 }
   0x8   :  { %18 = vsyncpa [#allocation6 + $0x1], 0  ;;  %s1099_s24 = smov 0   ;;  %s1101_s25 = smov 0  }
   0x9   :  { %s1103_s26 = smov 0   ;;  %s1105_s27 = smov 0  }
   0xa LB: > { %s1120_s28 = sadd.s32 4294967295, %s1036_s27   ;;  %s823_s29 = sadd.s32 4294967294, %s1036_s27   ;;  %s1036_s27 = sphi %s1105_s27, %s1333_s27   ;;  %s1032_s26 = sphi %s1103_s26, %s1332_s26   ;;  %s1028_s25 = sphi %s1101_s25, %s1331_s25   ;;  %s1024_s24 = sphi %s1099_s24, %s1330_s24  }
   0xb   : > { %s1124_s30 = sadd.s32 1, %s1036_s27   ;;  %s141_s8 = sadd.s32 1, %s1032_s26 }
   0xc   : > { %s138_s9 = ssub.s32 %s1036_s27, %s1124_s30  ;;  %p151_p0 = scmp.ne.s32.totalorder %s1032_s26, %s1028_s25 }
   0xd   : > { %p139_p1 = scmp.eq.s32.totalorder %s138_s9, 0  ;;  %p152_p2 = scmp.eq.s32.totalorder %s1120_s28, 1 }
   0xe   : > { %p157_p3 = scmp.ne.s32.totalorder %s1028_s25, %s1024_s24  ;;  %p158_p4 = scmp.eq.s32.totalorder %s823_s29, 1 }
   0xf   : > { %s1135_s10 = scalar_select %p139_p1, %s1032_s26, %s141_s8  }
  0x10   : > { %p1137_p5 = por %p152_p2, %p151_p0  ;;  %p1141_p6 = por %p158_p4, %p157_p3 }
  0x11   : > { %p826_p7 = scmp.ge.s32.totalorder %s1036_s27, 1  ;;  %p246_p8 = scmp.lt.s32.totalorder %s1036_s27, 3 }
  0x13   : > { %p247_p9 = pnand %p826_p7, %p246_p8 }
  0x14   : > { %p284_p10 = scmp.lt.s32.totalorder (!%p247_p9), %s1120_s28, 1  ;;  %s1326_s0 = sld [smem:[#allocation9_spill]] (!%p247_p9) }
  0x15   : > { %250 = sbr.rel (%p247_p9) target bundleno = 1386 (0x56a), region = 40  ;;  %s1039_s17 = smov (!%p247_p9), 2  }
  0x16   : > { %s1040_s18 = smov (!%p247_p9), 127   ;;  %s1041_s19 = smov (!%p247_p9), 1  }
  0x17   : > { %s1327_s1 = sld [smem:[#allocation10_spill]] (!%p247_p9)  ;;  %s1044_s22 = smov (!%p247_p9), 4  }
  0x18   : > { %s1045_s23 = smov (!%p247_p9), 5   ;;  %s1046_s29 = smov (!%p247_p9), 7  }
  0x19   : > { %s1047_s8 = smov (!%p247_p9), 6   ;;  %s1048_s9 = smov (!%p247_p9), 125  }
  0x1a   : > { %vm293_vm0 = vcmask 773120   ;;  %v1038_v0 = vmov 0.0   ;;  %s1150_s13 = scalar_select %p284_p10, %s1120_s28, 1  ;;  %vm307_vm1 = vcmask 761856   ;;  %v338_v3 = vlaneseq }
  0x1b   : > { %294 = vst.msk [vmem:[#allocation2] sm:$0xf] %vm293_vm0, %v1038_v0  ;;  %vm400_vm2 = vcmask 1046528   ;;  %vm300_vm3 = vcmask 770064   ;;  %vm312_vm6 = vcmask 753664   ;;  %v1042_v15 = vmov 1.0  }
  0x1c   : > { %s286_s16 = scalar_lea.vmem %s1326_s0, %s1150_s13  ;;  %v1159_v4 = vshrl.u32 %v338_v3, 7  ;;  %v352_v5 = vand.u32 127, %v338_v3  ;;  %vm305_vm10 = vcmask 770056   ;;  %vm425_vm15 = vcmask 392192   ;;  %s1049_s14 = smov 126  }
  0x1d   : > { %v291_v1 = vld [vmem:[%s286_s16] sm:$0x1]  ;;  %v1043_v28 = vmov 4   ;;  %s1050_s15 = smov 3   ;;  %s1052_s20 = smov 123   ;;  %v1055_v45 = vmov 15  }
  0x1e   : > { %v941_v2 = vld [vmem:[%s286_s16] ss:$0 sm:$0xff]  ;;  %308 = vst.msk [vmem:[#allocation2 + $0x2] sm:$0x1] %vm307_vm1, %v291_v1  ;;  %v350_v6 = vadd.s32 88, %v1159_v4  ;;  %v1162_v7 = vmul.u32 2, %v352_v5  ;;  %936 = vset.pattern.permute.xlu1 %v1043_v28  ;;  %937 = vset.pattern.permute.xlu0 %v1055_v45 }
  0x1f   : > { %297 = vrot.lane.b32.xlu0 %v941_v2, %s1039_s17  ;;  %309 = vrot.lane.b32.xlu1 %v941_v2, %s1040_s18  ;;  %v349_v8 = vadd.s32 80, %v1159_v4  ;;  %v348_v9 = vadd.s32 72, %v1159_v4  ;;  %v347_v11 = vadd.s32 64, %v1159_v4  ;;  %v346_v14 = vadd.s32 56, %v1159_v4  ;;  %v292_v24 = vld [vmem:[%s1327_s1] sm:$0x1] }
  0x20   : > { %vm365_vm4 = vcmp.eq.s32.totalorder %v350_v6, %v1162_v7  ;;  %v345_v16 = vadd.s32 48, %v1159_v4  ;;  %v344_v17 = vadd.s32 40, %v1159_v4  ;;  %v343_v18 = vadd.s32 32, %v1159_v4  ;;  %s1051_s16 = smov 122   ;;  %s1053_s21 = smov 124  }
  0x21   : > { %v841_v10 = vsel %vm365_vm4, 1.0, %v1038_v0  ;;  %vm364_vm5 = vcmp.eq.s32.totalorder %v349_v8, %v1162_v7  ;;  %vm363_vm7 = vcmp.eq.s32.totalorder %v348_v9, %v1162_v7  ;;  %vm362_vm8 = vcmp.eq.s32.totalorder %v347_v11, %v1162_v7  ;;  %s1328_s2 = sld [smem:[#allocation11_spill]] }
  0x22   : > { %842 = vmatpush.msk.msra.mxu1 %vm400_vm2, %v841_v10  ;;  %vm361_vm9 = vcmp.eq.s32.totalorder %v346_v14, %v1162_v7  ;;  %vm360_vm11 = vcmp.eq.s32.totalorder %v345_v16, %v1162_v7  ;;  %vm359_vm12 = vcmp.eq.s32.totalorder %v344_v17, %v1162_v7  ;;  %v342_v20 = vadd.s32 24, %v1159_v4  ;;  %s1329_s3 = sld [smem:[#allocation12_spill]] }
  0x23   : > { %vm358_vm13 = vcmp.eq.s32.totalorder %v343_v18, %v1162_v7  ;;  %v341_v21 = vadd.s32 16, %v1159_v4  ;;  %v340_v22 = vadd.s32 8, %v1159_v4  ;;  %vm321_vm1 = vcmask 1041408  }
  0x24   : > { %843 = vmatpush.msk.msra.mxu1 %vm364_vm5, %v1042_v15  ;;  %vm357_vm14 = vcmp.eq.s32.totalorder %v342_v20, %v1162_v7  ;;  %v314_v27 = vpack.c.bf16 %v292_v24, %v292_v24  ;;  %vm317_vm4 = vcmask 31744   ;;  %vm354_vm5 = vcmp.eq.s32.totalorder %v1159_v4, %v1162_v7 }
  0x25   : > { %vm356_vm0 = vcmp.eq.s32.totalorder %v341_v21, %v1162_v7  ;;  %v1056_v52 = vmov 65535   ;;  %v1057_v14 = vmov 20  }
  0x26   : > { %844 = vmatpush.msk.msra.mxu1 %vm363_vm7, %v1042_v15  ;;  %vm465_vm7 = vcmask 385024   ;;  %v516_v53 = vsel %vm400_vm2, 4294967295, %v1056_v52 }
  0x27   : > { %302 = vrot.lane.b32.xlu0 %v941_v2, %s1041_s19  ;;  %392 = vperm.xlu1 %936, %v292_v24   ;;  %v424_v44 = vld [vmem:[%s1328_s2] sm:$0xf] }
  0x28   : > { %845 = vmatpush.msk.msra.mxu1 %vm362_vm8, %v1042_v15  ;;  %vm427_vm8 = vcmask 391168   ;;  %v502_v58 = vpack.c.bf16 %v424_v44, %v424_v44  ;;  %v539_v10 = vld [vmem:[%s1329_s3] sm:$0xff] }
  0x29   : > { %428 = vst.msk [vmem:[#allocation2 + $0x8] sm:$0x7f] %vm427_vm8, %v1038_v0  ;;  %vm495_vm8 = vcmask 335872  }
  0x2a   : > { %846 = vmatpush.msk.msra.mxu1 %vm361_vm9, %v1042_v15  ;;  %vm433_vm9 = vcmask 385080  }
  0x2c   : > { %847 = vmatpush.msk.msra.mxu1 %vm360_vm11, %v1042_v15  ;;  %vm453_vm11 = vcmask 385048  }
  0x2e   : > { %848 = vmatpush.msk.msra.mxu1 %vm359_vm12, %v1042_v15 }
  0x30   : > { %849 = vmatpush.msk.msra.mxu1 %vm358_vm13, %v1042_v15 }
  0x32   : > { %850 = vmatpush.msk.msra.mxu1 %vm357_vm14, %v1042_v15 }
  0x34   : > { %851 = vmatpush.msk.msra.mxu1 %vm356_vm0, %v1042_v15 }
  0x91   : > { %v298_v12 = vpop.permute.xlu0 %297  ;;  %v310_v13 = vpop.permute.xlu1 %309 }
  0x92   : > { %301 = vst.msk [vmem:[#allocation2] sm:$0x1] %vm300_vm3, %v298_v12  ;;  %vm355_vm3 = vcmp.eq.s32.totalorder %v340_v22, %v1162_v7  ;;  %v624_v22 = vld [vmem:[%s1316_s4] sm:$0x1] }
  0x93   : > { %313 = vst.msk [vmem:[#allocation2 + $0x3] sm:$0x1] %vm312_vm6, %v310_v13  ;;  %852 = vmatpush.msk.msra.mxu1 %vm355_vm3, %v1042_v15  ;;  %vm396_vm6 = vcmask 777216   ;;  %v565_v13 = vpack.c.bf16 %v539_v10, %v539_v10 }
  0x95   : > { %853 = vmatpush.msk.msra.mxu1 %vm354_vm5, %v1042_v15 }
  0x99   : > { %v303_v19 = vpop.permute.xlu0 %302  ;;  %v393_v31 = vpop.permute.xlu1 %392 }
  0x9a   : > { %306 = vst.msk [vmem:[#allocation2 + $0x1] sm:$0x1] %vm305_vm10, %v303_v19  ;;  %v395_v32 = vperm.slane %v393_v31, 0  ;;  %vm438_vm10 = vcmask 385072   ;;  %v640_v31 = vpack.c.bf16 %v624_v22, %v624_v22 }
  0xa1   : > { %v315_v23 = vld [vmem:[#allocation2] sm:$0xf] }
  0xa2   : > { %v316_v25 = vpack.c.bf16 %v315_v23, %v315_v23  ;;  %426 = vst.msk [vmem:[#allocation2] sm:$0xff] %vm425_vm15, %v1038_v0  ;;  %v1058_v23 = vmov 24  }
  0xa3   : > { %939 = vset.pattern.permute.xlu1 %v1058_v23 }
  0xa4   : > { %v323_v26 = vsel %vm321_vm1, %v316_v25, 0 }
  0xa5   : > { %332 = vmatpush.bf16.msra.mxu0 %v323_v26 }
  0xa8   : > { %829 = vmatmul.msk.bf16.vlgmr.msra.gmra.mxu0 %vm317_vm4, %v314_v27  ;;  %vm485_vm4 = vcmask 352256  }
  0xa9   : > { %857 = vmatpush.msk.msrb.mxu0 %vm359_vm12, %v1042_v15  ;;  %vm448_vm12 = vcmask 385056  }
  0xab   : > { %858 = vmatpush.msk.msrb.mxu0 %vm358_vm13, %v1042_v15  ;;  %vm443_vm13 = vcmask 385064  }
  0xad   : > { %859 = vmatpush.msk.msrb.mxu0 %vm357_vm14, %v1042_v15  ;;  %vm470_vm14 = vcmask 376832  }
  0xaf   : > { %860 = vmatpush.msk.msrb.mxu0 %vm356_vm0, %v1042_v15  ;;  %vm463_vm0 = vcmask 385032  }
  0xb1   : > { %861 = vmatpush.msk.msrb.mxu0 %vm355_vm3, %v1042_v15  ;;  %vm458_vm3 = vcmask 385040  }
  0xb3   : > { %862 = vmatpush.msk.msrb.mxu0 %vm354_vm5, %v1042_v15  ;;  %vm480_vm5 = vcmask 360448  }
 0x125   : > { %v334_v29 = vpop.f32.mrf.mxu0 }
 0x126   : > { %854 = vmatmul.msk.f32.vlgmr.msra.gmra.mxu1 %vm396_vm6, %v334_v29  ;;  %vm475_vm6 = vcmask 368640  }
 0x12d   : > { %v336_v30 = vpop.f32.mrf.mxu0 }
 0x1a3   : > { %v421_v33 = vpop.f32.mrf.mxu1 }
 0x1a4   : > { %v422_v34 = vadd.f32 %v421_v33, %v395_v32 }
 0x1a6   : > { %445 = vrot.lane.b32.xlu1 %v422_v34, %s1044_s22  ;;  %440 = vrot.lane.b32.xlu0 %v422_v34, %s1045_s23  ;;  %466 = vst.msk [vmem:[#allocation2 + $0x7] sm:$0x1] %vm465_vm7, %v422_v34  ;;  %s1054_s22 = smov 121   ;;  %vm500_vm7 = vcmask 327680  }
 0x1a7   : > { %430 = vrot.lane.b32.xlu2 %v422_v34, %s1046_s29 }
 0x1ae   : > { %460 = vrot.lane.b32.xlu1 %v422_v34, %s1041_s19  ;;  %455 = vrot.lane.b32.xlu0 %v422_v34, %s1039_s17 }
 0x1af   : > { %435 = vrot.lane.b32.xlu2 %v422_v34, %s1047_s8  ;;  %s1226_s8 = sand.u32 1, %s1028_s25  }
 0x1b0   : > { %s675_s0 = scalar_lea.sflag [#allocation4], %s1226_s8 }
 0x1b6   : > { %477 = vrot.lane.b32.xlu1 %v422_v34, %s1048_s9  ;;  %472 = vrot.lane.b32.xlu0 %v422_v34, %s1049_s14  ;;  %s827_s9 = sshll.u32 %s1226_s8, 2 }
 0x1b7   : > { %450 = vrot.lane.b32.xlu2 %v422_v34, %s1050_s15  ;;  %s1231_s15 = scalar_lea.vmem [#allocation3], %s827_s9 }
 0x1be   : > { %492 = vrot.lane.b32.xlu1 %v422_v34, %s1051_s16  ;;  %487 = vrot.lane.b32.xlu0 %v422_v34, %s1052_s20  ;;  %s828_s16 = sshll.u32 %s1226_s8, 3 }
 0x1bf   : > { %467 = vrot.lane.b32.xlu2 %v422_v34, %s1040_s18  ;;  %s1251_s20 = scalar_lea.vmem [#allocation5], %s828_s16 }
 0x1c6   : > { %508 = vperm.xlu0 %937, %v424_v44  }
 0x1c7   : > { %482 = vrot.lane.b32.xlu2 %v422_v34, %s1053_s21  ;;  %s695_s21 = sshll.u32 %s1231_s15, 4  ;;  %s696_s21 = int_to_ptr.vmem [resolvable:$true] %s695_s21 }
 0x1ce   : > { %938 = vset.pattern.permute.xlu0 %v1057_v14 }
 0x1cf   : > { %497 = vrot.lane.b32.xlu2 %v422_v34, %s1054_s22  ;;  %593 = vperm.xlu0 %938, %v539_v10  }
 0x1d7   : > { %940 = vset.pattern.permute.xlu0 %v1058_v23 }
 0x201   : > { %v431_v35 = vpop.permute.xlu2 %430 }
 0x202   : > { %434 = vst.msk [vmem:[#allocation2] sm:$0x1] %vm433_vm9, %v431_v35  ;;  %vm490_vm9 = vcmask 344064  }
 0x209   : > { %v436_v36 = vpop.permute.xlu2 %435 }
 0x20a   : > { %439 = vst.msk [vmem:[#allocation2 + $0x1] sm:$0x1] %vm438_vm10, %v436_v36  ;;  %vm515_vm10 = vcmask 1047552  }
 0x20b   : > { %v517_v55 = vsel %vm515_vm10, %v516_v53, 0 }
 0x211   : > { %v451_v37 = vpop.permute.xlu2 %450 }
 0x212   : > { %454 = vst.msk [vmem:[#allocation2 + $0x4] sm:$0x1] %vm453_vm11, %v451_v37  ;;  %vm511_vm11 = vcmask 121856  }
 0x218   : > { %v446_v38 = vpop.permute.xlu1 %445  ;;  %v441_v39 = vpop.permute.xlu0 %440 }
 0x219   : > { %449 = vst.msk [vmem:[#allocation2 + $0x3] sm:$0x1] %vm448_vm12, %v446_v38  ;;  %v468_v40 = vpop.permute.xlu2 %467  ;;  %vm537_vm12 = vcmask 388096  }
 0x21a   : > { %444 = vst.msk [vmem:[#allocation2 + $0x2] sm:$0x1] %vm443_vm13, %v441_v39  ;;  %vm547_vm13 = vcmask 388112  }
 0x21b   : > { %471 = vst.msk [vmem:[#allocation2 + $0x8] sm:$0x1] %vm470_vm14, %v468_v40  ;;  %vm558_vm14 = vcmask 379904  }
 0x21c   : > { %542 = vst.msk [vmem:[#allocation2 + $0x10] sm:$0xf] %vm537_vm12, %v1038_v0 }
 0x220   : > { %v461_v41 = vpop.permute.xlu1 %460  ;;  %v456_v42 = vpop.permute.xlu0 %455 }
 0x221   : > { %464 = vst.msk [vmem:[#allocation2 + $0x6] sm:$0x1] %vm463_vm0, %v461_v41  ;;  %v483_v43 = vpop.permute.xlu2 %482  ;;  %vm622_vm0 = vcmask 195584  }
 0x222   : > { %459 = vst.msk [vmem:[#allocation2 + $0x5] sm:$0x1] %vm458_vm3, %v456_v42  ;;  %vm563_vm3 = vcmask 371712  }
 0x223   : > { %486 = vst.msk [vmem:[#allocation2 + $0xb] sm:$0x1] %vm485_vm4, %v483_v43  ;;  %vm552_vm4 = vcmask 388104  }
 0x228   : > { %v478_v46 = vpop.permute.xlu1 %477  ;;  %v473_v47 = vpop.permute.xlu0 %472 }
 0x229   : > { %481 = vst.msk [vmem:[#allocation2 + $0xa] sm:$0x1] %vm480_vm5, %v478_v46  ;;  %v498_v48 = vpop.permute.xlu2 %497  ;;  %v503_v49 = vld [vmem:[#allocation2] sm:$0xff]  ;;  %vm571_vm5 = vcmask 162816  }
 0x22a   : > { %476 = vst.msk [vmem:[#allocation2 + $0x9] sm:$0x1] %vm475_vm6, %v473_v47  ;;  %vm638_vm6 = vcmask 187392  }
 0x22b   : > { %501 = vst.msk [vmem:[#allocation2 + $0xe] sm:$0x1] %vm500_vm7, %v498_v48  ;;  %vm655_vm7 = vcmask 1043456  }
 0x22c   : > { %540 = vst.msk [vmem:[#allocation2] sm:$0xff] %vm425_vm15, %v1038_v0 }
 0x230   : > { %v493_v50 = vpop.permute.xlu1 %492  ;;  %v488_v51 = vpop.permute.xlu0 %487 }
 0x231   : > { %496 = vst.msk [vmem:[#allocation2 + $0xd] sm:$0x1] %vm495_vm8, %v493_v50 }
 0x232   : > { %491 = vst.msk [vmem:[#allocation2 + $0xc] sm:$0x1] %vm490_vm9, %v488_v51 }
 0x238   : > { %v509_v59 = vpop.permute.xlu0 %508 }
 0x239   : > { %v504_v54 = vld [vmem:[#allocation2 + $0x8] sm:$0x7f] }
 0x23a   : > { %v505_v56 = vpack.c.bf16 %v504_v54, %v503_v49  ;;  %541 = vst.msk [vmem:[#allocation2 + $0x8] sm:$0xff] %vm425_vm15, %v1038_v0 }
 0x23c   : > { %v519_v57 = vand.u32 %v517_v55, %v505_v56 }
 0x23e   : > { %528 = vmatpush.bf16.msra.mxu2 %v519_v57 }
 0x241   : > { %855 = vmatmul.msk.bf16.vlgmr.msra.gmra.mxu2 %vm511_vm11, %v502_v58  ;;  %v594_v17 = vpop.permute.xlu0 %593 }
 0x2c4   : > { %v530_v60 = vpop.f32.mrf.mxu2 }
 0x2c5   : > { %v531_v61 = vadd.f32 %v530_v60, %v509_v59 }
 0x2c7   : > { %vm534_vm2 = vcmp.ge.f32.partialorder %v531_v61, 0.0  ;;  %v535_v62 = vmul.f32 0.1, %v531_v61 }
 0x2c9   : > { %v536_v63 = vsel %vm534_vm2, %v531_v61, %v535_v62 }
 0x2ca   : > { %544 = vrot.lane.b32.xlu2 %v536_v63, %s1039_s17  ;;  %560 = vrot.lane.b32.xlu1 %v536_v63, %s1049_s14  ;;  %554 = vst.msk [vmem:[#allocation2 + $0x8] sm:$0xf] %vm537_vm12, %v536_v63 }
 0x2cb   : > { %538 = vst.msk [vmem:[%s1231_s15] sm:$0xf] %vm537_vm12, %v536_v63 }
 0x2cc   : > { %v532_v1 = vpop.f32.mrf.mxu2 }
 0x2d2   : > { %555 = vrot.lane.b32.xlu2 %v536_v63, %s1040_s18  ;;  %549 = vrot.lane.b32.xlu1 %v536_v63, %s1041_s19 }
 0x324   : > { %v545_v2 = vpop.permute.xlu2 %544 }
 0x325   : > { %548 = vst.msk [vmem:[#allocation2] sm:$0xf] %vm547_vm13, %v545_v2 }
 0x32c   : > { %v556_v3 = vpop.permute.xlu2 %555 }
 0x32d   : > { %559 = vst.msk [vmem:[#allocation2 + $0xc] sm:$0xf] %vm558_vm14, %v556_v3 }
 0x334   : > { %v567_v4 = vld [vmem:[#allocation2 + $0x8] sm:$0xff] }
 0x335   : > { %626 = vst.msk [vmem:[#allocation2 + $0x8] sm:$0xff] %vm622_vm0, %v1038_v0 }
 0x33c   : > { %v561_v5 = vpop.permute.xlu1 %560 }
 0x33d   : > { %564 = vst.msk [vmem:[#allocation2 + $0x10] sm:$0xf] %vm563_vm3, %v561_v5 }
 0x344   : > { %v550_v6 = vpop.permute.xlu1 %549  ;;  %v568_v7 = vld [vmem:[#allocation2 + $0x10] sm:$0xf] }
 0x345   : > { %553 = vst.msk [vmem:[#allocation2 + $0x4] sm:$0xf] %vm552_vm4, %v550_v6  ;;  %v570_v8 = vpack.c.bf16 %v568_v7, %v568_v7 }
 0x346   : > { %627 = vst.msk [vmem:[#allocation2 + $0x10] sm:$0xff] %vm622_vm0, %v1038_v0 }
 0x347   : > { %v576_v9 = vsel %vm321_vm1, %v570_v8, 0 }
 0x348   : > { %584 = vmatpush.bf16.msra.mxu3 %v576_v9 }
 0x34c   : > { %v566_v11 = vld [vmem:[#allocation2] sm:$0xff] }
 0x34d   : > { %v569_v12 = vpack.c.bf16 %v567_v4, %v566_v11  ;;  %625 = vst.msk [vmem:[#allocation2] sm:$0xff] %vm622_vm0, %v1038_v0 }
 0x34f   : > { %585 = vmatpush.bf16.msra.mxu3 %v569_v12 }
 0x352   : > { %856 = vmatmul.msk.bf16.vlgmr.msra.gmra.mxu3 %vm571_vm5, %v565_v13 }
 0x3d5   : > { %v587_v15 = vpop.f32.mrf.mxu3 }
 0x3d6   : > { %863 = vmatmul.msk.f32.vlgmr.msrb.gmra.mxu0 %vm425_vm15, %v587_v15  ;;  %vm632_vm15 = vcmask 195592  }
 0x3dd   : > { %v589_v16 = vpop.f32.mrf.mxu3 }
 0x453   : > { %v616_v18 = vpop.f32.mrf.mxu0 }
 0x454   : > { %v617_v19 = vadd.f32 %v616_v18, %v594_v17 }
 0x456   : > { %vm619_vm1 = vcmp.ge.f32.partialorder %v617_v19, 0.0  ;;  %v620_v20 = vmul.f32 0.1, %v617_v19 }
 0x458   : > { %v621_v21 = vsel %vm619_vm1, %v617_v19, %v620_v20 }
 0x459   : > { %629 = vrot.lane.b32.xlu2 %v621_v21, %s1041_s19  ;;  %634 = vst.msk [vmem:[#allocation2 + $0x8] sm:$0xff] %vm622_vm0, %v621_v21  ;;  %635 = vrot.lane.b32.xlu1 %v621_v21, %s1040_s18  ;;  %s867_s18 = sshll.u32 %s1120_s28, 2  ;;  %s868_s19 = sshll.u32 %s1120_s28, 3 }
 0x45a   : > { %623 = vst.msk [vmem:[%s1251_s20] sm:$0xff] %vm622_vm0, %v621_v21  ;;  %s693_s9 = scalar_lea.hbm %s1317_s5, %s867_s18  ;;  %s707_s16 = scalar_lea.hbm %s1318_s6, %s868_s19 }
 0x45b   : > { %s697_s22 = sshll.u32 %s693_s9, 4  ;;  %s962_s18 = scalar_lea.hbm %s1317_s5, 8  ;;  %s698_s22 = int_to_ptr.hbm [resolvable:$true] %s697_s22 }
 0x45c   : > { %s956_s1 = sshra.s32 %s698_s22, 4  ;;  %s957_s1 = int_to_ptr.hbm [resolvable:$true] %s956_s1 }
 0x45d   : > { %s958_s2 = scalar_lea.hbm %s957_s1, 4  ;;  %p963_p0 = scmp.lt.s32.totalorder %s957_s1, %s1317_s5 }
 0x45e   : > { %p959_p11 = scmp.ne.s32.totalorder %s957_s1, %s958_s2  ;;  %p964_p1 = scmp.lt.s32.totalorder %s962_s18, %s958_s2 }
 0x460   : > { %v642_v29 = vld [vmem:[#allocation2 + $0x8] sm:$0xff]  ;;  %p960_p12 = pnand %p959_p11, %p1137_p5  ;;  %p965_p2 = por %p964_p1, %p963_p0 }
 0x461   : > { %648 = vperm.xlu1 %939, %v624_v22  }
 0x462   : > { %p961_p13 = pneg %p960_p12 }
 0x464   : > { %p966_p3 = pnand %p965_p2, %p961_p13 }
 0x4b3   : > { %v630_v0 = vpop.permute.xlu2 %629 }
 0x4b4   : > { %633 = vst.msk [vmem:[#allocation2] sm:$0xff] %vm632_vm15, %v630_v0 }
 0x4bb   : > { %v641_v28 = vld [vmem:[#allocation2] sm:$0xff] }
 0x4bc   : > { %v644_v30 = vpack.c.bf16 %v642_v29, %v641_v28 }
 0x4cb   : > { %v636_v24 = vpop.permute.xlu1 %635 }
 0x4cc   : > { %639 = vst.msk [vmem:[#allocation2 + $0x10] sm:$0xff] %vm638_vm6, %v636_v24 }
 0x4d3   : > { %v643_v25 = vld [vmem:[#allocation2 + $0x10] sm:$0xff] }
 0x4d4   : > { %v645_v26 = vpack.c.bf16 %v643_v25, %v643_v25 }
 0x4d6   : > { %v657_v27 = vsel %vm655_vm7, %v645_v26, 0 }
 0x4d7   : > { %665 = vmatpush.bf16.msrb.mxu2 %v657_v27 }
 0x4db   : > { %666 = vmatpush.bf16.msrb.mxu2 %v644_v30 }
 0x4de   : > { %864 = vmatmul.msk.bf16.vlgmr.msrb.gmra.mxu2 %vm622_vm0, %v640_v31 }
 0x4df   : > { %969 = shalt.err (!%p966_p3)
}
 0x4e0   : > { %871 = dma.vmem_to_hbm [thread:$0]  (%p1137_p5), %s696_s21, 64, %s698_s22, %s675_s0  }
 0x4e1   : > { %s709_s15 = sshll.u32 %s1251_s20, 4  ;;  %s711_s19 = sshll.u32 %s707_s16, 4  ;;  %s710_s15 = int_to_ptr.vmem [resolvable:$true] %s709_s15  ;;  %s712_s19 = int_to_ptr.hbm [resolvable:$true] %s711_s19 }
 0x4e2   : > { %s680_s3 = scalar_lea.sflag [#allocation6], %s1226_s8  ;;  %s984_s9 = sshra.s32 %s712_s19, 4  ;;  %s985_s9 = int_to_ptr.hbm [resolvable:$true] %s984_s9 }
 0x4e3   : > { %s986_s17 = scalar_lea.hbm %s985_s9, 8  ;;  %s990_s14 = scalar_lea.hbm %s1318_s6, 16 }
 0x4e4   : > { %p987_p4 = scmp.ne.s32.totalorder %s985_s9, %s986_s17  ;;  %p991_p9 = scmp.lt.s32.totalorder %s985_s9, %s1318_s6 }
 0x4e5   : > { %p992_p10 = scmp.lt.s32.totalorder %s990_s14, %s986_s17 }
 0x4e6   : > { %p988_p7 = pnand %p987_p4, %p1137_p5 }
 0x4e7   : > { %p993_p11 = por %p992_p10, %p991_p9 }
 0x4e8   : > { %p989_p8 = pneg %p988_p7 }
 0x4ea   : > { %p994_p12 = pnand %p993_p11, %p989_p8 }
 0x4ec   : > { %997 = shalt.err (!%p994_p12)
}
 0x4ed   : > { %872 = dma.vmem_to_hbm [thread:$0]  (%p1137_p5), %s710_s15, 128, %s712_s19, %s680_s3   ;;  %v649_v32 = vpop.permute.xlu1 %648  ;;  %vm672_vm8 = vcmask 188416  }
 0x4ee   : > { %v651_v33 = vperm.slane %v649_v32, 0  ;;  %s289_s20 = scalar_lea.vmem %s1319_s7, %s1150_s13 }
 0x561   : > { %v668_v34 = vpop.f32.mrf.mxu2 }
 0x562   : > { %v669_v35 = vadd.f32 %v668_v34, %v651_v33 }
 0x564   : > { %673 = vst.msk [vmem:[%s289_s20] sm:$0x1] %vm672_vm8, %v669_v35 }
 0x569   : > { %v670_v36 = vpop.f32.mrf.mxu2 }
 0x56a PF: > { %p882_p13 = scmp.ge.s32.totalorder %s1036_s27, 2  ;;  %s726_s16 = sand.u32 1, %s1024_s24  }
 0x56b   : > { %s727_s11 = scalar_lea.sflag [#allocation4], %s726_s16 }
 0x56c   : > { %p876_p0 = pnand %p882_p13, %p1141_p6 }
 0x56e   : > { %p877_p5 = pneg %p876_p0 }
 0x570   : > { %1015 = dma.done.wait (%p877_p5), %s727_s11, 64  }
 0x571   : > { %1017 = vsyncadd (%p877_p5), %s727_s11, 4294967232  ;;  %s737_s21 = scalar_lea.sflag [#allocation6], %s726_s16 }
 0x572   : > { %1019 = dma.done.wait (%p877_p5), %s737_s21, 128  }
 0x573   : > { %1021 = vsyncadd (%p877_p5), %s737_s21, 4294967168  ;;  %p21_p1 = scmp.ge.s32.totalorder %s1124_s30, 4   ;;  %s1330_s24 = smov %s1028_s25 }
 0x574   : > { %s1331_s25 = smov %s1032_s26  ;;  %s1332_s26 = smov %s1135_s10 }
 0x575   : > { %s1333_s27 = smov %s1124_s30  ;;  %23 = sbr.rel (!%p21_p1) target bundleno = 10 (0xa), region = 104 }
 0x57a   :  { %749 = vsyncpa [#allocation4], 1 }
 0x57b   :  { %751 = vsyncpa [#allocation4 + $0x1], 1 }
 0x57c   :  { %752 = vsyncpa [#allocation6], 1 }
 0x57d   :  { %754 = vsyncpa [#allocation6 + $0x1], 1 }

// kernel: hifi_forward.4
= control target key start
LH: loop header
LB: loop body
LE: loop exit
PB: predicated region body
PF: predicated region fallthrough
CT: control target
= control target key end

     0   :  { %s937_s27 = smov 0   ;;  %s1053_s0 = inlined_call_operand.vmem [shape: f32[4,1,47], index: 0, kind: input, shape index: {}]   ;;  %s1054_s1 = inlined_call_operand.vmem [shape: f32[4,6], index: 1, kind: input, shape index: {}]   ;;  %s1055_s2 = inlined_call_operand.vmem [shape: f32[8,21], index: 2, kind: input, shape index: {}]   ;;  %s1056_s3 = inlined_call_operand.vmem [shape: f32[16,41], index: 3, kind: input, shape index: {}]   ;;  %s1057_s4 = inlined_call_operand.vmem [shape: f32[1,49], index: 4, kind: input, shape index: {}]   ;;  %s1058_s5 = inlined_call_operand.vmem [shape: f32[4,4,16], index: 5, kind: output, shape index: {0}]   ;;  %s1059_s6 = inlined_call_operand.vmem [shape: f32[4,8,6], index: 6, kind: output, shape index: {1}]   ;;  %s1060_s7 = inlined_call_operand.vmem [shape: f32[4,16,6], index: 7, kind: output, shape index: {2}]   ;;  %s1061_s8 = inlined_call_operand.vmem [shape: f32[4,1,6], index: 8, kind: output, shape index: {3}]  }
   0x1 LB: > { %s815_s28 = sadd.s32 4294967295, %s879_s27   ;;  %p819_p0 = scmp.ge.s32.totalorder %s879_s27, 1  ;;  %s879_s27 = sphi %s937_s27, %s19_s27  }
   0x2   : > { %p267_p1 = scmp.lt.s32.totalorder %s879_s27, 5 }
   0x4   : > { %p268_p2 = pnand %p819_p0, %p267_p1 }
   0x5   : > { %p310_p3 = scmp.lt.s32.totalorder (!%p268_p2), %s815_s28, 3  ;;  %s882_s10 = smov (!%p268_p2), 127  }
   0x6   : > { %271 = sbr.rel (%p268_p2) target bundleno = 1362 (0x552), region = 40  ;;  %s883_s11 = smov (!%p268_p2), 2  }
   0x7   : > { %s884_s12 = smov (!%p268_p2), 126   ;;  %s885_s13 = smov (!%p268_p2), 1  }
   0xb   : > { %vm332_vm0 = vcmask 380928   ;;  %v881_v0 = vmov 0.0   ;;  %s1063_s28 = smov (!%p310_p3, %s815_s28), 3  ;;  %vm346_vm1 = vcmask 376832   ;;  %v385_v3 = vlaneseq  ;;  %v331_v19 = vld [vmem:[%s1054_s1] sm:$0xf] }
   0xc   : > { %333 = vst.msk [vmem:[#allocation2] sm:$0x1f] %vm332_vm0, %v881_v0  ;;  %s312_s9 = scalar_lea.vmem %s1053_s0, %s1063_s28  ;;  %vm351_vm2 = vcmask 368640   ;;  %vm339_vm3 = vcmask 376848   ;;  %v886_v10 = vmov 1.0   ;;  %vm356_vm6 = vcmask 360448   ;;  %s328_s18 = scalar_lea.vmem %s1061_s8, %s1063_s28 }
   0xd   : > { %v330_v1 = vld [vmem:[%s312_s9] sm:$0x1]  ;;  %v393_v4 = vand.u32 127, %v385_v3  ;;  %v386_v5 = vshrl.u32 %v385_v3, 7  ;;  %vm344_vm7 = vcmask 376840   ;;  %vm365_vm8 = vcmask 1041408  }
   0xe   : > { %v872_v2 = vld [vmem:[%s312_s9] ss:$0 sm:$0xff]  ;;  %347 = vst.msk [vmem:[#allocation2 + $0x2] sm:$0x1] %vm346_vm1, %v330_v1  ;;  %vm366_vm9 = vcmask 1042432   ;;  %v887_v14 = vmov 65535   ;;  %v358_v23 = vpack.c.bf16 %v331_v19, %v331_v19 }
   0xf   : > { %348 = vrot.lane.b32.xlu1 %v872_v2, %s882_s10  ;;  %336 = vrot.lane.b32.xlu0 %v872_v2, %s883_s11  ;;  %v394_v6 = vmul.u32 3, %v393_v4  ;;  %v387_v7 = vadd.s32 8, %v386_v5  ;;  %v391_v13 = vadd.s32 40, %v386_v5  ;;  %v367_v15 = vsel %vm365_vm8, 4294967295, %v887_v14  ;;  %s820_s16 = sshll.u32 %s1063_s28, 2  ;;  %v451_v42 = vld [vmem:[%s1055_s2] sm:$0xff] }
  0x10   : > { %v368_v17 = vsel %vm366_vm9, %v367_v15, 0  ;;  %v390_v20 = vadd.s32 32, %v386_v5  ;;  %vm422_vm11 = vcmask 1046528   ;;  %v389_v24 = vadd.s32 24, %v386_v5  ;;  %s316_s19 = scalar_lea.vmem %s1058_s5, %s820_s16  ;;  %s821_s22 = sshll.u32 %s1063_s28, 3  ;;  %v537_v59 = vld [vmem:[%s1056_s3] sm:$0xff] }
  0x11   : > { %vm396_vm4 = vcmp.eq.s32.totalorder %v387_v7, %v394_v6  ;;  %vm395_vm5 = vcmp.eq.s32.totalorder %v386_v5, %v394_v6  ;;  %vm400_vm10 = vcmp.eq.s32.totalorder %v391_v13, %v394_v6  ;;  %vm361_vm12 = vcmask 39936   ;;  %s320_s25 = scalar_lea.vmem %s1059_s6, %s821_s22  ;;  %v538_v60 = vld [vmem:[%s1056_s3 + $0x8] sm:$0xff] }
  0x12   : > { %839 = vmatpush.msk.msra.mxu3 %vm396_vm4, %v886_v10  ;;  %v830_v22 = vsel %vm400_vm10, 1.0, %v881_v0  ;;  %vm399_vm13 = vcmp.eq.s32.totalorder %v390_v20, %v394_v6  ;;  %v388_v25 = vadd.s32 16, %v386_v5  ;;  %vm398_vm14 = vcmp.eq.s32.totalorder %v389_v24, %v394_v6 }
  0x13   : > { %v888_v26 = vmov 5   ;;  %vm418_vm0 = vcmask 384000   ;;  %vm452_vm1 = vcmask 130048   ;;  %vm460_vm9 = vcmask 125968  }
  0x14   : > { %840 = vmatpush.msk.msra.mxu3 %vm395_vm5, %v886_v10  ;;  %vm397_vm15 = vcmp.eq.s32.totalorder %v388_v25, %v394_v6  ;;  %866 = vset.pattern.permute.xlu2 %v888_v26  ;;  %454 = vst.msk [vmem:[#allocation2 + $0x8] sm:$0xff] %vm452_vm1, %v881_v0  ;;  %v478_v45 = vpack.c.bf16 %v451_v42, %v451_v42  ;;  %v889_v46 = vmov 20   ;;  %v890_v61 = vmov 40  }
  0x15   : > { %415 = vperm.xlu2 %866, %v331_v19   ;;  %867 = vset.pattern.permute.xlu0 %v889_v46  ;;  %v565_v7 = vpack.c.bf16 %v538_v60, %v537_v59  ;;  %v614_v19 = vld [vmem:[%s1057_s4] sm:$0x1]  ;;  %v891_v20 = vmov 48  }
  0x16   : > { %869 = vset.pattern.permute.xlu1 %v890_v61 }
  0x17   : > { %353 = vrot.lane.b32.xlu1 %v872_v2, %s884_s12  ;;  %341 = vrot.lane.b32.xlu0 %v872_v2, %s885_s13 }
  0x6f   : > { %v416_v29 = vpop.permute.xlu2 %415 }
  0x81   : > { %v349_v8 = vpop.permute.xlu1 %348  ;;  %v337_v9 = vpop.permute.xlu0 %336 }
  0x82   : > { %352 = vst.msk [vmem:[#allocation2 + $0x3] sm:$0x1] %vm351_vm2, %v349_v8  ;;  %vm449_vm2 = vcmask 125952  }
  0x83   : > { %340 = vst.msk [vmem:[#allocation2] sm:$0x1] %vm339_vm3, %v337_v9 }
  0x84   : > { %455 = vst.msk [vmem:[#allocation2 + $0x10] sm:$0xf] %vm449_vm2, %v881_v0 }
  0x89   : > { %v354_v11 = vpop.permute.xlu1 %353  ;;  %v342_v12 = vpop.permute.xlu0 %341 }
  0x8a   : > { %357 = vst.msk [vmem:[#allocation2 + $0x4] sm:$0x1] %vm356_vm6, %v354_v11  ;;  %vm471_vm6 = vcmask 117760  }
  0x8b   : > { %345 = vst.msk [vmem:[#allocation2 + $0x1] sm:$0x1] %vm344_vm7, %v342_v12  ;;  %vm465_vm7 = vcmask 125960  }
  0x92   : > { %v359_v16 = vld [vmem:[#allocation2] sm:$0x1f] }
  0x93   : > { %v360_v18 = vpack.c.bf16 %v359_v16, %v359_v16  ;;  %453 = vst.msk [vmem:[#allocation2] sm:$0xff] %vm452_vm1, %v881_v0 }
  0x95   : > { %v370_v21 = vand.u32 %v368_v17, %v360_v18 }
  0x97   : > { %379 = vmatpush.bf16.msra.mxu1 %v370_v21 }
  0x9a   : > { %824 = vmatmul.msk.bf16.vlgmr.msra.gmra.mxu1 %vm361_vm12, %v358_v23 }
  0x9b   : > { %831 = vmatpush.msk.msrb.mxu1 %vm422_vm11, %v830_v22  ;;  %vm553_vm11 = vcmask 48136  }
  0x9d   : > { %832 = vmatpush.msk.msrb.mxu1 %vm399_vm13, %v886_v10  ;;  %vm563_vm13 = vcmask 31744  }
  0x9f   : > { %833 = vmatpush.msk.msrb.mxu1 %vm398_vm14, %v886_v10  ;;  %vm548_vm14 = vcmask 48144  }
  0xa1   : > { %834 = vmatpush.msk.msrb.mxu1 %vm397_vm15, %v886_v10  ;;  %vm588_vm15 = vcmask 1043456  }
  0xa3   : > { %835 = vmatpush.msk.msrb.mxu1 %vm396_vm4, %v886_v10  ;;  %vm535_vm4 = vcmask 48128  }
  0xa4   : > { %542 = vst.msk [vmem:[#allocation2 + $0x18] sm:$0xff] %vm535_vm4, %v881_v0 }
  0xa5   : > { %836 = vmatpush.msk.msrb.mxu1 %vm395_vm5, %v886_v10  ;;  %543 = vst.msk [vmem:[#allocation2 + $0x20] sm:$0xff] %vm535_vm4, %v881_v0  ;;  %vm476_vm5 = vcmask 109568  }
  0xa6   : > { %620 = vst.msk [vmem:[#allocation2 + $0x28] sm:$0xff] %vm535_vm4, %v881_v0 }
 0x117   : > { %v381_v27 = vpop.f32.mrf.mxu1 }
 0x118   : > { %837 = vmatmul.msk.f32.vlgmr.msrb.gmra.mxu1 %vm418_vm0, %v381_v27  ;;  %vm584_vm0 = vcmask 326656  }
 0x11f   : > { %v383_v28 = vpop.f32.mrf.mxu1 }
 0x195   : > { %v443_v30 = vpop.f32.mrf.mxu1 }
 0x196   : > { %v444_v31 = vadd.f32 %v443_v30, %v416_v29 }
 0x198   : > { %vm446_vm3 = vcmp.ge.f32.partialorder %v444_v31, 0.0  ;;  %v447_v32 = vmul.f32 0.1, %v444_v31 }
 0x19a   : > { %v448_v33 = vsel %vm446_vm3, %v444_v31, %v447_v32  ;;  %v641_v32 = vpack.c.bf16 %v614_v19, %v614_v19  ;;  %vm657_vm3 = vcmask 392192  }
 0x19b   : > { %462 = vrot.lane.b32.xlu1 %v448_v33, %s885_s13  ;;  %457 = vrot.lane.b32.xlu0 %v448_v33, %s883_s11  ;;  %450 = vst.msk [vmem:[%s316_s19] sm:$0xf] %vm449_vm2, %v448_v33 }
 0x19c   : > { %473 = vrot.lane.b32.xlu2 %v448_v33, %s884_s12  ;;  %467 = vst.msk [vmem:[#allocation2 + $0x8] sm:$0xf] %vm449_vm2, %v448_v33 }
 0x1a3   : > { %506 = vperm.xlu0 %867, %v451_v42  }
 0x1a4   : > { %468 = vrot.lane.b32.xlu2 %v448_v33, %s882_s10 }
 0x1ab   : > { %868 = vset.pattern.permute.xlu0 %v890_v61 }
 0x1ac   : > { %576 = vperm.xlu0 %868, %v537_v59  }
 0x1b4   : > { %871 = vset.pattern.permute.xlu0 %v891_v20 }
 0x1f6   : > { %v474_v34 = vpop.permute.xlu2 %473 }
 0x1f7   : > { %477 = vst.msk [vmem:[#allocation2 + $0x10] sm:$0xf] %vm476_vm5, %v474_v34 }
 0x1fe   : > { %v469_v35 = vpop.permute.xlu2 %468  ;;  %v481_v36 = vld [vmem:[#allocation2 + $0x10] sm:$0xf] }
 0x1ff   : > { %472 = vst.msk [vmem:[#allocation2 + $0xc] sm:$0xf] %vm471_vm6, %v469_v35  ;;  %v483_v37 = vpack.c.bf16 %v481_v36, %v481_v36 }
 0x200   : > { %541 = vst.msk [vmem:[#allocation2 + $0x10] sm:$0xff] %vm535_vm4, %v881_v0 }
 0x201   : > { %v489_v38 = vsel %vm365_vm8, %v483_v37, 0  ;;  %vm484_vm8 = vcmask 162816  }
 0x202   : > { %497 = vmatpush.bf16.msra.mxu2 %v489_v38 }
 0x206   : > { %v480_v39 = vld [vmem:[#allocation2 + $0x8] sm:$0xff] }
 0x207   : > { %540 = vst.msk [vmem:[#allocation2 + $0x8] sm:$0xff] %vm535_vm4, %v881_v0 }
 0x20d   : > { %v463_v40 = vpop.permute.xlu1 %462  ;;  %v458_v41 = vpop.permute.xlu0 %457 }
 0x20e   : > { %466 = vst.msk [vmem:[#allocation2 + $0x4] sm:$0xf] %vm465_vm7, %v463_v40 }
 0x20f   : > { %461 = vst.msk [vmem:[#allocation2] sm:$0xf] %vm460_vm9, %v458_v41 }
 0x215   : > { %v507_v49 = vpop.permute.xlu0 %506 }
 0x216   : > { %v479_v43 = vld [vmem:[#allocation2] sm:$0xff] }
 0x217   : > { %v482_v44 = vpack.c.bf16 %v480_v39, %v479_v43  ;;  %539 = vst.msk [vmem:[#allocation2] sm:$0xff] %vm535_vm4, %v881_v0 }
 0x219   : > { %498 = vmatpush.bf16.msra.mxu2 %v482_v44 }
 0x21c   : > { %838 = vmatmul.msk.bf16.vlgmr.msra.gmra.mxu2 %vm484_vm8, %v478_v45 }
 0x21e   : > { %v577_v8 = vpop.permute.xlu0 %576 }
 0x29f   : > { %v500_v47 = vpop.f32.mrf.mxu2 }
 0x2a0   : > { %841 = vmatmul.msk.f32.vlgmr.msra.gmra.mxu3 %vm452_vm1, %v500_v47 }
 0x2a7   : > { %v502_v48 = vpop.f32.mrf.mxu2 }
 0x323   : > { %v529_v50 = vpop.f32.mrf.mxu3 }
 0x324   : > { %v530_v51 = vadd.f32 %v529_v50, %v507_v49 }
 0x326   : > { %vm532_vm10 = vcmp.ge.f32.partialorder %v530_v51, 0.0  ;;  %v533_v52 = vmul.f32 0.1, %v530_v51 }
 0x328   : > { %v534_v53 = vsel %vm532_vm10, %v530_v51, %v533_v52 }
 0x329   : > { %536 = vst.msk [vmem:[%s320_s25] sm:$0xff] %vm535_vm4, %v534_v53  ;;  %556 = vrot.lane.b32.xlu2 %v534_v53, %s882_s10  ;;  %560 = vrot.lane.b32.xlu1 %v534_v53, %s884_s12 }
 0x32a   : > { %555 = vst.msk [vmem:[#allocation2 + $0x10] sm:$0xff] %vm535_vm4, %v534_v53 }
 0x331   : > { %550 = vrot.lane.b32.xlu2 %v534_v53, %s885_s13  ;;  %545 = vrot.lane.b32.xlu1 %v534_v53, %s883_s11  ;;  %v568_v54 = vld [vmem:[#allocation2 + $0x10] sm:$0xff]  ;;  %s846_s11 = sshll.u32 %s1063_s28, 4 }
 0x332   : > { %617 = vst.msk [vmem:[#allocation2 + $0x10] sm:$0xff] %vm535_vm4, %v881_v0  ;;  %s325_s15 = scalar_lea.vmem %s1060_s7, %s846_s11 }
 0x339   : > { %581 = vperm.xlu1 %869, %v538_v60  }
 0x341   : > { %870 = vset.pattern.permute.xlu1 %v891_v20 }
 0x383   : > { %v557_v55 = vpop.permute.xlu2 %556 }
 0x384   : > { %559 = vst.msk [vmem:[#allocation2 + $0x18] sm:$0xff] %vm361_vm12, %v557_v55 }
 0x38b   : > { %v551_v56 = vpop.permute.xlu2 %550  ;;  %v569_v57 = vld [vmem:[#allocation2 + $0x18] sm:$0xff] }
 0x38c   : > { %554 = vst.msk [vmem:[#allocation2 + $0x8] sm:$0xff] %vm553_vm11, %v551_v56  ;;  %v572_v4 = vpack.c.bf16 %v569_v57, %v568_v54 }
 0x38d   : > { %618 = vst.msk [vmem:[#allocation2 + $0x18] sm:$0xff] %vm535_vm4, %v881_v0 }
 0x393   : > { %v567_v58 = vld [vmem:[#allocation2 + $0x8] sm:$0xff] }
 0x394   : > { %616 = vst.msk [vmem:[#allocation2 + $0x8] sm:$0xff] %vm535_vm4, %v881_v0 }
 0x39b   : > { %v561_v62 = vpop.permute.xlu1 %560 }
 0x39c   : > { %564 = vst.msk [vmem:[#allocation2 + $0x20] sm:$0xff] %vm563_vm13, %v561_v62 }
 0x3a3   : > { %v546_v63 = vpop.permute.xlu1 %545  ;;  %v570_v1 = vld [vmem:[#allocation2 + $0x20] sm:$0xff] }
 0x3a4   : > { %549 = vst.msk [vmem:[#allocation2] sm:$0xff] %vm548_vm14, %v546_v63  ;;  %v573_v2 = vpack.c.bf16 %v570_v1, %v570_v1 }
 0x3a5   : > { %619 = vst.msk [vmem:[#allocation2 + $0x20] sm:$0xff] %vm535_vm4, %v881_v0 }
 0x3a6   : > { %v590_v3 = vsel %vm588_vm15, %v573_v2, 0 }
 0x3a7   : > { %597 = vmatpush.bf16.msrb.mxu3 %v590_v3 }
 0x3ab   : > { %598 = vmatpush.bf16.msrb.mxu3 %v572_v4  ;;  %v566_v5 = vld [vmem:[#allocation2] sm:$0xff] }
 0x3ac   : > { %v571_v6 = vpack.c.bf16 %v567_v58, %v566_v5  ;;  %615 = vst.msk [vmem:[#allocation2] sm:$0xff] %vm535_vm4, %v881_v0  ;;  %v582_v0 = vpop.permute.xlu1 %581 }
 0x3af   : > { %599 = vmatpush.bf16.msrb.mxu3 %v571_v6 }
 0x3b2   : > { %842 = vmatmul.msk.bf16.vlgmr.msrb.gmra.mxu3 %vm584_vm0, %v565_v7 }
 0x435   : > { %v601_v9 = vpop.f32.mrf.mxu3 }
 0x436   : > { %v602_v10 = vadd.f32 %v601_v9, %v577_v8 }
 0x438   : > { %vm606_vm1 = vcmp.ge.f32.partialorder %v602_v10, 0.0  ;;  %v608_v11 = vmul.f32 0.1, %v602_v10 }
 0x43a   : > { %v610_v12 = vsel %vm606_vm1, %v602_v10, %v608_v11 }
 0x43b   : > { %633 = vrot.lane.b32.xlu2 %v610_v12, %s882_s10  ;;  %612 = vst.msk [vmem:[%s325_s15] sm:$0xff] %vm535_vm4, %v610_v12 }
 0x43c   : > { %631 = vst.msk [vmem:[#allocation2 + $0x10] sm:$0xff] %vm535_vm4, %v610_v12 }
 0x43d   : > { %v603_v13 = vpop.f32.mrf.mxu3 }
 0x43e   : > { %v604_v14 = vadd.f32 %v603_v13, %v582_v0 }
 0x440   : > { %vm607_vm2 = vcmp.ge.f32.partialorder %v604_v14, 0.0  ;;  %v609_v15 = vmul.f32 0.1, %v604_v14 }
 0x442   : > { %v611_v16 = vsel %vm607_vm2, %v604_v14, %v609_v15 }
 0x443   : > { %625 = vrot.lane.b32.xlu0 %v611_v16, %s885_s13  ;;  %613 = vst.msk [vmem:[%s325_s15 + $0x8] sm:$0xff] %vm535_vm4, %v611_v16  ;;  %635 = vrot.lane.b32.xlu1 %v611_v16, %s882_s10  ;;  %v644_v27 = vld [vmem:[#allocation2 + $0x10] sm:$0xff] }
 0x444   : > { %632 = vst.msk [vmem:[#allocation2 + $0x18] sm:$0xff] %vm535_vm4, %v611_v16  ;;  %623 = vrot.lane.b32.xlu2 %v610_v12, %s885_s13 }
 0x44b   : > { %653 = vperm.xlu1 %870, %v614_v19   ;;  %v645_v26 = vld [vmem:[#allocation2 + $0x18] sm:$0xff] }
 0x44c   : > { %v649_v28 = vpack.c.bf16 %v645_v26, %v644_v27 }
 0x495   : > { %v634_v17 = vpop.permute.xlu2 %633 }
 0x496   : > { %639 = vst.msk [vmem:[#allocation2 + $0x20] sm:$0xff] %vm361_vm12, %v634_v17 }
 0x49d   : > { %v646_v23 = vld [vmem:[#allocation2 + $0x20] sm:$0xff] }
 0x49e   : > { %v624_v18 = vpop.permute.xlu2 %623 }
 0x49f   : > { %629 = vst.msk [vmem:[#allocation2] sm:$0xff] %vm553_vm11, %v624_v18 }
 0x4a6   : > { %v642_v30 = vld [vmem:[#allocation2] sm:$0xff] }
 0x4b5   : > { %v626_v21 = vpop.permute.xlu0 %625  ;;  %v636_v22 = vpop.permute.xlu1 %635 }
 0x4b6   : > { %630 = vst.msk [vmem:[#allocation2 + $0x8] sm:$0xff] %vm553_vm11, %v626_v21 }
 0x4b7   : > { %640 = vst.msk [vmem:[#allocation2 + $0x28] sm:$0xff] %vm361_vm12, %v636_v22  ;;  %vm674_vm12 = vcmask 40960  }
 0x4bd   : > { %v643_v29 = vld [vmem:[#allocation2 + $0x8] sm:$0xff]  ;;  %v654_v33 = vpop.permute.xlu1 %653 }
 0x4be   : > { %v647_v24 = vld [vmem:[#allocation2 + $0x28] sm:$0xff]  ;;  %v648_v31 = vpack.c.bf16 %v643_v29, %v642_v30  ;;  %v656_v34 = vperm.slane %v654_v33, 0 }
 0x4bf   : > { %v650_v25 = vpack.c.bf16 %v647_v24, %v646_v23 }
 0x4c1   : > { %666 = vmatpush.bf16.msra.mxu0 %v650_v25 }
 0x4c5   : > { %667 = vmatpush.bf16.msra.mxu0 %v649_v28 }
 0x4c9   : > { %668 = vmatpush.bf16.msra.mxu0 %v648_v31 }
 0x4cc   : > { %843 = vmatmul.msk.bf16.vlgmr.msra.gmra.mxu0 %vm657_vm3, %v641_v32 }
 0x549   : > { %v670_v35 = vpop.f32.mrf.mxu0 }
 0x54a   : > { %v671_v36 = vadd.f32 %v670_v35, %v656_v34 }
 0x54c   : > { %675 = vst.msk [vmem:[%s328_s18] sm:$0x1] %vm674_vm12, %v671_v36 }
 0x551   : > { %v672_v37 = vpop.f32.mrf.mxu0 }
 0x552 PF: > { %s19_s27 = sadd.s32 1, %s879_s27  }
 0x553   : > { %p16_p4 = scmp.ge.s32.totalorder %s19_s27, 6  }
 0x555   :  { %18 = sbr.rel (!%p16_p4) target bundleno = 1 (0x1), region = 106 }

// kernel: hifi_forward.5
= control target key start
LH: loop header
LB: loop body
LE: loop exit
PB: predicated region body
PF: predicated region fallthrough
CT: control target
= control target key end

     0   :  { %s1248_s0 = inlined_call_operand.vmem [shape: f32[6,1,32], index: 0, kind: input, shape index: {}]   ;;  %s1249_s1 = inlined_call_operand.vmem [shape: f32[4,6], index: 1, kind: input, shape index: {}]   ;;  %s1250_s2 = inlined_call_operand.vmem [shape: f32[8,21], index: 2, kind: input, shape index: {}]   ;;  %s1251_s3 = inlined_call_operand.vmem [shape: f32[16,41], index: 3, kind: input, shape index: {}]   ;;  %s1252_s4 = inlined_call_operand.vmem [shape: f32[1,49], index: 4, kind: input, shape index: {}]   ;;  %s1253_s5 = inlined_call_operand.hbm [shape: f32[6,4,11], index: 5, kind: output, shape index: {0}]   ;;  %s1254_s6 = inlined_call_operand.vmem [shape: f32[6,8,4], index: 6, kind: output, shape index: {1}]   ;;  %s1255_s7 = inlined_call_operand.vmem [shape: f32[6,16,4], index: 7, kind: output, shape index: {2}]   ;;  %s1256_s8 = inlined_call_operand.vmem [shape: f32[6,1,4], index: 8, kind: output, shape index: {3}]  }
   0x1   :  { %1257 = sst [smem:[#allocation6_spill]] %s1248_s0 }
   0x2   :  { %1258 = sst [smem:[#allocation7_spill]] %s1249_s1 }
   0x3   :  { %14 = vsyncpa [#allocation4], 0 }
   0x4   :  { %16 = vsyncpa [#allocation4 + $0x1], 0  ;;  %s1035_s27 = smov 0   ;;  %s1037_s28 = smov 0  }
   0x5   :  { %s1039_s29 = smov 0   ;;  %s1041_s30 = smov 0  }
   0x6 LB: > { %s1056_s9 = sadd.s32 4294967295, %s977_s30   ;;  %s829_s10 = sadd.s32 4294967294, %s977_s30   ;;  %s977_s30 = sphi %s1041_s30, %s1266_s30   ;;  %s973_s29 = sphi %s1039_s29, %s1265_s29   ;;  %s969_s28 = sphi %s1037_s28, %s1264_s28   ;;  %s965_s27 = sphi %s1035_s27, %s1263_s27  }
   0x7   : > { %s1060_s11 = sadd.s32 1, %s977_s30   ;;  %s139_s12 = sadd.s32 1, %s973_s29 }
   0x8   : > { %s136_s13 = ssub.s32 %s977_s30, %s1060_s11  ;;  %p149_p0 = scmp.ne.s32.totalorder %s973_s29, %s969_s28 }
   0x9   : > { %p137_p1 = scmp.eq.s32.totalorder %s136_s13, 0  ;;  %p150_p2 = scmp.eq.s32.totalorder %s1056_s9, 5 }
   0xa   : > { %p155_p3 = scmp.ne.s32.totalorder %s969_s28, %s965_s27  ;;  %p156_p4 = scmp.eq.s32.totalorder %s829_s10, 5 }
   0xb   : > { %s1071_s14 = scalar_select %p137_p1, %s973_s29, %s139_s12  }
   0xc   : > { %p1073_p5 = por %p150_p2, %p149_p0  ;;  %p1077_p6 = por %p156_p4, %p155_p3 }
   0xd   : > { %p832_p7 = scmp.ge.s32.totalorder %s977_s30, 1  ;;  %p270_p8 = scmp.lt.s32.totalorder %s977_s30, 7 }
   0xf   : > { %p271_p9 = pnand %p832_p7, %p270_p8 }
  0x10   : > { %p314_p10 = scmp.lt.s32.totalorder (!%p271_p9), %s1056_s9, 5  ;;  %s1261_s0 = sld [smem:[#allocation6_spill]] (!%p271_p9) }
  0x11   : > { %274 = sbr.rel (%p271_p9) target bundleno = 1374 (0x55e), region = 40  ;;  %s980_s21 = smov (!%p271_p9), 127  }
  0x12   : > { %s981_s22 = smov (!%p271_p9), 2   ;;  %s982_s23 = smov (!%p271_p9), 126  }
  0x13   : > { %s983_s24 = smov (!%p271_p9), 1   ;;  %s1262_s1 = sld [smem:[#allocation7_spill]] (!%p271_p9) }
  0x14   : > { %s293_s10 = sand.u32 (!%p271_p9), 1, %s969_s28  }
  0x15   : > { %s1127_s12 = sshll.u32 (!%p271_p9), %s293_s10, 2 }
  0x16   : > { %vm332_vm0 = vcmask 258048   ;;  %v979_v0 = vmov 0.0   ;;  %s1086_s17 = scalar_select %p314_p10, %s1056_s9, 5  ;;  %vm346_vm1 = vcmask 253952   ;;  %vm351_vm2 = vcmask 245760   ;;  %v439_v40 = vld [vmem:[%s1250_s2] sm:$0xff] }
  0x17   : > { %333 = vst.msk [vmem:[#allocation2] sm:$0x1f] %vm332_vm0, %v979_v0  ;;  %vm339_vm3 = vcmask 253968   ;;  %vm356_vm4 = vcmask 237568   ;;  %vm344_vm5 = vcmask 253960   ;;  %v385_v7 = vlaneseq  ;;  %s295_s13 = scalar_lea.vmem [#allocation3], %s1127_s12 }
  0x18   : > { %s316_s20 = scalar_lea.vmem %s1261_s0, %s1086_s17  ;;  %vm365_vm6 = vcmask 1041408   ;;  %vm366_vm7 = vcmask 1042432   ;;  %v984_v10 = vmov 65535   ;;  %vm361_vm9 = vcmask 39936   ;;  %v528_v57 = vld [vmem:[%s1251_s3] sm:$0xff]  ;;  %v529_v58 = vld [vmem:[%s1251_s3 + $0x8] sm:$0xff] }
  0x19   : > { %v330_v1 = vld [vmem:[%s316_s20] sm:$0x1]  ;;  %v1096_v8 = vshrl.u32 %v385_v7, 7  ;;  %v391_v9 = vand.u32 127, %v385_v7  ;;  %v367_v11 = vsel %vm365_vm6, 4294967295, %v984_v10  ;;  %v985_v22 = vmov 1.0  }
  0x1a   : > { %v914_v2 = vld [vmem:[%s316_s20] ss:$0 sm:$0xff]  ;;  %347 = vst.msk [vmem:[#allocation2 + $0x2] sm:$0x1] %vm346_vm1, %v330_v1  ;;  %v368_v15 = vsel %vm366_vm7, %v367_v11, 0  ;;  %v986_v23 = vmov 5   ;;  %v466_v43 = vpack.c.bf16 %v439_v40, %v439_v40 }
  0x1b   : > { %348 = vrot.lane.b32.xlu1 %v914_v2, %s980_s21  ;;  %336 = vrot.lane.b32.xlu0 %v914_v2, %s981_s22  ;;  %v389_v12 = vadd.s32 24, %v1096_v8  ;;  %v1100_v13 = vmul.u32 3, %v391_v9  ;;  %v331_v17 = vld [vmem:[%s1262_s1] sm:$0xf]  ;;  %v388_v18 = vadd.s32 16, %v1096_v8  ;;  %v387_v21 = vadd.s32 8, %v1096_v8 }
  0x1c   : > { %v358_v20 = vpack.c.bf16 %v331_v17, %v331_v17  ;;  %908 = vset.pattern.permute.xlu2 %v986_v23  ;;  %vm410_vm13 = vcmask 261120   ;;  %vm440_vm14 = vcmask 89088   ;;  %vm437_vm15 = vcmask 84992   ;;  %s834_s20 = sshll.u32 %s1086_s17, 3  ;;  %s857_s25 = sshll.u32 %s1086_s17, 4 }
  0x1d   : > { %vm396_vm8 = vcmp.eq.s32.totalorder %v389_v12, %v1100_v13  ;;  %vm395_vm10 = vcmp.eq.s32.totalorder %v388_v18, %v1100_v13  ;;  %vm394_vm11 = vcmp.eq.s32.totalorder %v387_v21, %v1100_v13  ;;  %vm393_vm12 = vcmp.eq.s32.totalorder %v1096_v8, %v1100_v13  ;;  %407 = vperm.xlu2 %908, %v331_v17   ;;  %s320_s18 = scalar_lea.vmem %s1254_s6, %s834_s20  ;;  %v606_v17 = vld [vmem:[%s1252_s4] sm:$0x1]  ;;  %s693_s26 = sshll.u32 %s295_s13, 4  ;;  %s694_s26 = int_to_ptr.vmem [resolvable:$true] %s693_s26 }
  0x1e   : > { %442 = vst.msk [vmem:[#allocation2 + $0x8] sm:$0xff] %vm440_vm14, %v979_v0  ;;  %vm526_vm1 = vcmask 31744   ;;  %v839_v32 = vsel %vm394_vm11, 1.0, %v979_v0  ;;  %v987_v44 = vmov 20   ;;  %v988_v59 = vmov 40   ;;  %s935_s1 = scalar_lea.hbm %s1253_s5, 24 }
  0x1f   : > { %443 = vst.msk [vmem:[#allocation2 + $0x10] sm:$0xf] %vm437_vm15, %v979_v0  ;;  %848 = vmatpush.msk.msra.mxu3 %vm366_vm7, %v839_v32  ;;  %909 = vset.pattern.permute.xlu0 %v987_v44  ;;  %v989_v18 = vmov 48  }
  0x20   : > { %533 = vst.msk [vmem:[#allocation2 + $0x18] sm:$0xff] %vm526_vm1, %v979_v0  ;;  %911 = vset.pattern.permute.xlu1 %v988_v59 }
  0x21   : > { %534 = vst.msk [vmem:[#allocation2 + $0x20] sm:$0xff] %vm526_vm1, %v979_v0  ;;  %849 = vmatpush.msk.msra.mxu3 %vm393_vm12, %v985_v22 }
  0x22   : > { %612 = vst.msk [vmem:[#allocation2 + $0x28] sm:$0xff] %vm526_vm1, %v979_v0 }
  0x23   : > { %353 = vrot.lane.b32.xlu1 %v914_v2, %s982_s23  ;;  %341 = vrot.lane.b32.xlu0 %v914_v2, %s983_s24 }
  0x77   : > { %v408_v26 = vpop.permute.xlu2 %407 }
  0x8d   : > { %v349_v3 = vpop.permute.xlu1 %348  ;;  %v337_v4 = vpop.permute.xlu0 %336 }
  0x8e   : > { %352 = vst.msk [vmem:[#allocation2 + $0x3] sm:$0x1] %vm351_vm2, %v349_v3  ;;  %vm464_vm2 = vcmask 68608  }
  0x8f   : > { %340 = vst.msk [vmem:[#allocation2] sm:$0x1] %vm339_vm3, %v337_v4  ;;  %vm459_vm3 = vcmask 76800  }
  0x95   : > { %v354_v5 = vpop.permute.xlu1 %353  ;;  %v342_v6 = vpop.permute.xlu0 %341 }
  0x96   : > { %357 = vst.msk [vmem:[#allocation2 + $0x4] sm:$0x1] %vm356_vm4, %v354_v5  ;;  %vm453_vm4 = vcmask 85000   ;;  %v557_v5 = vpack.c.bf16 %v529_v58, %v528_v57 }
  0x97   : > { %345 = vst.msk [vmem:[#allocation2 + $0x1] sm:$0x1] %vm344_vm5, %v342_v6  ;;  %vm448_vm5 = vcmask 85008  }
  0x9e   : > { %v359_v14 = vld [vmem:[#allocation2] sm:$0x1f] }
  0x9f   : > { %v360_v16 = vpack.c.bf16 %v359_v14, %v359_v14  ;;  %441 = vst.msk [vmem:[#allocation2] sm:$0xff] %vm440_vm14, %v979_v0 }
  0xa1   : > { %v370_v19 = vand.u32 %v368_v15, %v360_v16 }
  0xa3   : > { %379 = vmatpush.bf16.msra.mxu1 %v370_v19 }
  0xa6   : > { %837 = vmatmul.msk.bf16.vlgmr.msra.gmra.mxu1 %vm361_vm9, %v358_v20  ;;  %vm544_vm9 = vcmask 31752  }
  0xa7   : > { %842 = vmatpush.msk.msrb.mxu1 %vm396_vm8, %v985_v22  ;;  %vm550_vm8 = vcmask 23552  }
  0xa9   : > { %843 = vmatpush.msk.msrb.mxu1 %vm395_vm10, %v985_v22  ;;  %vm555_vm10 = vcmask 15360  }
  0xab   : > { %844 = vmatpush.msk.msrb.mxu1 %vm394_vm11, %v985_v22  ;;  %vm539_vm11 = vcmask 31760  }
  0xad   : > { %845 = vmatpush.msk.msrb.mxu1 %vm393_vm12, %v985_v22  ;;  %vm580_vm12 = vcmask 1043456  }
 0x123   : > { %v381_v24 = vpop.f32.mrf.mxu1 }
 0x124   : > { %846 = vmatmul.msk.f32.vlgmr.msrb.gmra.mxu1 %vm410_vm13, %v381_v24  ;;  %vm576_vm13 = vcmask 326656  }
 0x12b   : > { %v383_v25 = vpop.f32.mrf.mxu1 }
 0x1a1   : > { %v431_v27 = vpop.f32.mrf.mxu1 }
 0x1a2   : > { %v432_v28 = vadd.f32 %v431_v27, %v408_v26 }
 0x1a4   : > { %vm434_vm0 = vcmp.ge.f32.partialorder %v432_v28, 0.0  ;;  %v435_v29 = vmul.f32 0.1, %v432_v28 }
 0x1a6   : > { %v436_v30 = vsel %vm434_vm0, %v432_v28, %v435_v29  ;;  %vm649_vm0 = vcmask 392192  }
 0x1a7   : > { %450 = vrot.lane.b32.xlu1 %v436_v30, %s983_s24  ;;  %445 = vrot.lane.b32.xlu0 %v436_v30, %s981_s22  ;;  %455 = vst.msk [vmem:[#allocation2 + $0x8] sm:$0xf] %vm437_vm15, %v436_v30 }
 0x1a8   : > { %461 = vrot.lane.b32.xlu2 %v436_v30, %s982_s23  ;;  %438 = vst.msk [vmem:[%s295_s13] sm:$0xf] %vm437_vm15, %v436_v30 }
 0x1af   : > { %494 = vperm.xlu0 %909, %v439_v40  }
 0x1b0   : > { %456 = vrot.lane.b32.xlu2 %v436_v30, %s980_s21  ;;  %v633_v30 = vpack.c.bf16 %v606_v17, %v606_v17 }
 0x1b7   : > { %910 = vset.pattern.permute.xlu0 %v988_v59 }
 0x1b8   : > { %568 = vperm.xlu0 %910, %v528_v57  }
 0x1c0   : > { %913 = vset.pattern.permute.xlu0 %v989_v18 }
 0x202   : > { %v462_v31 = vpop.permute.xlu2 %461 }
 0x203   : > { %465 = vst.msk [vmem:[#allocation2 + $0x10] sm:$0xf] %vm464_vm2, %v462_v31 }
 0x20a   : > { %v457_v33 = vpop.permute.xlu2 %456  ;;  %v469_v34 = vld [vmem:[#allocation2 + $0x10] sm:$0xf] }
 0x20b   : > { %460 = vst.msk [vmem:[#allocation2 + $0xc] sm:$0xf] %vm459_vm3, %v457_v33  ;;  %v471_v35 = vpack.c.bf16 %v469_v34, %v469_v34 }
 0x20c   : > { %532 = vst.msk [vmem:[#allocation2 + $0x10] sm:$0xff] %vm526_vm1, %v979_v0 }
 0x20d   : > { %v477_v36 = vsel %vm365_vm6, %v471_v35, 0  ;;  %vm472_vm6 = vcmask 162816  }
 0x20e   : > { %485 = vmatpush.bf16.msra.mxu2 %v477_v36 }
 0x212   : > { %v468_v37 = vld [vmem:[#allocation2 + $0x8] sm:$0xff] }
 0x213   : > { %531 = vst.msk [vmem:[#allocation2 + $0x8] sm:$0xff] %vm526_vm1, %v979_v0 }
 0x219   : > { %v451_v38 = vpop.permute.xlu1 %450  ;;  %v446_v39 = vpop.permute.xlu0 %445 }
 0x21a   : > { %454 = vst.msk [vmem:[#allocation2 + $0x4] sm:$0xf] %vm453_vm4, %v451_v38 }
 0x21b   : > { %449 = vst.msk [vmem:[#allocation2] sm:$0xf] %vm448_vm5, %v446_v39 }
 0x221   : > { %v495_v47 = vpop.permute.xlu0 %494 }
 0x222   : > { %v467_v41 = vld [vmem:[#allocation2] sm:$0xff] }
 0x223   : > { %v470_v42 = vpack.c.bf16 %v468_v37, %v467_v41  ;;  %530 = vst.msk [vmem:[#allocation2] sm:$0xff] %vm526_vm1, %v979_v0 }
 0x225   : > { %486 = vmatpush.bf16.msra.mxu2 %v470_v42 }
 0x228   : > { %847 = vmatmul.msk.bf16.vlgmr.msra.gmra.mxu2 %vm472_vm6, %v466_v43 }
 0x22a   : > { %v569_v6 = vpop.permute.xlu0 %568 }
 0x2ab   : > { %v488_v45 = vpop.f32.mrf.mxu2 }
 0x2ac   : > { %850 = vmatmul.msk.f32.vlgmr.msra.gmra.mxu3 %vm440_vm14, %v488_v45 }
 0x2b3   : > { %v490_v46 = vpop.f32.mrf.mxu2 }
 0x32f   : > { %v520_v48 = vpop.f32.mrf.mxu3 }
 0x330   : > { %v521_v49 = vadd.f32 %v520_v48, %v495_v47 }
 0x332   : > { %vm523_vm7 = vcmp.ge.f32.partialorder %v521_v49, 0.0  ;;  %v524_v50 = vmul.f32 0.1, %v521_v49 }
 0x334   : > { %v525_v51 = vsel %vm523_vm7, %v521_v49, %v524_v50 }
 0x335   : > { %527 = vst.msk [vmem:[%s320_s18] sm:$0xff] %vm526_vm1, %v525_v51  ;;  %547 = vrot.lane.b32.xlu2 %v525_v51, %s980_s21  ;;  %552 = vrot.lane.b32.xlu1 %v525_v51, %s982_s23  ;;  %s325_s23 = scalar_lea.vmem %s1255_s7, %s857_s25 }
 0x336   : > { %546 = vst.msk [vmem:[#allocation2 + $0x10] sm:$0xff] %vm526_vm1, %v525_v51 }
 0x33d   : > { %541 = vrot.lane.b32.xlu2 %v525_v51, %s983_s24  ;;  %536 = vrot.lane.b32.xlu1 %v525_v51, %s981_s22  ;;  %v560_v52 = vld [vmem:[#allocation2 + $0x10] sm:$0xff] }
 0x33e   : > { %609 = vst.msk [vmem:[#allocation2 + $0x10] sm:$0xff] %vm526_vm1, %v979_v0 }
 0x345   : > { %573 = vperm.xlu1 %911, %v529_v58  }
 0x34d   : > { %912 = vset.pattern.permute.xlu1 %v989_v18 }
 0x38f   : > { %v548_v53 = vpop.permute.xlu2 %547 }
 0x390   : > { %551 = vst.msk [vmem:[#allocation2 + $0x18] sm:$0xff] %vm550_vm8, %v548_v53 }
 0x397   : > { %v542_v54 = vpop.permute.xlu2 %541  ;;  %v561_v55 = vld [vmem:[#allocation2 + $0x18] sm:$0xff] }
 0x398   : > { %545 = vst.msk [vmem:[#allocation2 + $0x8] sm:$0xff] %vm544_vm9, %v542_v54  ;;  %v564_v2 = vpack.c.bf16 %v561_v55, %v560_v52 }
 0x399   : > { %610 = vst.msk [vmem:[#allocation2 + $0x18] sm:$0xff] %vm526_vm1, %v979_v0 }
 0x39f   : > { %v559_v56 = vld [vmem:[#allocation2 + $0x8] sm:$0xff] }
 0x3a0   : > { %608 = vst.msk [vmem:[#allocation2 + $0x8] sm:$0xff] %vm526_vm1, %v979_v0 }
 0x3a7   : > { %v553_v60 = vpop.permute.xlu1 %552 }
 0x3a8   : > { %556 = vst.msk [vmem:[#allocation2 + $0x20] sm:$0xff] %vm555_vm10, %v553_v60 }
 0x3af   : > { %v537_v61 = vpop.permute.xlu1 %536  ;;  %v562_v62 = vld [vmem:[#allocation2 + $0x20] sm:$0xff] }
 0x3b0   : > { %540 = vst.msk [vmem:[#allocation2] sm:$0xff] %vm539_vm11, %v537_v61  ;;  %v565_v63 = vpack.c.bf16 %v562_v62, %v562_v62 }
 0x3b1   : > { %611 = vst.msk [vmem:[#allocation2 + $0x20] sm:$0xff] %vm526_vm1, %v979_v0 }
 0x3b2   : > { %v582_v1 = vsel %vm580_vm12, %v565_v63, 0 }
 0x3b3   : > { %589 = vmatpush.bf16.msrb.mxu3 %v582_v1 }
 0x3b7   : > { %590 = vmatpush.bf16.msrb.mxu3 %v564_v2  ;;  %v558_v3 = vld [vmem:[#allocation2] sm:$0xff] }
 0x3b8   : > { %v563_v4 = vpack.c.bf16 %v559_v56, %v558_v3  ;;  %607 = vst.msk [vmem:[#allocation2] sm:$0xff] %vm526_vm1, %v979_v0  ;;  %v574_v0 = vpop.permute.xlu1 %573 }
 0x3bb   : > { %591 = vmatpush.bf16.msrb.mxu3 %v563_v4 }
 0x3be   : > { %851 = vmatmul.msk.bf16.vlgmr.msrb.gmra.mxu3 %vm576_vm13, %v557_v5 }
 0x441   : > { %v593_v7 = vpop.f32.mrf.mxu3 }
 0x442   : > { %v594_v8 = vadd.f32 %v593_v7, %v569_v6 }
 0x444   : > { %vm598_vm14 = vcmp.ge.f32.partialorder %v594_v8, 0.0  ;;  %v600_v9 = vmul.f32 0.1, %v594_v8 }
 0x446   : > { %v602_v10 = vsel %vm598_vm14, %v594_v8, %v600_v9 }
 0x447   : > { %625 = vrot.lane.b32.xlu2 %v602_v10, %s980_s21  ;;  %604 = vst.msk [vmem:[%s325_s23] sm:$0xff] %vm526_vm1, %v602_v10 }
 0x448   : > { %623 = vst.msk [vmem:[#allocation2 + $0x10] sm:$0xff] %vm526_vm1, %v602_v10 }
 0x449   : > { %v595_v11 = vpop.f32.mrf.mxu3 }
 0x44a   : > { %v596_v12 = vadd.f32 %v595_v11, %v574_v0 }
 0x44c   : > { %vm599_vm15 = vcmp.ge.f32.partialorder %v596_v12, 0.0  ;;  %v601_v13 = vmul.f32 0.1, %v596_v12 }
 0x44e   : > { %v603_v14 = vsel %vm599_vm15, %v596_v12, %v601_v13 }
 0x44f   : > { %617 = vrot.lane.b32.xlu0 %v603_v14, %s983_s24  ;;  %605 = vst.msk [vmem:[%s325_s23 + $0x8] sm:$0xff] %vm526_vm1, %v603_v14  ;;  %627 = vrot.lane.b32.xlu1 %v603_v14, %s980_s21  ;;  %v636_v25 = vld [vmem:[#allocation2 + $0x10] sm:$0xff]  ;;  %s854_s21 = sshll.u32 %s1056_s9, 2  ;;  %s669_s23 = scalar_lea.sflag [#allocation4], %s293_s10 }
 0x450   : > { %624 = vst.msk [vmem:[#allocation2 + $0x18] sm:$0xff] %vm526_vm1, %v603_v14  ;;  %615 = vrot.lane.b32.xlu2 %v602_v10, %s983_s24  ;;  %s691_s25 = scalar_lea.hbm %s1253_s5, %s854_s21 }
 0x451   : > { %s695_s18 = sshll.u32 %s691_s25, 4  ;;  %s696_s18 = int_to_ptr.hbm [resolvable:$true] %s695_s18 }
 0x452   : > { %s929_s19 = sshra.s32 %s696_s18, 4  ;;  %s930_s19 = int_to_ptr.hbm [resolvable:$true] %s929_s19 }
 0x453   : > { %s931_s22 = scalar_lea.hbm %s930_s19, 4  ;;  %p936_p0 = scmp.lt.s32.totalorder %s930_s19, %s1253_s5 }
 0x454   : > { %p932_p11 = scmp.ne.s32.totalorder %s930_s19, %s931_s22  ;;  %p937_p1 = scmp.lt.s32.totalorder %s935_s1, %s931_s22 }
 0x456   : > { %p933_p12 = pnand %p932_p11, %p1073_p5  ;;  %p938_p2 = por %p937_p1, %p936_p0 }
 0x457   : > { %645 = vperm.xlu1 %912, %v606_v17   ;;  %v637_v24 = vld [vmem:[#allocation2 + $0x18] sm:$0xff] }
 0x458   : > { %v641_v26 = vpack.c.bf16 %v637_v24, %v636_v25  ;;  %p934_p13 = pneg %p933_p12 }
 0x45a   : > { %p939_p3 = pnand %p938_p2, %p934_p13 }
 0x4a1   : > { %v626_v15 = vpop.permute.xlu2 %625 }
 0x4a2   : > { %631 = vst.msk [vmem:[#allocation2 + $0x20] sm:$0xff] %vm550_vm8, %v626_v15 }
 0x4a9   : > { %v638_v21 = vld [vmem:[#allocation2 + $0x20] sm:$0xff] }
 0x4aa   : > { %v616_v16 = vpop.permute.xlu2 %615 }
 0x4ab   : > { %621 = vst.msk [vmem:[#allocation2] sm:$0xff] %vm544_vm9, %v616_v16 }
 0x4b2   : > { %v634_v28 = vld [vmem:[#allocation2] sm:$0xff] }
 0x4c1   : > { %v618_v19 = vpop.permute.xlu0 %617  ;;  %v628_v20 = vpop.permute.xlu1 %627 }
 0x4c2   : > { %622 = vst.msk [vmem:[#allocation2 + $0x8] sm:$0xff] %vm544_vm9, %v618_v19 }
 0x4c3   : > { %632 = vst.msk [vmem:[#allocation2 + $0x28] sm:$0xff] %vm550_vm8, %v628_v20 }
 0x4c9   : > { %v635_v27 = vld [vmem:[#allocation2 + $0x8] sm:$0xff] }
 0x4ca   : > { %v639_v22 = vld [vmem:[#allocation2 + $0x28] sm:$0xff]  ;;  %v640_v29 = vpack.c.bf16 %v635_v27, %v634_v28 }
 0x4cb   : > { %v642_v23 = vpack.c.bf16 %v639_v22, %v638_v21 }
 0x4cd   : > { %658 = vmatpush.bf16.msra.mxu0 %v642_v23 }
 0x4d1   : > { %659 = vmatpush.bf16.msra.mxu0 %v641_v26 }
 0x4d5   : > { %660 = vmatpush.bf16.msra.mxu0 %v640_v29 }
 0x4d8   : > { %852 = vmatmul.msk.bf16.vlgmr.msra.gmra.mxu0 %vm649_vm0, %v633_v30 }
 0x4d9   : > { %942 = shalt.err (!%p939_p3)
}
 0x4da   : > { %858 = dma.vmem_to_hbm [thread:$0]  (%p1073_p5), %s694_s26, 64, %s696_s18, %s669_s23   ;;  %v646_v31 = vpop.permute.xlu1 %645  ;;  %vm666_vm1 = vcmask 24576  }
 0x4db   : > { %v648_v32 = vperm.slane %v646_v31, 0  ;;  %s328_s13 = scalar_lea.vmem %s1256_s8, %s1086_s17 }
 0x555   : > { %v662_v33 = vpop.f32.mrf.mxu0 }
 0x556   : > { %v663_v34 = vadd.f32 %v662_v33, %v648_v32 }
 0x558   : > { %667 = vst.msk [vmem:[%s328_s13] sm:$0x1] %vm666_vm1, %v663_v34 }
 0x55d   : > { %v664_v35 = vpop.f32.mrf.mxu0 }
 0x55e PF: > { %p864_p4 = scmp.ge.s32.totalorder %s977_s30, 2  ;;  %s716_s0 = sand.u32 1, %s965_s27  }
 0x55f   : > { %s717_s1 = scalar_lea.sflag [#allocation4], %s716_s0 }
 0x560   : > { %p861_p7 = pnand %p864_p4, %p1077_p6 }
 0x562   : > { %p862_p5 = pneg %p861_p7 }
 0x564   : > { %960 = dma.done.wait (%p862_p5), %s717_s1, 64  }
 0x565   : > { %962 = vsyncadd (%p862_p5), %s717_s1, 4294967232  ;;  %p19_p8 = scmp.ge.s32.totalorder %s1060_s11, 8   ;;  %s1263_s27 = smov %s969_s28 }
 0x566   : > { %s1264_s28 = smov %s973_s29  ;;  %s1265_s29 = smov %s1071_s14 }
 0x567   : > { %s1266_s30 = smov %s1060_s11  ;;  %21 = sbr.rel (!%p19_p8) target bundleno = 6 (0x6), region = 111 }
 0x56c   :  { %744 = vsyncpa [#allocation4], 1 }
 0x56d   :  { %746 = vsyncpa [#allocation4 + $0x1], 1 }

</bundles_post_ra>
